<compile_context>
chip_gen: v6e
topology: v6e:2x2x1
jax: 0.10.0
libtpu: 0.0.40
codegen_flags: <defaults>
</compile_context>

<pallas_src>
import math
import functools

import jax
import jax.numpy as jnp
import numpy as np
from jax.experimental import pallas as pl
from jax.experimental.pallas import tpu as pltpu

BERT_DIM = 1024


# ----------------------------------------------------------------------------
# helpers
# ----------------------------------------------------------------------------
@functools.lru_cache(maxsize=1)
def _vmem_limit_bytes():
    """Scoped-VMEM request: generous on v5e/v6e (128 MiB), safe on v7x (64 MiB)."""
    try:
        phys = int(pltpu.get_tpu_info().vmem_capacity_bytes)
    except Exception:
        phys = 64 * 1024 * 1024
    return max(32 * 1024 * 1024, min(96 * 1024 * 1024, phys - 16 * 1024 * 1024))


def _round_tile(t, n):
    """Clamp tile to n; if it does not cover n, keep it a multiple of 8 rows."""
    t = max(1, min(int(t), n))
    if t < n:
        t = max(8, (t // 8) * 8)
    return min(t, n)


def _full_spec(arr):
    return pl.BlockSpec(arr.shape, lambda i, _nd=arr.ndim: (0,) * _nd)


_NEWS_KEYS = ("w1", "b1", "w2qkv", "b2qkv", "wa", "ba", "qa")
_USER_KEYS = ("wqkv", "bqkv", "wa", "ba", "qa")


# ----------------------------------------------------------------------------
# shared in-kernel math: multi-head self-attention + additive-attention pooling
# ----------------------------------------------------------------------------
def _mhsa_pool(qkv, wa, ba, qa, head_num, head_dim, b, l):
    """qkv: (b*l, 3*nd) f32 -> pooled (b, nd) f32.

    Per-head static loop (head_num is tiny).  The downstream `ctx @ wa`
    contribution is accumulated per head so only the small pooled (b, head_dim)
    chunks are concatenated along lanes at the very end.
    """
    nd = head_num * head_dim
    m = b * l
    scale = 1.0 / math.sqrt(head_dim)
    q = qkv[:, :nd].reshape(b, l, nd)
    k = qkv[:, nd:2 * nd].reshape(b, l, nd)
    v = qkv[:, 2 * nd:].reshape(b, l, nd)

    ctx_heads = []
    pre = None                                  # (m, key_dim) additive-attn hidden
    for h in range(head_num):                   # static unroll, tiny head count
        sl = slice(h * head_dim, (h + 1) * head_dim)
        s = jnp.einsum("nqd,nkd->nqk", q[..., sl], k[..., sl],
                       preferred_element_type=jnp.float32) * scale      # (b,l,l)
        s = s - jnp.max(s, axis=-1, keepdims=True)
        p = jnp.exp(s)
        p = p * pl.reciprocal(jnp.sum(p, axis=-1, keepdims=True), approx=True)
        ch = jnp.einsum("nqk,nkd->nqd", p, v[..., sl],
                        preferred_element_type=jnp.float32)             # (b,l,hd)
        ctx_heads.append(ch)
        th = jnp.dot(ch.reshape(m, head_dim), wa[sl, :],
                     preferred_element_type=jnp.float32)                # (m,key)
        pre = th if pre is None else pre + th

    # LinearAttn: additive attention pooling over the sequence axis
    t = jnp.tanh(pre + ba)                                              # (m,key)
    sc = jnp.sum(t * qa, axis=-1, keepdims=True).reshape(b, l, 1)
    sc = sc - jnp.max(sc, axis=1, keepdims=True)
    al = jnp.exp(sc)
    al = al * pl.reciprocal(jnp.sum(al, axis=1, keepdims=True), approx=True)
    pooled = [jnp.sum(al * ch, axis=1) for ch in ctx_heads]             # (b,hd) each
    return jnp.concatenate(pooled, axis=-1)                             # (b,nd)


# ----------------------------------------------------------------------------
# NewsEncoder kernel: tile_n news items per step
#   BERT(1024) -> Linear/ReLU -> fused (l2 + QKV) -> MHSA -> additive attn
# ----------------------------------------------------------------------------
def _news_encoder_kernel(head_num, head_dim, tile_n, seq_len,
                         x_ref, w1_ref, b1_ref, w2qkv_ref, b2qkv_ref,
                         wa_ref, ba_ref, qa_ref, o_ref):
    # flat (tile_n*seq, 1024) rows; cast to bf16 right at the MXU boundary
    xb = x_ref[...].astype(jnp.bfloat16)
    h = jnp.dot(xb, w1_ref[...], preferred_element_type=jnp.float32) + b1_ref[...]
    h = jnp.maximum(h, 0.0)                                             # ReLU, f32
    # l2 folded into the fused QKV projection: (M, hid_pad) @ (hid_pad, 3*nd)
    qkv = jnp.dot(h.astype(jnp.bfloat16), w2qkv_ref[...],
                  preferred_element_type=jnp.float32) + b2qkv_ref[...]
    out = _mhsa_pool(qkv, wa_ref[...], ba_ref[...], qa_ref[...],
                     head_num, head_dim, tile_n, seq_len)
    o_ref[...] = out.astype(o_ref.dtype)                                # (tile_n, nd)


# ----------------------------------------------------------------------------
# NewsSetEncoder (user) kernel: tile_b users per step, MHSA over the history
# ----------------------------------------------------------------------------
def _user_encoder_kernel(head_num, head_dim, tile_b, n_his,
                         z_ref, wqkv_ref, bqkv_ref, wa_ref, ba_ref, qa_ref, o_ref):
    z = z_ref[...].astype(wqkv_ref.dtype)                               # (tile_b*n_his, nd)
    qkv = jnp.dot(z, wqkv_ref[...],
                  preferred_element_type=jnp.float32) + bqkv_ref[...]
    out = _mhsa_pool(qkv, wa_ref[...], ba_ref[...], qa_ref[...],
                     head_num, head_dim, tile_b, n_his)
    o_ref[...] = out.astype(o_ref.dtype)                                # (tile_b, nd)


# ----------------------------------------------------------------------------
# wrappers
# ----------------------------------------------------------------------------
def news_encoder_forward(x, params, head_num, head_dim, max_tile=128):
    """x: (N, S, BERT_DIM) f32/bf16 BERT features -> (N, news_dim) f32."""
    n, s, d = x.shape
    assert d == BERT_DIM
    news_dim = head_num * head_dim
    hid_pad = params["w1"].shape[1]
    qkv_cols = params["w2qkv"].shape[1]

    vmem_limit = _vmem_limit_bytes()
    # per-item VMEM: double-buffered input rows + f32 intermediates (h, qkv, attn)
    per_item = (2 * s * d * x.dtype.itemsize
                + s * hid_pad * 4 + 2 * s * qkv_cols * 4 + 8 * s * news_dim * 4)
    tile_n = _round_tile(min(max_tile, (vmem_limit // 2) // per_item), n)

    x2 = x.reshape(n * s, d)          # free: contiguous merge of leading dims

    kernel = functools.partial(_news_encoder_kernel, head_num, head_dim, tile_n, s)
    in_specs = [pl.BlockSpec((tile_n * s, d), lambda i: (i, 0))]
    in_specs += [_full_spec(params[key]) for key in _NEWS_KEYS]

    return pl.pallas_call(
        kernel,
        out_shape=jax.ShapeDtypeStruct((n, news_dim), jnp.float32),
        grid=(pl.cdiv(n, tile_n),),
        in_specs=in_specs,
        out_specs=pl.BlockSpec((tile_n, news_dim), lambda i: (i, 0)),
        compiler_params=pltpu.CompilerParams(
            dimension_semantics=("parallel",),
            vmem_limit_bytes=vmem_limit),
    )(x2, *[params[key] for key in _NEWS_KEYS])


def user_encoder_forward(z, params, head_num, head_dim, max_tile=256):
    """z: (B, n_his, news_dim) f32 news vectors -> (B, news_dim) f32."""
    b, n_his, news_dim = z.shape
    vmem_limit = _vmem_limit_bytes()
    per_user = n_his * news_dim * 4 * 12      # input (dbl-buffered) + qkv + attn tmp
    tile_b = _round_tile(min(max_tile, (vmem_limit // 2) // max(per_user, 1)), b)

    z2 = z.reshape(b * n_his, news_dim)       # free: contiguous merge of leading dims

    kernel = functools.partial(_user_encoder_kernel, head_num, head_dim, tile_b, n_his)
    in_specs = [pl.BlockSpec((tile_b * n_his, news_dim), lambda i: (i, 0))]
    in_specs += [_full_spec(params[key]) for key in _USER_KEYS]

    return pl.pallas_call(
        kernel,
        out_shape=jax.ShapeDtypeStruct((b, news_dim), jnp.float32),
        grid=(pl.cdiv(b, tile_b),),
        in_specs=in_specs,
        out_specs=pl.BlockSpec((tile_b, news_dim), lambda i: (i, 0)),
        compiler_params=pltpu.CompilerParams(
            dimension_semantics=("parallel",),
            vmem_limit_bytes=vmem_limit),
    )(z2, *[params[key] for key in _USER_KEYS])


# ----------------------------------------------------------------------------
# parameter construction (deterministic, PyTorch-Linear-style uniform init)
# ----------------------------------------------------------------------------
def _init_linear(key, fan_in, fan_out):
    kw, kb = jax.random.split(key)
    bound = 1.0 / math.sqrt(fan_in)
    w = jax.random.uniform(kw, (fan_in, fan_out), jnp.float32, -bound, bound)
    b = jax.random.uniform(kb, (1, fan_out), jnp.float32, -bound, bound)
    return w, b


class NRMS:
    """JAX/Pallas re-implementation of the NRMS forward pass (inference)."""

    def __init__(self, config, word2vec_embedding, key):
        self.head_num = config["head_num"]
        self.head_dim = config["head_dim"]
        self.news_dim = self.head_num * self.head_dim
        self.user_dim = self.news_dim
        self.key_dim = config["attention_hidden_dim"]
        word_dim = config["word_emb_dim"]
        hid_dim = (BERT_DIM + word_dim) // 2
        hid_pad = ((hid_dim + 127) // 128) * 128     # lane-align the MLP hidden dim

        # kept for parity with the torch module; this forward path consumes
        # precomputed BERT features so the embedding table is not used.
        self.word_emb = jnp.asarray(word2vec_embedding, jnp.float32)

        keys = jax.random.split(key, 12)
        w1, b1 = _init_linear(keys[0], BERT_DIM, hid_dim)
        w2, b2 = _init_linear(keys[1], hid_dim, word_dim)
        wq, bq = _init_linear(keys[2], word_dim, self.news_dim)
        wk, bk = _init_linear(keys[3], word_dim, self.news_dim)
        wv, bv = _init_linear(keys[4], word_dim, self.news_dim)
        wa, ba = _init_linear(keys[5], self.news_dim, self.key_dim)
        qa = jax.random.uniform(keys[6], (1, self.key_dim), jnp.float32, -1.0, 1.0)

        # fold l2 into the fused QKV projection (exact algebra at f32):
        #   (z @ w2 + b2) @ wqkv + bqkv == z @ (w2 @ wqkv) + (b2 @ wqkv + bqkv)
        wqkv = jnp.concatenate([wq, wk, wv], axis=1)                # (word_dim, 3*nd)
        bqkv = jnp.concatenate([bq, bk, bv], axis=1)                # (1, 3*nd)
        w2qkv = w2 @ wqkv                                           # (hid_dim, 3*nd)
        b2qkv = b2 @ wqkv + bqkv                                    # (1, 3*nd)

        # zero-pad hid_dim -> hid_pad: ReLU(0)=0 columns feed zero rows of w2qkv,
        # so the math is exactly preserved.
        pad = hid_pad - hid_dim
        w1 = jnp.pad(w1, ((0, 0), (0, pad)))
        b1 = jnp.pad(b1, ((0, 0), (0, pad)))
        w2qkv = jnp.pad(w2qkv, ((0, pad), (0, 0)))

        self.news_params = {
            "w1": w1.astype(jnp.bfloat16), "b1": b1,
            "w2qkv": w2qkv.astype(jnp.bfloat16), "b2qkv": b2qkv,
            "wa": wa, "ba": ba, "qa": qa,
        }

        uwq, ubq = _init_linear(keys[7], self.news_dim, self.news_dim)
        uwk, ubk = _init_linear(keys[8], self.news_dim, self.news_dim)
        uwv, ubv = _init_linear(keys[9], self.news_dim, self.news_dim)
        uwa, uba = _init_linear(keys[10], self.news_dim, self.key_dim)
        uqa = jax.random.uniform(keys[11], (1, self.key_dim), jnp.float32, -1.0, 1.0)
        self.user_params = {
            "wqkv": jnp.concatenate([uwq, uwk, uwv], axis=1).astype(jnp.bfloat16),
            "bqkv": jnp.concatenate([ubq, ubk, ubv], axis=1),
            "wa": uwa, "ba": uba, "qa": uqa,
        }

    def __call__(self, x, source):
        if source == "candidate":
            # x: (B, S, 1024) BERT features of candidate news -> (B, news_dim)
            return news_encoder_forward(x, self.news_params,
                                        self.head_num, self.head_dim)
        elif source == "history":
            # x: (B, n_his, S, 1024) -> (B, user_dim)   (NewsSetEncoder path)
            b, n_his, s, d = x.shape
            news = news_encoder_forward(x.reshape(b * n_his, s, d), self.news_params,
                                        self.head_num, self.head_dim)
            return user_encoder_forward(news.reshape(b, n_his, self.news_dim),
                                        self.user_params, self.head_num, self.head_dim)
        elif source == "pgt":
            # TODO(synk): GlobalAttn / PGTEncoder is not defined in the reference
            # source, so the 'pgt' branch is not implemented.
            raise NotImplementedError("pgt branch requires GlobalAttn definition")
        else:
            raise ValueError(f"unknown source {source!r}")


# ----------------------------------------------------------------------------
# pure-JAX reference (same fused parameters, f32 accumulation)
# ----------------------------------------------------------------------------
def _attn_pool_ref(qkv, wa, ba, qa, head_num, head_dim, b, l):
    nd = head_num * head_dim
    q = qkv[:, :nd].reshape(b, l, head_num, head_dim)
    k = qkv[:, nd:2 * nd].reshape(b, l, head_num, head_dim)
    v = qkv[:, 2 * nd:].reshape(b, l, head_num, head_dim)
    att = jax.nn.softmax(
        jnp.einsum("nqhd,nkhd->nhqk", q, k) / math.sqrt(head_dim), axis=-1)
    ctx = jnp.einsum("nhqk,nkhd->nqhd", att, v).reshape(b, l, nd)
    t = jnp.tanh(jnp.einsum("nld,dk->nlk", ctx, wa) + ba)
    sc = jnp.sum(t * qa, axis=-1, keepdims=True)
    al = jax.nn.softmax(sc, axis=1)
    return jnp.sum(al * ctx, axis=1)


def _news_ref(x, p, head_num, head_dim):
    n, s, d = x.shape
    xb = x.reshape(n * s, d).astype(jnp.bfloat16)
    h = jnp.dot(xb, p["w1"], preferred_element_type=jnp.float32) + p["b1"]
    h = jnp.maximum(h, 0.0)
    qkv = jnp.dot(h.astype(jnp.bfloat16), p["w2qkv"],
                  preferred_element_type=jnp.float32) + p["b2qkv"]
    return _attn_pool_ref(qkv, p["wa"], p["ba"], p["qa"], head_num, head_dim, n, s)


def _user_ref(z, p, head_num, head_dim):
    b, l, nd = z.shape
    qkv = jnp.dot(z.reshape(b * l, nd).astype(p["wqkv"].dtype), p["wqkv"],
                  preferred_element_type=jnp.float32) + p["bqkv"]
    return _attn_pool_ref(qkv, p["wa"], p["ba"], p["qa"], head_num, head_dim, b, l)


if __name__ == "__main__":
    key = jax.random.PRNGKey(0)
    k_params, k_emb, k_cand, k_his = jax.random.split(key, 4)

    config = {
        "word_emb_dim": 64,
        "head_num": 4,
        "head_dim": 16,
        "attention_hidden_dim": 32,
        "dropout": 0.2,
        "global": False,
    }
    vocab = 100
    word2vec_embedding = jax.random.normal(k_emb, (vocab, config["word_emb_dim"]),
                                           jnp.float32)

    model = NRMS(config, word2vec_embedding, k_params)

    B, n_his, S = 2, 3, 8
    x_cand = jax.random.normal(k_cand, (B, S, BERT_DIM), jnp.float32)
    x_his = jax.random.normal(k_his, (B, n_his, S, BERT_DIM), jnp.float32)

    cand_out = jax.block_until_ready(model(x_cand, "candidate"))
    his_out = jax.block_until_ready(model(x_his, "history"))

    nd = config["head_num"] * config["head_dim"]
    assert cand_out.shape == (B, nd)
    assert his_out.shape == (B, nd)
    assert bool(jnp.all(jnp.isfinite(cand_out))) and bool(jnp.all(jnp.isfinite(his_out)))

    # correctness vs. plain-JAX reference of the same math / same parameters
    hn, hd = config["head_num"], config["head_dim"]
    cand_ref = _news_ref(x_cand, model.news_params, hn, hd)
    his_news_ref = _news_ref(x_his.reshape(B * n_his, S, BERT_DIM),
                             model.news_params, hn, hd).reshape(B, n_his, nd)
    his_ref = _user_ref(his_news_ref, model.user_params, hn, hd)
    np.testing.assert_allclose(np.asarray(cand_out), np.asarray(cand_ref),
                               atol=2e-2, rtol=2e-2)
    np.testing.assert_allclose(np.asarray(his_out), np.asarray(his_ref),
                               atol=2e-2, rtol=2e-2)

    print("KERNEL_OK")
</pallas_src>

<mosaic_0001>
module attributes {stable_mosaic.version = 11 : i64} {
  func.func @_news_encoder_kernel(%arg0: i32, %arg1: memref<16x1024xf32, #tpu.memory_space<vmem>>, %arg2: memref<1024x640xbf16, #tpu.memory_space<vmem>>, %arg3: memref<1x640xf32, #tpu.memory_space<vmem>>, %arg4: memref<640x192xbf16, #tpu.memory_space<vmem>>, %arg5: memref<1x192xf32, #tpu.memory_space<vmem>>, %arg6: memref<64x32xf32, #tpu.memory_space<vmem>>, %arg7: memref<1x32xf32, #tpu.memory_space<vmem>>, %arg8: memref<1x32xf32, #tpu.memory_space<vmem>>, %arg9: memref<2x64xf32, #tpu.memory_space<vmem>>) attributes {dimension_semantics = [#tpu.dimension_semantics<parallel>], iteration_bounds = array<i64: 1>, scalar_prefetch = 0 : i64, scratch_operands = 0 : i64, tpu.core_type = #tpu.core_type<tc>, window_params = [{transform_indices = @transform_0, window_bounds = array<i64: 16, 1024>}, {pipeline_mode = #tpu.pipeline_mode<synchronous>, transform_indices = @transform_1, window_bounds = array<i64: 1024, 640>}, {pipeline_mode = #tpu.pipeline_mode<synchronous>, transform_indices = @transform_2, window_bounds = array<i64: 1, 640>}, {pipeline_mode = #tpu.pipeline_mode<synchronous>, transform_indices = @transform_3, window_bounds = array<i64: 640, 192>}, {pipeline_mode = #tpu.pipeline_mode<synchronous>, transform_indices = @transform_4, window_bounds = array<i64: 1, 192>}, {pipeline_mode = #tpu.pipeline_mode<synchronous>, transform_indices = @transform_5, window_bounds = array<i64: 64, 32>}, {pipeline_mode = #tpu.pipeline_mode<synchronous>, transform_indices = @transform_6, window_bounds = array<i64: 1, 32>}, {pipeline_mode = #tpu.pipeline_mode<synchronous>, transform_indices = @transform_7, window_bounds = array<i64: 1, 32>}, {transform_indices = @transform_8, window_bounds = array<i64: 2, 64>}]} {
    %c0 = arith.constant 0 : index
    %c0_0 = arith.constant 0 : index
    %0 = vector.load %arg1[%c0, %c0_0] : memref<16x1024xf32, #tpu.memory_space<vmem>>, vector<16x1024xf32>
    %1 = arith.truncf %0 : vector<16x1024xf32> to vector<16x1024xbf16>
    %c0_1 = arith.constant 0 : index
    %c0_2 = arith.constant 0 : index
    %2 = vector.load %arg2[%c0_1, %c0_2] : memref<1024x640xbf16, #tpu.memory_space<vmem>>, vector<1024x640xbf16>
    %cst = arith.constant dense<0.000000e+00> : vector<16x640xf32>
    %3 = tpu.matmul %1, %2, %cst {dimension_numbers = #tpu.dot_dimension_numbers<[1], [0], [0], [1], [0, 0, 1, 1], [], []>} : vector<16x1024xbf16>, vector<1024x640xbf16>, vector<16x640xf32> -> vector<16x640xf32>
    %c0_3 = arith.constant 0 : index
    %c0_4 = arith.constant 0 : index
    %4 = vector.load %arg3[%c0_3, %c0_4] : memref<1x640xf32, #tpu.memory_space<vmem>>, vector<1x640xf32>
    %5 = vector.broadcast %4 : vector<1x640xf32> to vector<16x640xf32>
    %6 = arith.addf %3, %5 : vector<16x640xf32>
    %cst_5 = arith.constant 0.000000e+00 : f32
    %7 = vector.broadcast %cst_5 : f32 to vector<16x640xf32>
    %8 = arith.maximumf %6, %7 : vector<16x640xf32>
    %9 = arith.truncf %8 : vector<16x640xf32> to vector<16x640xbf16>
    %c0_6 = arith.constant 0 : index
    %c0_7 = arith.constant 0 : index
    %10 = vector.load %arg4[%c0_6, %c0_7] : memref<640x192xbf16, #tpu.memory_space<vmem>>, vector<640x192xbf16>
    %cst_8 = arith.constant dense<0.000000e+00> : vector<16x192xf32>
    %11 = tpu.matmul %9, %10, %cst_8 {dimension_numbers = #tpu.dot_dimension_numbers<[1], [0], [0], [1], [0, 0, 1, 1], [], []>} : vector<16x640xbf16>, vector<640x192xbf16>, vector<16x192xf32> -> vector<16x192xf32>
    %c0_9 = arith.constant 0 : index
    %c0_10 = arith.constant 0 : index
    %12 = vector.load %arg5[%c0_9, %c0_10] : memref<1x192xf32, #tpu.memory_space<vmem>>, vector<1x192xf32>
    %13 = vector.broadcast %12 : vector<1x192xf32> to vector<16x192xf32>
    %14 = arith.addf %11, %13 : vector<16x192xf32>
    %c0_11 = arith.constant 0 : index
    %c0_12 = arith.constant 0 : index
    %15 = vector.load %arg6[%c0_11, %c0_12] : memref<64x32xf32, #tpu.memory_space<vmem>>, vector<64x32xf32>
    %c0_13 = arith.constant 0 : index
    %c0_14 = arith.constant 0 : index
    %16 = vector.load %arg7[%c0_13, %c0_14] : memref<1x32xf32, #tpu.memory_space<vmem>>, vector<1x32xf32>
    %c0_15 = arith.constant 0 : index
    %c0_16 = arith.constant 0 : index
    %17 = vector.load %arg8[%c0_15, %c0_16] : memref<1x32xf32, #tpu.memory_space<vmem>>, vector<1x32xf32>
    %18 = vector.extract_strided_slice %14 {offsets = [0, 0], sizes = [16, 64], strides = [1, 1]} : vector<16x192xf32> to vector<16x64xf32>
    %19 = vector.shape_cast %18 : vector<16x64xf32> to vector<2x8x64xf32>
    %20 = vector.extract_strided_slice %14 {offsets = [0, 64], sizes = [16, 64], strides = [1, 1]} : vector<16x192xf32> to vector<16x64xf32>
    %21 = vector.shape_cast %20 : vector<16x64xf32> to vector<2x8x64xf32>
    %22 = vector.extract_strided_slice %14 {offsets = [0, 128], sizes = [16, 64], strides = [1, 1]} : vector<16x192xf32> to vector<16x64xf32>
    %23 = vector.shape_cast %22 : vector<16x64xf32> to vector<2x8x64xf32>
    %24 = vector.extract_strided_slice %19 {offsets = [0, 0, 0], sizes = [2, 8, 16], strides = [1, 1, 1]} : vector<2x8x64xf32> to vector<2x8x16xf32>
    %25 = vector.extract_strided_slice %21 {offsets = [0, 0, 0], sizes = [2, 8, 16], strides = [1, 1, 1]} : vector<2x8x64xf32> to vector<2x8x16xf32>
    "tpu.trace_start"() <{level = 10 : i32, message = "nqd,nkd->nqk"}> : () -> ()
    %cst_17 = arith.constant dense<0.000000e+00> : vector<2x8x8xf32>
    %26 = tpu.matmul %24, %25, %cst_17 {dimension_numbers = #tpu.dot_dimension_numbers<[2], [2], [1], [1], [0, 0, 0, 1, 1, 1], [0], [0]>} : vector<2x8x16xf32>, vector<2x8x16xf32>, vector<2x8x8xf32> -> vector<2x8x8xf32>
    "tpu.trace_stop"() : () -> ()
    %cst_18 = arith.constant 2.500000e-01 : f32
    %27 = vector.broadcast %cst_18 : f32 to vector<2x8x8xf32>
    %28 = arith.mulf %26, %27 : vector<2x8x8xf32>
    %cst_19 = arith.constant dense<0xFF800000> : vector<2x8xf32>
    %29 = vector.multi_reduction <maximumf>, %28, %cst_19 [2] : vector<2x8x8xf32> to vector<2x8xf32>
    %30 = vector.shape_cast %29 : vector<2x8xf32> to vector<2x8x1xf32>
    %31 = vector.broadcast %30 : vector<2x8x1xf32> to vector<2x8x8xf32>
    %32 = arith.subf %28, %31 : vector<2x8x8xf32>
    %33 = math.exp %32 : vector<2x8x8xf32>
    %cst_20 = arith.constant dense<0.000000e+00> : vector<2x8xf32>
    %34 = vector.multi_reduction <add>, %33, %cst_20 [2] : vector<2x8x8xf32> to vector<2x8xf32>
    %35 = vector.shape_cast %34 : vector<2x8xf32> to vector<2x8x1xf32>
    %36 = tpu.reciprocal %35 {approx = true} : vector<2x8x1xf32> -> vector<2x8x1xf32>
    %37 = vector.broadcast %36 : vector<2x8x1xf32> to vector<2x8x8xf32>
    %38 = arith.mulf %33, %37 : vector<2x8x8xf32>
    %39 = vector.extract_strided_slice %23 {offsets = [0, 0, 0], sizes = [2, 8, 16], strides = [1, 1, 1]} : vector<2x8x64xf32> to vector<2x8x16xf32>
    "tpu.trace_start"() <{level = 10 : i32, message = "nqk,nkd->nqd"}> : () -> ()
    %cst_21 = arith.constant dense<0.000000e+00> : vector<2x8x16xf32>
    %40 = tpu.matmul %38, %39, %cst_21 {dimension_numbers = #tpu.dot_dimension_numbers<[2], [1], [1], [2], [0, 0, 0, 1, 1, 2], [0], [0]>} : vector<2x8x8xf32>, vector<2x8x16xf32>, vector<2x8x16xf32> -> vector<2x8x16xf32>
    "tpu.trace_stop"() : () -> ()
    %41 = vector.shape_cast %40 : vector<2x8x16xf32> to vector<16x16xf32>
    %42 = vector.extract_strided_slice %15 {offsets = [0, 0], sizes = [16, 32], strides = [1, 1]} : vector<64x32xf32> to vector<16x32xf32>
    %cst_22 = arith.constant dense<0.000000e+00> : vector<16x32xf32>
    %43 = tpu.matmul %41, %42, %cst_22 {dimension_numbers = #tpu.dot_dimension_numbers<[1], [0], [0], [1], [0, 0, 1, 1], [], []>} : vector<16x16xf32>, vector<16x32xf32>, vector<16x32xf32> -> vector<16x32xf32>
    %44 = vector.extract_strided_slice %19 {offsets = [0, 0, 16], sizes = [2, 8, 16], strides = [1, 1, 1]} : vector<2x8x64xf32> to vector<2x8x16xf32>
    %45 = vector.extract_strided_slice %21 {offsets = [0, 0, 16], sizes = [2, 8, 16], strides = [1, 1, 1]} : vector<2x8x64xf32> to vector<2x8x16xf32>
    "tpu.trace_start"() <{level = 10 : i32, message = "nqd,nkd->nqk"}> : () -> ()
    %cst_23 = arith.constant dense<0.000000e+00> : vector<2x8x8xf32>
    %46 = tpu.matmul %44, %45, %cst_23 {dimension_numbers = #tpu.dot_dimension_numbers<[2], [2], [1], [1], [0, 0, 0, 1, 1, 1], [0], [0]>} : vector<2x8x16xf32>, vector<2x8x16xf32>, vector<2x8x8xf32> -> vector<2x8x8xf32>
    "tpu.trace_stop"() : () -> ()
    %cst_24 = arith.constant 2.500000e-01 : f32
    %47 = vector.broadcast %cst_24 : f32 to vector<2x8x8xf32>
    %48 = arith.mulf %46, %47 : vector<2x8x8xf32>
    %cst_25 = arith.constant dense<0xFF800000> : vector<2x8xf32>
    %49 = vector.multi_reduction <maximumf>, %48, %cst_25 [2] : vector<2x8x8xf32> to vector<2x8xf32>
    %50 = vector.shape_cast %49 : vector<2x8xf32> to vector<2x8x1xf32>
    %51 = vector.broadcast %50 : vector<2x8x1xf32> to vector<2x8x8xf32>
    %52 = arith.subf %48, %51 : vector<2x8x8xf32>
    %53 = math.exp %52 : vector<2x8x8xf32>
    %cst_26 = arith.constant dense<0.000000e+00> : vector<2x8xf32>
    %54 = vector.multi_reduction <add>, %53, %cst_26 [2] : vector<2x8x8xf32> to vector<2x8xf32>
    %55 = vector.shape_cast %54 : vector<2x8xf32> to vector<2x8x1xf32>
    %56 = tpu.reciprocal %55 {approx = true} : vector<2x8x1xf32> -> vector<2x8x1xf32>
    %57 = vector.broadcast %56 : vector<2x8x1xf32> to vector<2x8x8xf32>
    %58 = arith.mulf %53, %57 : vector<2x8x8xf32>
    %59 = vector.extract_strided_slice %23 {offsets = [0, 0, 16], sizes = [2, 8, 16], strides = [1, 1, 1]} : vector<2x8x64xf32> to vector<2x8x16xf32>
    "tpu.trace_start"() <{level = 10 : i32, message = "nqk,nkd->nqd"}> : () -> ()
    %cst_27 = arith.constant dense<0.000000e+00> : vector<2x8x16xf32>
    %60 = tpu.matmul %58, %59, %cst_27 {dimension_numbers = #tpu.dot_dimension_numbers<[2], [1], [1], [2], [0, 0, 0, 1, 1, 2], [0], [0]>} : vector<2x8x8xf32>, vector<2x8x16xf32>, vector<2x8x16xf32> -> vector<2x8x16xf32>
    "tpu.trace_stop"() : () -> ()
    %61 = vector.shape_cast %60 : vector<2x8x16xf32> to vector<16x16xf32>
    %62 = vector.extract_strided_slice %15 {offsets = [16, 0], sizes = [16, 32], strides = [1, 1]} : vector<64x32xf32> to vector<16x32xf32>
    %cst_28 = arith.constant dense<0.000000e+00> : vector<16x32xf32>
    %63 = tpu.matmul %61, %62, %cst_28 {dimension_numbers = #tpu.dot_dimension_numbers<[1], [0], [0], [1], [0, 0, 1, 1], [], []>} : vector<16x16xf32>, vector<16x32xf32>, vector<16x32xf32> -> vector<16x32xf32>
    %64 = arith.addf %43, %63 : vector<16x32xf32>
    %65 = vector.extract_strided_slice %19 {offsets = [0, 0, 32], sizes = [2, 8, 16], strides = [1, 1, 1]} : vector<2x8x64xf32> to vector<2x8x16xf32>
    %66 = vector.extract_strided_slice %21 {offsets = [0, 0, 32], sizes = [2, 8, 16], strides = [1, 1, 1]} : vector<2x8x64xf32> to vector<2x8x16xf32>
    "tpu.trace_start"() <{level = 10 : i32, message = "nqd,nkd->nqk"}> : () -> ()
    %cst_29 = arith.constant dense<0.000000e+00> : vector<2x8x8xf32>
    %67 = tpu.matmul %65, %66, %cst_29 {dimension_numbers = #tpu.dot_dimension_numbers<[2], [2], [1], [1], [0, 0, 0, 1, 1, 1], [0], [0]>} : vector<2x8x16xf32>, vector<2x8x16xf32>, vector<2x8x8xf32> -> vector<2x8x8xf32>
    "tpu.trace_stop"() : () -> ()
    %cst_30 = arith.constant 2.500000e-01 : f32
    %68 = vector.broadcast %cst_30 : f32 to vector<2x8x8xf32>
    %69 = arith.mulf %67, %68 : vector<2x8x8xf32>
    %cst_31 = arith.constant dense<0xFF800000> : vector<2x8xf32>
    %70 = vector.multi_reduction <maximumf>, %69, %cst_31 [2] : vector<2x8x8xf32> to vector<2x8xf32>
    %71 = vector.shape_cast %70 : vector<2x8xf32> to vector<2x8x1xf32>
    %72 = vector.broadcast %71 : vector<2x8x1xf32> to vector<2x8x8xf32>
    %73 = arith.subf %69, %72 : vector<2x8x8xf32>
    %74 = math.exp %73 : vector<2x8x8xf32>
    %cst_32 = arith.constant dense<0.000000e+00> : vector<2x8xf32>
    %75 = vector.multi_reduction <add>, %74, %cst_32 [2] : vector<2x8x8xf32> to vector<2x8xf32>
    %76 = vector.shape_cast %75 : vector<2x8xf32> to vector<2x8x1xf32>
    %77 = tpu.reciprocal %76 {approx = true} : vector<2x8x1xf32> -> vector<2x8x1xf32>
    %78 = vector.broadcast %77 : vector<2x8x1xf32> to vector<2x8x8xf32>
    %79 = arith.mulf %74, %78 : vector<2x8x8xf32>
    %80 = vector.extract_strided_slice %23 {offsets = [0, 0, 32], sizes = [2, 8, 16], strides = [1, 1, 1]} : vector<2x8x64xf32> to vector<2x8x16xf32>
    "tpu.trace_start"() <{level = 10 : i32, message = "nqk,nkd->nqd"}> : () -> ()
    %cst_33 = arith.constant dense<0.000000e+00> : vector<2x8x16xf32>
    %81 = tpu.matmul %79, %80, %cst_33 {dimension_numbers = #tpu.dot_dimension_numbers<[2], [1], [1], [2], [0, 0, 0, 1, 1, 2], [0], [0]>} : vector<2x8x8xf32>, vector<2x8x16xf32>, vector<2x8x16xf32> -> vector<2x8x16xf32>
    "tpu.trace_stop"() : () -> ()
    %82 = vector.shape_cast %81 : vector<2x8x16xf32> to vector<16x16xf32>
    %83 = vector.extract_strided_slice %15 {offsets = [32, 0], sizes = [16, 32], strides = [1, 1]} : vector<64x32xf32> to vector<16x32xf32>
    %cst_34 = arith.constant dense<0.000000e+00> : vector<16x32xf32>
    %84 = tpu.matmul %82, %83, %cst_34 {dimension_numbers = #tpu.dot_dimension_numbers<[1], [0], [0], [1], [0, 0, 1, 1], [], []>} : vector<16x16xf32>, vector<16x32xf32>, vector<16x32xf32> -> vector<16x32xf32>
    %85 = arith.addf %64, %84 : vector<16x32xf32>
    %86 = vector.extract_strided_slice %19 {offsets = [0, 0, 48], sizes = [2, 8, 16], strides = [1, 1, 1]} : vector<2x8x64xf32> to vector<2x8x16xf32>
    %87 = vector.extract_strided_slice %21 {offsets = [0, 0, 48], sizes = [2, 8, 16], strides = [1, 1, 1]} : vector<2x8x64xf32> to vector<2x8x16xf32>
    "tpu.trace_start"() <{level = 10 : i32, message = "nqd,nkd->nqk"}> : () -> ()
    %cst_35 = arith.constant dense<0.000000e+00> : vector<2x8x8xf32>
    %88 = tpu.matmul %86, %87, %cst_35 {dimension_numbers = #tpu.dot_dimension_numbers<[2], [2], [1], [1], [0, 0, 0, 1, 1, 1], [0], [0]>} : vector<2x8x16xf32>, vector<2x8x16xf32>, vector<2x8x8xf32> -> vector<2x8x8xf32>
    "tpu.trace_stop"() : () -> ()
    %cst_36 = arith.constant 2.500000e-01 : f32
    %89 = vector.broadcast %cst_36 : f32 to vector<2x8x8xf32>
    %90 = arith.mulf %88, %89 : vector<2x8x8xf32>
    %cst_37 = arith.constant dense<0xFF800000> : vector<2x8xf32>
    %91 = vector.multi_reduction <maximumf>, %90, %cst_37 [2] : vector<2x8x8xf32> to vector<2x8xf32>
    %92 = vector.shape_cast %91 : vector<2x8xf32> to vector<2x8x1xf32>
    %93 = vector.broadcast %92 : vector<2x8x1xf32> to vector<2x8x8xf32>
    %94 = arith.subf %90, %93 : vector<2x8x8xf32>
    %95 = math.exp %94 : vector<2x8x8xf32>
    %cst_38 = arith.constant dense<0.000000e+00> : vector<2x8xf32>
    %96 = vector.multi_reduction <add>, %95, %cst_38 [2] : vector<2x8x8xf32> to vector<2x8xf32>
    %97 = vector.shape_cast %96 : vector<2x8xf32> to vector<2x8x1xf32>
    %98 = tpu.reciprocal %97 {approx = true} : vector<2x8x1xf32> -> vector<2x8x1xf32>
    %99 = vector.broadcast %98 : vector<2x8x1xf32> to vector<2x8x8xf32>
    %100 = arith.mulf %95, %99 : vector<2x8x8xf32>
    %101 = vector.extract_strided_slice %23 {offsets = [0, 0, 48], sizes = [2, 8, 16], strides = [1, 1, 1]} : vector<2x8x64xf32> to vector<2x8x16xf32>
    "tpu.trace_start"() <{level = 10 : i32, message = "nqk,nkd->nqd"}> : () -> ()
    %cst_39 = arith.constant dense<0.000000e+00> : vector<2x8x16xf32>
    %102 = tpu.matmul %100, %101, %cst_39 {dimension_numbers = #tpu.dot_dimension_numbers<[2], [1], [1], [2], [0, 0, 0, 1, 1, 2], [0], [0]>} : vector<2x8x8xf32>, vector<2x8x16xf32>, vector<2x8x16xf32> -> vector<2x8x16xf32>
    "tpu.trace_stop"() : () -> ()
    %103 = vector.shape_cast %102 : vector<2x8x16xf32> to vector<16x16xf32>
    %104 = vector.extract_strided_slice %15 {offsets = [48, 0], sizes = [16, 32], strides = [1, 1]} : vector<64x32xf32> to vector<16x32xf32>
    %cst_40 = arith.constant dense<0.000000e+00> : vector<16x32xf32>
    %105 = tpu.matmul %103, %104, %cst_40 {dimension_numbers = #tpu.dot_dimension_numbers<[1], [0], [0], [1], [0, 0, 1, 1], [], []>} : vector<16x16xf32>, vector<16x32xf32>, vector<16x32xf32> -> vector<16x32xf32>
    %106 = arith.addf %85, %105 : vector<16x32xf32>
    %107 = vector.broadcast %16 : vector<1x32xf32> to vector<16x32xf32>
    %108 = arith.addf %106, %107 : vector<16x32xf32>
    %109 = math.tanh %108 : vector<16x32xf32>
    %110 = vector.broadcast %17 : vector<1x32xf32> to vector<16x32xf32>
    %111 = arith.mulf %109, %110 : vector<16x32xf32>
    %cst_41 = arith.constant dense<0.000000e+00> : vector<16xf32>
    %112 = vector.multi_reduction <add>, %111, %cst_41 [1] : vector<16x32xf32> to vector<16xf32>
    %113 = vector.shape_cast %112 : vector<16xf32> to vector<16x1xf32>
    %114 = vector.shape_cast %113 : vector<16x1xf32> to vector<2x8x1xf32>
    %cst_42 = arith.constant dense<0xFF800000> : vector<2x1xf32>
    %115 = vector.multi_reduction <maximumf>, %114, %cst_42 [1] : vector<2x8x1xf32> to vector<2x1xf32>
    %116 = vector.shape_cast %115 : vector<2x1xf32> to vector<2x1x1xf32>
    %117 = vector.broadcast %116 : vector<2x1x1xf32> to vector<2x8x1xf32>
    %118 = arith.subf %114, %117 : vector<2x8x1xf32>
    %119 = math.exp %118 : vector<2x8x1xf32>
    %cst_43 = arith.constant dense<0.000000e+00> : vector<2x1xf32>
    %120 = vector.multi_reduction <add>, %119, %cst_43 [1] : vector<2x8x1xf32> to vector<2x1xf32>
    %121 = vector.shape_cast %120 : vector<2x1xf32> to vector<2x1x1xf32>
    %122 = tpu.reciprocal %121 {approx = true} : vector<2x1x1xf32> -> vector<2x1x1xf32>
    %123 = vector.broadcast %122 : vector<2x1x1xf32> to vector<2x8x1xf32>
    %124 = arith.mulf %119, %123 : vector<2x8x1xf32>
    %125 = vector.broadcast %124 : vector<2x8x1xf32> to vector<2x8x16xf32>
    %126 = arith.mulf %125, %40 : vector<2x8x16xf32>
    %cst_44 = arith.constant dense<0.000000e+00> : vector<2x16xf32>
    %127 = vector.multi_reduction <add>, %126, %cst_44 [1] : vector<2x8x16xf32> to vector<2x16xf32>
    %128 = vector.broadcast %124 : vector<2x8x1xf32> to vector<2x8x16xf32>
    %129 = arith.mulf %128, %60 : vector<2x8x16xf32>
    %cst_45 = arith.constant dense<0.000000e+00> : vector<2x16xf32>
    %130 = vector.multi_reduction <add>, %129, %cst_45 [1] : vector<2x8x16xf32> to vector<2x16xf32>
    %131 = vector.broadcast %124 : vector<2x8x1xf32> to vector<2x8x16xf32>
    %132 = arith.mulf %131, %81 : vector<2x8x16xf32>
    %cst_46 = arith.constant dense<0.000000e+00> : vector<2x16xf32>
    %133 = vector.multi_reduction <add>, %132, %cst_46 [1] : vector<2x8x16xf32> to vector<2x16xf32>
    %134 = vector.broadcast %124 : vector<2x8x1xf32> to vector<2x8x16xf32>
    %135 = arith.mulf %134, %102 : vector<2x8x16xf32>
    %cst_47 = arith.constant dense<0.000000e+00> : vector<2x16xf32>
    %136 = vector.multi_reduction <add>, %135, %cst_47 [1] : vector<2x8x16xf32> to vector<2x16xf32>
    %137 = tpu.concatenate %127, %130, %133, %136 in 1 : vector<2x16xf32>, vector<2x16xf32>, vector<2x16xf32>, vector<2x16xf32> -> vector<2x64xf32>
    %c0_48 = arith.constant 0 : index
    %c0_49 = arith.constant 0 : index
    %138 = vector.load %arg9[%c0_48, %c0_49] : memref<2x64xf32, #tpu.memory_space<vmem>>, vector<2x64xf32>
    tpu.vector_store %arg9[%c0_48, %c0_49], %137 {strides = array<i32>} : memref<2x64xf32, #tpu.memory_space<vmem>>, vector<2x64xf32>,
    return
  }
  func.func @transform_0(%arg0: i32) -> (i32, i32) {
    %c0_i32 = arith.constant 0 : i32
    %c0_i32_0 = arith.constant 0 : i32
    return %arg0, %c0_i32 : i32, i32
  }
  func.func @transform_1(%arg0: i32) -> (i32, i32) {
    %c0_i32 = arith.constant 0 : i32
    %c0_i32_0 = arith.constant 0 : i32
    %c0_i32_1 = arith.constant 0 : i32
    return %c0_i32, %c0_i32_0 : i32, i32
  }
  func.func @transform_2(%arg0: i32) -> (i32, i32) {
    %c0_i32 = arith.constant 0 : i32
    %c0_i32_0 = arith.constant 0 : i32
    %c0_i32_1 = arith.constant 0 : i32
    return %c0_i32, %c0_i32_0 : i32, i32
  }
  func.func @transform_3(%arg0: i32) -> (i32, i32) {
    %c0_i32 = arith.constant 0 : i32
    %c0_i32_0 = arith.constant 0 : i32
    %c0_i32_1 = arith.constant 0 : i32
    return %c0_i32, %c0_i32_0 : i32, i32
  }
  func.func @transform_4(%arg0: i32) -> (i32, i32) {
    %c0_i32 = arith.constant 0 : i32
    %c0_i32_0 = arith.constant 0 : i32
    %c0_i32_1 = arith.constant 0 : i32
    return %c0_i32, %c0_i32_0 : i32, i32
  }
  func.func @transform_5(%arg0: i32) -> (i32, i32) {
    %c0_i32 = arith.constant 0 : i32
    %c0_i32_0 = arith.constant 0 : i32
    %c0_i32_1 = arith.constant 0 : i32
    return %c0_i32, %c0_i32_0 : i32, i32
  }
  func.func @transform_6(%arg0: i32) -> (i32, i32) {
    %c0_i32 = arith.constant 0 : i32
    %c0_i32_0 = arith.constant 0 : i32
    %c0_i32_1 = arith.constant 0 : i32
    return %c0_i32, %c0_i32_0 : i32, i32
  }
  func.func @transform_7(%arg0: i32) -> (i32, i32) {
    %c0_i32 = arith.constant 0 : i32
    %c0_i32_0 = arith.constant 0 : i32
    %c0_i32_1 = arith.constant 0 : i32
    return %c0_i32, %c0_i32_0 : i32, i32
  }
  func.func @transform_8(%arg0: i32) -> (i32, i32) {
    %c0_i32 = arith.constant 0 : i32
    %c0_i32_0 = arith.constant 0 : i32
    return %arg0, %c0_i32 : i32, i32
  }
}

</mosaic_0001>

<bundles_post_ra>
// kernel: tpu_custom_call.1
= control target key start
LH: loop header
LB: loop body
LE: loop exit
PB: predicated region body
PF: predicated region fallthrough
CT: control target
= control target key end

     0   :  { %13 = vsyncpa [#allocation3], 0  ;;  %s7295_s0 = inlined_call_operand.hbm [shape: f32[16,1024], index: 0, kind: input, shape index: {}]   ;;  %s7296_s1 = inlined_call_operand.hbm [shape: bf16[1024,640], index: 1, kind: input, shape index: {}]   ;;  %s7297_s2 = inlined_call_operand.hbm [shape: f32[1,640], index: 2, kind: input, shape index: {}]   ;;  %s7298_s3 = inlined_call_operand.vmem [shape: bf16[640,192], index: 3, kind: input, shape index: {}]   ;;  %s7299_s4 = inlined_call_operand.hbm [shape: f32[1,192], index: 4, kind: input, shape index: {}]   ;;  %s7300_s5 = inlined_call_operand.vmem [shape: f32[64,32], index: 5, kind: input, shape index: {}]   ;;  %s7301_s6 = inlined_call_operand.hbm [shape: f32[1,32], index: 6, kind: input, shape index: {}]   ;;  %s7302_s7 = inlined_call_operand.hbm [shape: f32[1,32], index: 7, kind: input, shape index: {}]   ;;  %s7303_s8 = inlined_call_operand.hbm [shape: f32[2,64], index: 8, kind: output, shape index: {}]  }
   0x1   :  { %14 = vsyncpa [#allocation6], 0 }
   0x2   :  { %15 = vsyncpa [#allocation9], 0 }
   0x3   :  { %16 = vsyncpa [#allocation12], 0 }
   0x4   :  { %17 = vsyncpa [#allocation4], 0  ;;  %s6640_s27 = smov [#allocation5]  }
   0x5   :  { %s35_s28 = sshll.u32 %s6640_s27, 4  ;;  %s36_s28 = int_to_ptr.vmem [resolvable:$true] %s35_s28 }
   0x6   :  { %s6498_s29 = scalar_lea.vmem %s36_s28, 40960  ;;  %p6503_p1 = scmp.lt.s32.totalorder %s36_s28, %s36_s28 }
   0x7   :  { %p6499_p0 = scmp.ne.s32.totalorder %s36_s28, %s6498_s29  ;;  %p6504_p2 = scmp.lt.s32.totalorder %s6498_s29, %s6498_s29 }
   0x9   :  { %p6505_p3 = por %p6504_p2, %p6503_p1 }
   0xb   :  { %p6506_p4 = pnand %p6505_p3, %p6499_p0 }
   0xd   :  { %6509 = shalt.err (!%p6506_p4)
}
   0xe   :  { %s6641_s30 = smov 320   ;;  %s6642_s9 = smov 20  }
   0xf   :  { %41 = dma.hbm_to_vmem [thread:$0]  %s7296_s1, 40960, %s36_s28, [#allocation6], %s6641_s30, %s6641_s30, %s6642_s9  }
  0x10   :  { %s6643_s12 = smov [#allocation8]   ;;  %s6644_s14 = smov [#allocation2]  }
  0x11   :  { %s60_s13 = sshll.u32 %s6643_s12, 4  ;;  %s23_s15 = sshll.u32 %s6644_s14, 4  ;;  %s61_s13 = int_to_ptr.vmem [resolvable:$true] %s60_s13  ;;  %s24_s15 = int_to_ptr.vmem [resolvable:$true] %s23_s15 }
  0x12   :  { %s6518_s16 = scalar_lea.vmem %s61_s13, 32  ;;  %p6523_p6 = scmp.lt.s32.totalorder %s61_s13, %s61_s13 }
  0x13   :  { %p6519_p5 = scmp.ne.s32.totalorder %s61_s13, %s6518_s16  ;;  %p6524_p7 = scmp.lt.s32.totalorder %s6518_s16, %s6518_s16 }
  0x15   :  { %p6525_p8 = por %p6524_p7, %p6523_p6 }
  0x17   :  { %p6526_p9 = pnand %p6525_p8, %p6519_p5 }
  0x19   :  { %6529 = shalt.err (!%p6526_p9)
}
  0x1a   :  { %63 = dma.hbm_to_vmem [thread:$0]  %s7299_s4, 32, %s61_s13, [#allocation9]  }
  0x1b   :  { %s6538_s19 = scalar_lea.vmem %s24_s15, 2048  ;;  %p6543_p11 = scmp.lt.s32.totalorder %s24_s15, %s24_s15 }
  0x1c   :  { %p6539_p10 = scmp.ne.s32.totalorder %s24_s15, %s6538_s19  ;;  %p6544_p12 = scmp.lt.s32.totalorder %s6538_s19, %s6538_s19 }
  0x1e   :  { %p6545_p13 = por %p6544_p12, %p6543_p11 }
  0x20   :  { %p6546_p0 = pnand %p6545_p13, %p6539_p10 }
  0x22   :  { %6549 = shalt.err (!%p6546_p0)
}
  0x23   :  { %s6645_s1 = smov 1024   ;;  %s6646_s20 = smov 64  }
  0x24   :  { %29 = dma.hbm_to_vmem [thread:$0]  %s7295_s0, 2048, %s24_s15, [#allocation3], %s6645_s1, %s6645_s1, %s6646_s20  }
  0x25   :  { %s6647_s23 = smov [#allocation7]   ;;  %s6648_s25 = smov [#allocation10]  }
  0x26   :  { %s48_s24 = sshll.u32 %s6647_s23, 4  ;;  %s72_s4 = sshll.u32 %s6648_s25, 4  ;;  %s49_s24 = int_to_ptr.vmem [resolvable:$true] %s48_s24  ;;  %s73_s4 = int_to_ptr.vmem [resolvable:$true] %s72_s4 }
  0x27   :  { %s6558_s26 = scalar_lea.vmem %s49_s24, 80  ;;  %s6562_s27 = scalar_lea.vmem %s49_s24, 96 }
  0x28   :  { %p6559_p1 = scmp.ne.s32.totalorder %s49_s24, %s6558_s26  ;;  %p6563_p2 = scmp.lt.s32.totalorder %s49_s24, %s49_s24 }
  0x29   :  { %p6564_p3 = scmp.lt.s32.totalorder %s6562_s27, %s6558_s26 }
  0x2b   :  { %p6565_p4 = por %p6564_p3, %p6563_p2 }
  0x2d   :  { %p6566_p5 = pnand %p6565_p4, %p6559_p1 }
  0x2f   :  { %6569 = shalt.err (!%p6566_p5)
}
  0x30   :  { %51 = dma.hbm_to_vmem [thread:$0]  %s7297_s2, 80, %s49_s24, [#allocation6]  }
  0x31   :  { %s6578_s30 = scalar_lea.vmem %s73_s4, 16  ;;  %s6582_s0 = scalar_lea.vmem %s73_s4, 32 }
  0x32   :  { %p6579_p6 = scmp.ne.s32.totalorder %s73_s4, %s6578_s30  ;;  %p6583_p7 = scmp.lt.s32.totalorder %s73_s4, %s73_s4 }
  0x33   :  { %p6584_p8 = scmp.lt.s32.totalorder %s6582_s0, %s6578_s30 }
  0x35   :  { %p6585_p9 = por %p6584_p8, %p6583_p7 }
  0x37   :  { %p6586_p10 = pnand %p6585_p9, %p6579_p6 }
  0x39   :  { %6589 = shalt.err (!%p6586_p10)
}
  0x3a   :  { %75 = dma.hbm_to_vmem [thread:$0]  %s7301_s6, 16, %s73_s4, [#allocation9]  }
  0x3b   :  { %s6649_s11 = smov [#allocation11]  }
  0x3c   :  { %s82_s12 = sshll.u32 %s6649_s11, 4  ;;  %s83_s12 = int_to_ptr.vmem [resolvable:$true] %s82_s12 }
  0x3d   :  { %s6598_s13 = scalar_lea.vmem %s83_s12, 16  ;;  %s6602_s14 = scalar_lea.vmem %s83_s12, 32 }
  0x3e   :  { %p6599_p11 = scmp.ne.s32.totalorder %s83_s12, %s6598_s13  ;;  %p6603_p12 = scmp.lt.s32.totalorder %s83_s12, %s83_s12 }
  0x3f   :  { %p6604_p13 = scmp.lt.s32.totalorder %s6602_s14, %s6598_s13 }
  0x41   :  { %p6605_p0 = por %p6604_p13, %p6603_p12 }
  0x43   :  { %p6606_p1 = pnand %p6605_p0, %p6599_p11 }
  0x45   :  { %6609 = shalt.err (!%p6606_p1)
}
  0x46   :  { %85 = dma.hbm_to_vmem [thread:$0]  %s7302_s7, 16, %s83_s12, [#allocation12]  }
  0x47   :  { %6630 = dma.done.wait [#allocation3], 2048  }
  0x48   :  { %6631 = vsyncadd [#allocation3], 4294965248 }
  0x49   :  { %6632 = dma.done.wait [#allocation6], 41040  }
  0x4a   :  { %6633 = vsyncadd [#allocation6], 4294926256 }
  0x4b   :  { %6634 = dma.done.wait [#allocation9], 48  }
  0x4c   :  { %6635 = vsyncadd [#allocation9], 4294967248 }
  0x4d   :  { %6636 = dma.done.wait [#allocation12], 16  }
  0x4e   :  { %6637 = vsyncadd [#allocation12], 4294967280  ;;  %v5878_v0 = vld [vmem:[#allocation5 + $0x11c] ss:$20 sps:$4 sm:$0xff]   ;;  %v5882_v2 = vld [vmem:[#allocation5 + $0x118] ss:$20 sps:$4 sm:$0xff]  }
  0x4f   :  { %v5880_v1 = vld [vmem:[#allocation5 + $0x39c] ss:$20 sps:$4 sm:$0xff]   ;;  %2204 = vmatprep.subr.bf16.mxu0 %v5878_v0  ;;  %v5883_v3 = vld [vmem:[#allocation5 + $0x398] ss:$20 sps:$4 sm:$0xff]   ;;  %v5884_v4 = vld [vmem:[#allocation5 + $0xf4] ss:$20 sps:$4 sm:$0xff]  }
  0x50   :  { %2247 = vmatprep.subr.bf16.mxu1 %v5880_v1  ;;  %2205 = vmatpush1.bf16.msra.mxu0 %v5882_v2  ;;  %v5886_v5 = vld [vmem:[#allocation5 + $0x374] ss:$20 sps:$4 sm:$0xff]   ;;  %v5888_v6 = vld [vmem:[#allocation5 + $0xf0] ss:$20 sps:$4 sm:$0xff]   ;;  %v5890_v8 = vld [vmem:[#allocation5 + $0xcc] ss:$20 sps:$4 sm:$0xff]  }
  0x51   :  { %2248 = vmatpush1.bf16.msra.mxu1 %v5883_v3  ;;  %2206 = vmatprep.subr.bf16.mxu0 %v5884_v4  ;;  %v5889_v7 = vld [vmem:[#allocation5 + $0x370] ss:$20 sps:$4 sm:$0xff]   ;;  %v5892_v9 = vld [vmem:[#allocation5 + $0x34c] ss:$20 sps:$4 sm:$0xff]   ;;  %v5894_v10 = vld [vmem:[#allocation5 + $0xc8] ss:$20 sps:$4 sm:$0xff]  }
  0x52   :  { %2249 = vmatprep.subr.bf16.mxu1 %v5886_v5  ;;  %v5895_v11 = vld [vmem:[#allocation5 + $0x348] ss:$20 sps:$4 sm:$0xff]   ;;  %v5896_v12 = vld [vmem:[#allocation5 + $0xa4] ss:$20 sps:$4 sm:$0xff]   ;;  %v5900_v14 = vld [vmem:[#allocation5 + $0xa0] ss:$20 sps:$4 sm:$0xff]  }
  0x53   :  { %v5898_v13 = vld [vmem:[#allocation5 + $0x324] ss:$20 sps:$4 sm:$0xff]   ;;  %v5901_v15 = vld [vmem:[#allocation5 + $0x320] ss:$20 sps:$4 sm:$0xff]   ;;  %v5902_v16 = vld [vmem:[#allocation5 + $0x7c] ss:$20 sps:$4 sm:$0xff]  }
  0x54   :  { %2207 = vmatpush1.bf16.msra.mxu0 %v5888_v6  ;;  %v5904_v17 = vld [vmem:[#allocation5 + $0x2fc] ss:$20 sps:$4 sm:$0xff]   ;;  %v5906_v18 = vld [vmem:[#allocation5 + $0x78] ss:$20 sps:$4 sm:$0xff]   ;;  %v5908_v20 = vld [vmem:[#allocation5 + $0x54] ss:$20 sps:$4 sm:$0xff]  }
  0x55   :  { %2250 = vmatpush1.bf16.msra.mxu1 %v5889_v7  ;;  %2208 = vmatprep.subr.bf16.mxu0 %v5890_v8  ;;  %v5907_v19 = vld [vmem:[#allocation5 + $0x2f8] ss:$20 sps:$4 sm:$0xff]   ;;  %v5910_v21 = vld [vmem:[#allocation5 + $0x2d4] ss:$20 sps:$4 sm:$0xff]   ;;  %v5912_v22 = vld [vmem:[#allocation5 + $0x50] ss:$20 sps:$4 sm:$0xff]  }
  0x56   :  { %2251 = vmatprep.subr.bf16.mxu1 %v5892_v9  ;;  %v5913_v23 = vld [vmem:[#allocation5 + $0x2d0] ss:$20 sps:$4 sm:$0xff]   ;;  %v5914_v24 = vld [vmem:[#allocation5 + $0x2c] ss:$20 sps:$4 sm:$0xff]   ;;  %v5918_v26 = vld [vmem:[#allocation5 + $0x28] ss:$20 sps:$4 sm:$0xff]  }
  0x57   :  { %v5916_v25 = vld [vmem:[#allocation5 + $0x2ac] ss:$20 sps:$4 sm:$0xff]   ;;  %v5919_v27 = vld [vmem:[#allocation5 + $0x2a8] ss:$20 sps:$4 sm:$0xff]   ;;  %v5920_v28 = vld [vmem:[#allocation5 + $0x4] ss:$20 sps:$4 sm:$0xff]  }
  0x58   :  { %2209 = vmatpush1.bf16.msra.mxu0 %v5894_v10  ;;  %v5922_v29 = vld [vmem:[#allocation5 + $0x284] ss:$20 sps:$4 sm:$0xff]   ;;  %v5924_v30 = vld [vmem:[#allocation5] ss:$20 sps:$4 sm:$0xff]   ;;  %v5926_v32 = vld [vmem:[#allocation5 + $0x25c] ss:$20 sps:$4 sm:$0xff]  }
  0x59   :  { %2252 = vmatpush1.bf16.msra.mxu1 %v5895_v11  ;;  %2210 = vmatprep.subr.bf16.mxu0 %v5896_v12  ;;  %v5925_v31 = vld [vmem:[#allocation5 + $0x280] ss:$20 sps:$4 sm:$0xff]   ;;  %v5928_v33 = vld [vmem:[#allocation5 + $0x4dc] ss:$20 sps:$4 sm:$0xff]   ;;  %v5930_v34 = vld [vmem:[#allocation5 + $0x258] ss:$20 sps:$4 sm:$0xff]  }
  0x5a   :  { %2253 = vmatprep.subr.bf16.mxu1 %v5898_v13  ;;  %v5931_v35 = vld [vmem:[#allocation5 + $0x4d8] ss:$20 sps:$4 sm:$0xff]   ;;  %v5932_v36 = vld [vmem:[#allocation5 + $0x234] ss:$20 sps:$4 sm:$0xff]   ;;  %v5936_v38 = vld [vmem:[#allocation5 + $0x230] ss:$20 sps:$4 sm:$0xff]  }
  0x5b   :  { %v5934_v37 = vld [vmem:[#allocation5 + $0x4b4] ss:$20 sps:$4 sm:$0xff]   ;;  %v5937_v39 = vld [vmem:[#allocation5 + $0x4b0] ss:$20 sps:$4 sm:$0xff]   ;;  %v5938_v40 = vld [vmem:[#allocation5 + $0x20c] ss:$20 sps:$4 sm:$0xff]  }
  0x5c   :  { %2211 = vmatpush1.bf16.msra.mxu0 %v5900_v14  ;;  %v5940_v41 = vld [vmem:[#allocation5 + $0x48c] ss:$20 sps:$4 sm:$0xff]   ;;  %v5942_v42 = vld [vmem:[#allocation5 + $0x208] ss:$20 sps:$4 sm:$0xff]   ;;  %v5944_v44 = vld [vmem:[#allocation5 + $0x1e4] ss:$20 sps:$4 sm:$0xff]  }
  0x5d   :  { %2254 = vmatpush1.bf16.msra.mxu1 %v5901_v15  ;;  %2212 = vmatprep.subr.bf16.mxu0 %v5902_v16  ;;  %v5943_v43 = vld [vmem:[#allocation5 + $0x488] ss:$20 sps:$4 sm:$0xff]   ;;  %v5946_v45 = vld [vmem:[#allocation5 + $0x464] ss:$20 sps:$4 sm:$0xff]   ;;  %v5948_v50 = vld [vmem:[#allocation5 + $0x1e0] ss:$20 sps:$4 sm:$0xff]  }
  0x5e   :  { %2255 = vmatprep.subr.bf16.mxu1 %v5904_v17  ;;  %v106_v46 = vld [vmem:[#allocation2 + $0x8] sm:$0xff]  ;;  %v108_v48 = vld [vmem:[#allocation2 + $0x18] sm:$0xff]  ;;  %v5949_v51 = vld [vmem:[#allocation5 + $0x460] ss:$20 sps:$4 sm:$0xff]   ;;  %vm6652_vm0 = vmmov 0   ;;  %vm3361_vm1 = vcmask 130048  }
  0x5f   :  { %v114_v47 = vld [vmem:[#allocation2 + $0x48] sm:$0xff]  ;;  %v116_v49 = vld [vmem:[#allocation2 + $0x58] sm:$0xff]  ;;  %v5960_v60 = vld [vmem:[#allocation5 + $0x190] ss:$20 sps:$4 sm:$0xff]   ;;  %vm3515_vm2 = vcmask 64512   ;;  %s6655_s2 = smov 32  }
  0x60   :  { %2213 = vmatpush1.bf16.msra.mxu0 %v5906_v18  ;;  %v5950_v52 = vld [vmem:[#allocation5 + $0x1bc] ss:$20 sps:$4 sm:$0xff]   ;;  %v6724_v53 = vpack.c.bf16 %v114_v47, %v106_v46  ;;  %v6726_v54 = vpack.c.bf16 %v116_v49, %v108_v48  ;;  %v5954_v56 = vld [vmem:[#allocation5 + $0x1b8] ss:$20 sps:$4 sm:$0xff]   ;;  %v5956_v58 = vld [vmem:[#allocation5 + $0x194] ss:$20 sps:$4 sm:$0xff]  }
  0x61   :  { %2256 = vmatpush1.bf16.msra.mxu1 %v5907_v19  ;;  %2214 = vmatprep.subr.bf16.mxu0 %v5908_v20  ;;  %v5952_v55 = vld [vmem:[#allocation5 + $0x43c] ss:$20 sps:$4 sm:$0xff]   ;;  %v5955_v57 = vld [vmem:[#allocation5 + $0x438] ss:$20 sps:$4 sm:$0xff]   ;;  %v5958_v59 = vld [vmem:[#allocation5 + $0x414] ss:$20 sps:$4 sm:$0xff]  }
  0x62   :  { %2257 = vmatprep.subr.bf16.mxu1 %v5910_v21  ;;  %2236 = vmatprep.mubr.bf16.mxu0 %v6724_v53  ;;  %v5961_v61 = vld [vmem:[#allocation5 + $0x410] ss:$20 sps:$4 sm:$0xff]   ;;  %v5962_v62 = vld [vmem:[#allocation5 + $0x16c] ss:$20 sps:$4 sm:$0xff]   ;;  %v5966_v0 = vld [vmem:[#allocation5 + $0x168] ss:$20 sps:$4 sm:$0xff]  }
  0x63   :  { %2279 = vmatprep.mubr.bf16.mxu1 %v6726_v54  ;;  %v5964_v63 = vld [vmem:[#allocation5 + $0x3ec] ss:$20 sps:$4 sm:$0xff]   ;;  %v5967_v1 = vld [vmem:[#allocation5 + $0x3e8] ss:$20 sps:$4 sm:$0xff]   ;;  %v5968_v2 = vld [vmem:[#allocation5 + $0x144] ss:$20 sps:$4 sm:$0xff]  }
  0x64   :  { %2215 = vmatpush1.bf16.msra.mxu0 %v5912_v22  ;;  %v5970_v3 = vld [vmem:[#allocation5 + $0x3c4] ss:$20 sps:$4 sm:$0xff]   ;;  %v5972_v4 = vld [vmem:[#allocation5 + $0x140] ss:$20 sps:$4 sm:$0xff]   ;;  %v5976_v10 = vld [vmem:[#allocation5 + $0x61c] ss:$20 sps:$4 sm:$0xff]  }
  0x65   :  { %2258 = vmatpush1.bf16.msra.mxu1 %v5913_v23  ;;  %2216 = vmatprep.subr.bf16.mxu0 %v5914_v24  ;;  %v5973_v5 = vld [vmem:[#allocation5 + $0x3c0] ss:$20 sps:$4 sm:$0xff]   ;;  %v5979_v11 = vld [vmem:[#allocation5 + $0x89c] ss:$20 sps:$4 sm:$0xff]   ;;  %v5974_v14 = vld [vmem:[#allocation5 + $0x618] ss:$20 sps:$4 sm:$0xff]  }
  0x66   :  { %2259 = vmatprep.subr.bf16.mxu1 %v5916_v25  ;;  %v105_v6 = vld [vmem:[#allocation2] sm:$0xff]  ;;  %v107_v8 = vld [vmem:[#allocation2 + $0x10] sm:$0xff]  ;;  %v5977_v15 = vld [vmem:[#allocation5 + $0x898] ss:$20 sps:$4 sm:$0xff]   ;;  %s6656_s15 = smov 96   ;;  %s6657_s22 = smov 16  }
  0x67   :  { %v113_v7 = vld [vmem:[#allocation2 + $0x40] sm:$0xff]  ;;  %v115_v9 = vld [vmem:[#allocation2 + $0x50] sm:$0xff]  ;;  %v5986_v22 = vld [vmem:[#allocation5 + $0x5c8] ss:$20 sps:$4 sm:$0xff]   ;;  %s6658_s23 = smov 80   ;;  %vm5028_vm3 = vcmask 261120  }
  0x68   :  { %2217 = vmatpush1.bf16.msra.mxu0 %v5918_v26  ;;  %v6730_v12 = vpack.c.bf16 %v113_v7, %v105_v6  ;;  %v6732_v13 = vpack.c.bf16 %v115_v9, %v107_v8  ;;  %v5982_v16 = vld [vmem:[#allocation5 + $0x5f4] ss:$20 sps:$4 sm:$0xff]   ;;  %v5980_v18 = vld [vmem:[#allocation5 + $0x5f0] ss:$20 sps:$4 sm:$0xff]   ;;  %v5988_v20 = vld [vmem:[#allocation5 + $0x5cc] ss:$20 sps:$4 sm:$0xff]  }
  0x69   :  { %2260 = vmatpush1.bf16.msra.mxu1 %v5919_v27  ;;  %2218 = vmatprep.subr.bf16.mxu0 %v5920_v28  ;;  %v5985_v17 = vld [vmem:[#allocation5 + $0x874] ss:$20 sps:$4 sm:$0xff]   ;;  %v5983_v19 = vld [vmem:[#allocation5 + $0x870] ss:$20 sps:$4 sm:$0xff]   ;;  %v5991_v21 = vld [vmem:[#allocation5 + $0x84c] ss:$20 sps:$4 sm:$0xff]  }
  0x6a   :  { %2261 = vmatprep.subr.bf16.mxu1 %v5922_v29  ;;  %v5989_v23 = vld [vmem:[#allocation5 + $0x848] ss:$20 sps:$4 sm:$0xff]   ;;  %v5994_v24 = vld [vmem:[#allocation5 + $0x5a4] ss:$20 sps:$4 sm:$0xff]   ;;  %v5992_v26 = vld [vmem:[#allocation5 + $0x5a0] ss:$20 sps:$4 sm:$0xff]  }
  0x6b   :  { %v5997_v25 = vld [vmem:[#allocation5 + $0x824] ss:$20 sps:$4 sm:$0xff]   ;;  %v5995_v27 = vld [vmem:[#allocation5 + $0x820] ss:$20 sps:$4 sm:$0xff]   ;;  %v6000_v28 = vld [vmem:[#allocation5 + $0x57c] ss:$20 sps:$4 sm:$0xff]  }
  0x6c   :  { %2219 = vmatpush1.bf16.msra.mxu0 %v5924_v30  ;;  %v6003_v29 = vld [vmem:[#allocation5 + $0x7fc] ss:$20 sps:$4 sm:$0xff]   ;;  %v5998_v30 = vld [vmem:[#allocation5 + $0x578] ss:$20 sps:$4 sm:$0xff]   ;;  %v6016_v48 = vld [vmem:[#allocation5 + $0x500] ss:$20 sps:$4 sm:$0xff]  }
  0x6d   :  { %2262 = vmatpush1.bf16.msra.mxu1 %v5925_v31  ;;  %2220 = vmatprep.subr.bf16.mxu0 %v5926_v32  ;;  %v6001_v31 = vld [vmem:[#allocation5 + $0x7f8] ss:$20 sps:$4 sm:$0xff]   ;;  %v6006_v32 = vld [vmem:[#allocation5 + $0x554] ss:$20 sps:$4 sm:$0xff]   ;;  %vm5135_vm4 = vcmask 1041409   ;;  %vm5158_vm5 = vcmask 392192  }
  0x6e   :  { %2263 = vmatprep.subr.bf16.mxu1 %v5928_v33  ;;  %v6009_v33 = vld [vmem:[#allocation5 + $0x7d4] ss:$20 sps:$4 sm:$0xff]   ;;  %v120_v46 = vld [vmem:[#allocation2 + $0x78] sm:$0xff]  ;;  %vm5160_vm6 = vcmask 517120  }
  0x6f   :  { %v6019_v49 = vld [vmem:[#allocation5 + $0x780] ss:$20 sps:$4 sm:$0xff]   ;;  %v6046_v6 = vld [vmem:[#allocation5 + $0x6b8] ss:$20 sps:$4 sm:$0xff]  }
  0x70   :  { %2221 = vmatpush2.bf16.msra.mxu0 %v5930_v34  ;;  %v6004_v34 = vld [vmem:[#allocation5 + $0x550] ss:$20 sps:$4 sm:$0xff]   ;;  %v6049_v7 = vld [vmem:[#allocation5 + $0x938] ss:$20 sps:$4 sm:$0xff]   ;;  %v6054_v8 = vld [vmem:[#allocation5 + $0x694] ss:$20 sps:$4 sm:$0xff]  }
  0x71   :  { %2264 = vmatpush2.bf16.msra.mxu1 %v5931_v35  ;;  %2222 = vmatprep.subr.bf16.mxu0 %v5932_v36  ;;  %v6007_v35 = vld [vmem:[#allocation5 + $0x7d0] ss:$20 sps:$4 sm:$0xff]   ;;  %v6012_v36 = vld [vmem:[#allocation5 + $0x52c] ss:$20 sps:$4 sm:$0xff]   ;;  %v6057_v9 = vld [vmem:[#allocation5 + $0x914] ss:$20 sps:$4 sm:$0xff]  }
  0x72   :  { %2265 = vmatprep.subr.bf16.mxu1 %v5934_v37  ;;  %v6015_v37 = vld [vmem:[#allocation5 + $0x7ac] ss:$20 sps:$4 sm:$0xff]  }
  0x74   :  { %2223 = vmatpush2.bf16.msra.mxu0 %v5936_v38  ;;  %v6010_v38 = vld [vmem:[#allocation5 + $0x528] ss:$20 sps:$4 sm:$0xff]  }
  0x75   :  { %2266 = vmatpush2.bf16.msra.mxu1 %v5937_v39  ;;  %2224 = vmatprep.subr.bf16.mxu0 %v5938_v40  ;;  %v6013_v39 = vld [vmem:[#allocation5 + $0x7a8] ss:$20 sps:$4 sm:$0xff]  }
  0x76   :  { %2267 = vmatprep.subr.bf16.mxu1 %v5940_v41  ;;  %v110_v40 = vld [vmem:[#allocation2 + $0x28] sm:$0xff] }
  0x77   :  { %v118_v41 = vld [vmem:[#allocation2 + $0x68] sm:$0xff] }
  0x78   :  { %2225 = vmatpush2.bf16.msra.mxu0 %v5942_v42  ;;  %v112_v42 = vld [vmem:[#allocation2 + $0x38] sm:$0xff] }
  0x79   :  { %2268 = vmatpush2.bf16.msra.mxu1 %v5943_v43  ;;  %2226 = vmatprep.subr.bf16.mxu0 %v5944_v44  ;;  %v6018_v43 = vld [vmem:[#allocation5 + $0x504] ss:$20 sps:$4 sm:$0xff]   ;;  %v6738_v47 = vpack.c.bf16 %v120_v46, %v112_v42  ;;  %v6088_v42 = vld [vmem:[#allocation5 + $0xa8] ss:$20 sps:$4 sm:$0xff]  }
  0x7a   :  { %2269 = vmatprep.subr.bf16.mxu1 %v5946_v45  ;;  %v6021_v44 = vld [vmem:[#allocation5 + $0x784] ss:$20 sps:$4 sm:$0xff]   ;;  %v6736_v45 = vpack.c.bf16 %v118_v41, %v110_v40  ;;  %v6090_v40 = vld [vmem:[#allocation5 + $0xac] ss:$20 sps:$4 sm:$0xff]  }
  0x7b   :  { %v6093_v41 = vld [vmem:[#allocation5 + $0x32c] ss:$20 sps:$4 sm:$0xff]   ;;  %v6099_v46 = vld [vmem:[#allocation5 + $0x304] ss:$20 sps:$4 sm:$0xff]  }
  0x7c   :  { %2227 = vmatpush2.bf16.msra.mxu0 %v5948_v50  ;;  %v6024_v50 = vld [vmem:[#allocation5 + $0x75c] ss:$20 sps:$4 sm:$0xff]  }
  0x7d   :  { %2270 = vmatpush2.bf16.msra.mxu1 %v5949_v51  ;;  %2228 = vmatprep.subr.bf16.mxu0 %v5950_v52  ;;  %v6027_v51 = vld [vmem:[#allocation5 + $0x9dc] ss:$20 sps:$4 sm:$0xff]   ;;  %v6022_v52 = vld [vmem:[#allocation5 + $0x758] ss:$20 sps:$4 sm:$0xff]  }
  0x7e   :  { %2271 = vmatprep.subr.bf16.mxu1 %v5952_v55  ;;  %v6025_v55 = vld [vmem:[#allocation5 + $0x9d8] ss:$20 sps:$4 sm:$0xff]  }
  0x80   :  { %2229 = vmatpush2.bf16.msra.mxu0 %v5954_v56  ;;  %v6030_v56 = vld [vmem:[#allocation5 + $0x734] ss:$20 sps:$4 sm:$0xff]  }
  0x81   :  { %2272 = vmatpush2.bf16.msra.mxu1 %v5955_v57  ;;  %2230 = vmatprep.subr.bf16.mxu0 %v5956_v58  ;;  %v6033_v57 = vld [vmem:[#allocation5 + $0x9b4] ss:$20 sps:$4 sm:$0xff]   ;;  %v6028_v58 = vld [vmem:[#allocation5 + $0x730] ss:$20 sps:$4 sm:$0xff]  }
  0x82   :  { %2273 = vmatprep.subr.bf16.mxu1 %v5958_v59  ;;  %v6031_v59 = vld [vmem:[#allocation5 + $0x9b0] ss:$20 sps:$4 sm:$0xff]  }
  0x84   :  { %2231 = vmatpush2.bf16.msra.mxu0 %v5960_v60  ;;  %v6036_v60 = vld [vmem:[#allocation5 + $0x70c] ss:$20 sps:$4 sm:$0xff]  }
  0x85   :  { %2274 = vmatpush2.bf16.msra.mxu1 %v5961_v61  ;;  %2232 = vmatprep.subr.bf16.mxu0 %v5962_v62  ;;  %v6039_v61 = vld [vmem:[#allocation5 + $0x98c] ss:$20 sps:$4 sm:$0xff]   ;;  %v6034_v62 = vld [vmem:[#allocation5 + $0x708] ss:$20 sps:$4 sm:$0xff]  }
  0x86   :  { %2275 = vmatprep.subr.bf16.mxu1 %v5964_v63  ;;  %v6037_v63 = vld [vmem:[#allocation5 + $0x988] ss:$20 sps:$4 sm:$0xff]  }
  0x88   :  { %2233 = vmatpush2.bf16.msra.mxu0 %v5966_v0  ;;  %v6042_v0 = vld [vmem:[#allocation5 + $0x6e4] ss:$20 sps:$4 sm:$0xff]  }
  0x89   :  { %2276 = vmatpush2.bf16.msra.mxu1 %v5967_v1  ;;  %2234 = vmatprep.subr.bf16.mxu0 %v5968_v2  ;;  %v6045_v1 = vld [vmem:[#allocation5 + $0x964] ss:$20 sps:$4 sm:$0xff]   ;;  %v6040_v2 = vld [vmem:[#allocation5 + $0x6e0] ss:$20 sps:$4 sm:$0xff]  }
  0x8a   :  { %2277 = vmatprep.subr.bf16.mxu1 %v5970_v3  ;;  %v6043_v3 = vld [vmem:[#allocation5 + $0x960] ss:$20 sps:$4 sm:$0xff]  }
  0x8c   :  { %2235 = vmatpush2.bf16.msra.mxu0 %v5972_v4  ;;  %v6048_v4 = vld [vmem:[#allocation5 + $0x6bc] ss:$20 sps:$4 sm:$0xff]  }
  0x8d   :  { %2278 = vmatpush2.bf16.msra.mxu1 %v5973_v5  ;;  %2290 = vmatprep.subr.bf16.mxu0 %v5976_v10  ;;  %v6051_v5 = vld [vmem:[#allocation5 + $0x93c] ss:$20 sps:$4 sm:$0xff]  }
  0x8e   :  { %2333 = vmatprep.subr.bf16.mxu1 %v5979_v11  ;;  %v6052_v10 = vld [vmem:[#allocation5 + $0x690] ss:$20 sps:$4 sm:$0xff]  }
  0x8f   :  { %2237 = vmatmul.mubr.bf16.vlgmr.msra.gmra.mxu0 %v6730_v12  ;;  %v6055_v11 = vld [vmem:[#allocation5 + $0x910] ss:$20 sps:$4 sm:$0xff]  }
  0x90   :  { %2280 = vmatmul.mubr.bf16.vlgmr.msra.gmra.mxu1 %v6732_v13  ;;  %2291 = vmatpush1.bf16.msra.mxu0 %v5974_v14  ;;  %v6060_v14 = vld [vmem:[#allocation5 + $0x66c] ss:$20 sps:$4 sm:$0xff]  }
  0x91   :  { %2334 = vmatpush1.bf16.msra.mxu1 %v5977_v15  ;;  %2292 = vmatprep.subr.bf16.mxu0 %v5982_v16  ;;  %v6063_v15 = vld [vmem:[#allocation5 + $0x8ec] ss:$20 sps:$4 sm:$0xff]   ;;  %v6058_v16 = vld [vmem:[#allocation5 + $0x668] ss:$20 sps:$4 sm:$0xff]  }
  0x92   :  { %2335 = vmatprep.subr.bf16.mxu1 %v5985_v17  ;;  %2322 = vmatprep.mubr.bf16.mxu0 %v6736_v45  ;;  %v6061_v17 = vld [vmem:[#allocation5 + $0x8e8] ss:$20 sps:$4 sm:$0xff]  }
  0x93   :  { %2365 = vmatprep.mubr.bf16.mxu1 %v6738_v47 }
  0x94   :  { %2293 = vmatpush1.bf16.msra.mxu0 %v5980_v18  ;;  %v6066_v18 = vld [vmem:[#allocation5 + $0x644] ss:$20 sps:$4 sm:$0xff]  }
  0x95   :  { %2336 = vmatpush1.bf16.msra.mxu1 %v5983_v19  ;;  %2294 = vmatprep.subr.bf16.mxu0 %v5988_v20  ;;  %v6069_v19 = vld [vmem:[#allocation5 + $0x8c4] ss:$20 sps:$4 sm:$0xff]   ;;  %v6064_v20 = vld [vmem:[#allocation5 + $0x640] ss:$20 sps:$4 sm:$0xff]  }
  0x96   :  { %2337 = vmatprep.subr.bf16.mxu1 %v5991_v21  ;;  %v6067_v21 = vld [vmem:[#allocation5 + $0x8c0] ss:$20 sps:$4 sm:$0xff]  }
  0x98   :  { %2295 = vmatpush1.bf16.msra.mxu0 %v5986_v22  ;;  %v109_v22 = vld [vmem:[#allocation2 + $0x20] sm:$0xff] }
  0x99   :  { %2338 = vmatpush1.bf16.msra.mxu1 %v5989_v23  ;;  %2296 = vmatprep.subr.bf16.mxu0 %v5994_v24  ;;  %v117_v23 = vld [vmem:[#allocation2 + $0x60] sm:$0xff]  ;;  %v111_v24 = vld [vmem:[#allocation2 + $0x30] sm:$0xff] }
  0x9a   :  { %2339 = vmatprep.subr.bf16.mxu1 %v5997_v25  ;;  %v119_v25 = vld [vmem:[#allocation2 + $0x70] sm:$0xff] }
  0x9c   :  { %2297 = vmatpush1.bf16.msra.mxu0 %v5992_v26  ;;  %v6072_v26 = vld [vmem:[#allocation5 + $0x124] ss:$20 sps:$4 sm:$0xff]  }
  0x9d   :  { %2340 = vmatpush1.bf16.msra.mxu1 %v5995_v27  ;;  %2298 = vmatprep.subr.bf16.mxu0 %v6000_v28  ;;  %v6075_v27 = vld [vmem:[#allocation5 + $0x3a4] ss:$20 sps:$4 sm:$0xff]   ;;  %v6742_v28 = vpack.c.bf16 %v117_v23, %v109_v22  ;;  %v6150_v22 = vld [vmem:[#allocation5 + $0x19c] ss:$20 sps:$4 sm:$0xff]  }
  0x9e   :  { %2341 = vmatprep.subr.bf16.mxu1 %v6003_v29  ;;  %v6744_v29 = vpack.c.bf16 %v119_v25, %v111_v24  ;;  %v6153_v23 = vld [vmem:[#allocation5 + $0x41c] ss:$20 sps:$4 sm:$0xff]   ;;  %v6148_v24 = vld [vmem:[#allocation5 + $0x198] ss:$20 sps:$4 sm:$0xff]  }
  0x9f   :  { %v6151_v25 = vld [vmem:[#allocation5 + $0x418] ss:$20 sps:$4 sm:$0xff]  }
  0xa0   :  { %2299 = vmatpush1.bf16.msra.mxu0 %v5998_v30  ;;  %v6070_v30 = vld [vmem:[#allocation5 + $0x120] ss:$20 sps:$4 sm:$0xff]  }
  0xa1   :  { %2342 = vmatpush1.bf16.msra.mxu1 %v6001_v31  ;;  %2300 = vmatprep.subr.bf16.mxu0 %v6006_v32  ;;  %v6073_v31 = vld [vmem:[#allocation5 + $0x3a0] ss:$20 sps:$4 sm:$0xff]   ;;  %v6078_v32 = vld [vmem:[#allocation5 + $0xfc] ss:$20 sps:$4 sm:$0xff]  }
  0xa2   :  { %2343 = vmatprep.subr.bf16.mxu1 %v6009_v33  ;;  %v6081_v33 = vld [vmem:[#allocation5 + $0x37c] ss:$20 sps:$4 sm:$0xff]  }
  0xa4   :  { %2301 = vmatpush1.bf16.msra.mxu0 %v6004_v34  ;;  %v6076_v34 = vld [vmem:[#allocation5 + $0xf8] ss:$20 sps:$4 sm:$0xff]  }
  0xa5   :  { %2344 = vmatpush1.bf16.msra.mxu1 %v6007_v35  ;;  %2302 = vmatprep.subr.bf16.mxu0 %v6012_v36  ;;  %v6079_v35 = vld [vmem:[#allocation5 + $0x378] ss:$20 sps:$4 sm:$0xff]   ;;  %v6084_v36 = vld [vmem:[#allocation5 + $0xd4] ss:$20 sps:$4 sm:$0xff]  }
  0xa6   :  { %2345 = vmatprep.subr.bf16.mxu1 %v6015_v37  ;;  %v6087_v37 = vld [vmem:[#allocation5 + $0x354] ss:$20 sps:$4 sm:$0xff]  }
  0xa8   :  { %2303 = vmatpush1.bf16.msra.mxu0 %v6010_v38  ;;  %v6082_v38 = vld [vmem:[#allocation5 + $0xd0] ss:$20 sps:$4 sm:$0xff]  }
  0xa9   :  { %2346 = vmatpush1.bf16.msra.mxu1 %v6013_v39  ;;  %2304 = vmatprep.subr.bf16.mxu0 %v6018_v43  ;;  %v6085_v39 = vld [vmem:[#allocation5 + $0x350] ss:$20 sps:$4 sm:$0xff]   ;;  %v6091_v43 = vld [vmem:[#allocation5 + $0x328] ss:$20 sps:$4 sm:$0xff]  }
  0xaa   :  { %2347 = vmatprep.subr.bf16.mxu1 %v6021_v44  ;;  %v6096_v44 = vld [vmem:[#allocation5 + $0x84] ss:$20 sps:$4 sm:$0xff]  }
  0xac   :  { %2305 = vmatpush1.bf16.msra.mxu0 %v6016_v48  ;;  %v6094_v48 = vld [vmem:[#allocation5 + $0x80] ss:$20 sps:$4 sm:$0xff]  }
  0xad   :  { %2348 = vmatpush1.bf16.msra.mxu1 %v6019_v49  ;;  %2306 = vmatprep.subr.bf16.mxu0 %v6024_v50  ;;  %v6097_v49 = vld [vmem:[#allocation5 + $0x300] ss:$20 sps:$4 sm:$0xff]   ;;  %v6102_v50 = vld [vmem:[#allocation5 + $0x5c] ss:$20 sps:$4 sm:$0xff]  }
  0xae   :  { %2349 = vmatprep.subr.bf16.mxu1 %v6027_v51  ;;  %v6105_v51 = vld [vmem:[#allocation5 + $0x2dc] ss:$20 sps:$4 sm:$0xff]  }
  0xb0   :  { %2307 = vmatpush2.bf16.msra.mxu0 %v6022_v52  ;;  %v6100_v52 = vld [vmem:[#allocation5 + $0x58] ss:$20 sps:$4 sm:$0xff]  }
  0xb1   :  { %2350 = vmatpush2.bf16.msra.mxu1 %v6025_v55  ;;  %2308 = vmatprep.subr.bf16.mxu0 %v6030_v56  ;;  %v6103_v55 = vld [vmem:[#allocation5 + $0x2d8] ss:$20 sps:$4 sm:$0xff]   ;;  %v6108_v56 = vld [vmem:[#allocation5 + $0x34] ss:$20 sps:$4 sm:$0xff]  }
  0xb2   :  { %2351 = vmatprep.subr.bf16.mxu1 %v6033_v57  ;;  %v6111_v57 = vld [vmem:[#allocation5 + $0x2b4] ss:$20 sps:$4 sm:$0xff]  }
  0xb4   :  { %2309 = vmatpush2.bf16.msra.mxu0 %v6028_v58  ;;  %v6106_v58 = vld [vmem:[#allocation5 + $0x30] ss:$20 sps:$4 sm:$0xff]  }
  0xb5   :  { %2352 = vmatpush2.bf16.msra.mxu1 %v6031_v59  ;;  %2310 = vmatprep.subr.bf16.mxu0 %v6036_v60  ;;  %v6109_v59 = vld [vmem:[#allocation5 + $0x2b0] ss:$20 sps:$4 sm:$0xff]   ;;  %v6114_v60 = vld [vmem:[#allocation5 + $0xc] ss:$20 sps:$4 sm:$0xff]  }
  0xb6   :  { %2353 = vmatprep.subr.bf16.mxu1 %v6039_v61  ;;  %v6117_v61 = vld [vmem:[#allocation5 + $0x28c] ss:$20 sps:$4 sm:$0xff]  }
  0xb8   :  { %2311 = vmatpush2.bf16.msra.mxu0 %v6034_v62  ;;  %v6112_v62 = vld [vmem:[#allocation5 + $0x8] ss:$20 sps:$4 sm:$0xff]  }
  0xb9   :  { %2354 = vmatpush2.bf16.msra.mxu1 %v6037_v63  ;;  %2312 = vmatprep.subr.bf16.mxu0 %v6042_v0  ;;  %v6115_v63 = vld [vmem:[#allocation5 + $0x288] ss:$20 sps:$4 sm:$0xff]   ;;  %v6120_v0 = vld [vmem:[#allocation5 + $0x264] ss:$20 sps:$4 sm:$0xff]  }
  0xba   :  { %2355 = vmatprep.subr.bf16.mxu1 %v6045_v1  ;;  %v6123_v1 = vld [vmem:[#allocation5 + $0x4e4] ss:$20 sps:$4 sm:$0xff]  }
  0xbc   :  { %2313 = vmatpush2.bf16.msra.mxu0 %v6040_v2  ;;  %v6118_v2 = vld [vmem:[#allocation5 + $0x260] ss:$20 sps:$4 sm:$0xff]  }
  0xbd   :  { %2356 = vmatpush2.bf16.msra.mxu1 %v6043_v3  ;;  %2314 = vmatprep.subr.bf16.mxu0 %v6048_v4  ;;  %v6121_v3 = vld [vmem:[#allocation5 + $0x4e0] ss:$20 sps:$4 sm:$0xff]   ;;  %v6126_v4 = vld [vmem:[#allocation5 + $0x23c] ss:$20 sps:$4 sm:$0xff]  }
  0xbe   :  { %2357 = vmatprep.subr.bf16.mxu1 %v6051_v5  ;;  %v6129_v5 = vld [vmem:[#allocation5 + $0x4bc] ss:$20 sps:$4 sm:$0xff]  }
  0xc0   :  { %2315 = vmatpush2.bf16.msra.mxu0 %v6046_v6  ;;  %v6124_v6 = vld [vmem:[#allocation5 + $0x238] ss:$20 sps:$4 sm:$0xff]  }
  0xc1   :  { %2358 = vmatpush2.bf16.msra.mxu1 %v6049_v7  ;;  %2316 = vmatprep.subr.bf16.mxu0 %v6054_v8  ;;  %v6127_v7 = vld [vmem:[#allocation5 + $0x4b8] ss:$20 sps:$4 sm:$0xff]   ;;  %v6132_v8 = vld [vmem:[#allocation5 + $0x214] ss:$20 sps:$4 sm:$0xff]  }
  0xc2   :  { %2359 = vmatprep.subr.bf16.mxu1 %v6057_v9  ;;  %v6135_v9 = vld [vmem:[#allocation5 + $0x494] ss:$20 sps:$4 sm:$0xff]  }
  0xc4   :  { %2317 = vmatpush2.bf16.msra.mxu0 %v6052_v10  ;;  %v6130_v10 = vld [vmem:[#allocation5 + $0x210] ss:$20 sps:$4 sm:$0xff]  }
  0xc5   :  { %2360 = vmatpush2.bf16.msra.mxu1 %v6055_v11  ;;  %2318 = vmatprep.subr.bf16.mxu0 %v6060_v14  ;;  %v6133_v11 = vld [vmem:[#allocation5 + $0x490] ss:$20 sps:$4 sm:$0xff]   ;;  %v6138_v14 = vld [vmem:[#allocation5 + $0x1ec] ss:$20 sps:$4 sm:$0xff]  }
  0xc6   :  { %2361 = vmatprep.subr.bf16.mxu1 %v6063_v15  ;;  %v6141_v15 = vld [vmem:[#allocation5 + $0x46c] ss:$20 sps:$4 sm:$0xff]  }
  0xc8   :  { %2319 = vmatpush2.bf16.msra.mxu0 %v6058_v16  ;;  %v6136_v16 = vld [vmem:[#allocation5 + $0x1e8] ss:$20 sps:$4 sm:$0xff]  }
  0xc9   :  { %2362 = vmatpush2.bf16.msra.mxu1 %v6061_v17  ;;  %2320 = vmatprep.subr.bf16.mxu0 %v6066_v18  ;;  %v6139_v17 = vld [vmem:[#allocation5 + $0x468] ss:$20 sps:$4 sm:$0xff]   ;;  %v6144_v18 = vld [vmem:[#allocation5 + $0x1c4] ss:$20 sps:$4 sm:$0xff]  }
  0xca   :  { %2363 = vmatprep.subr.bf16.mxu1 %v6069_v19  ;;  %v6147_v19 = vld [vmem:[#allocation5 + $0x444] ss:$20 sps:$4 sm:$0xff]  }
  0xcc   :  { %2321 = vmatpush2.bf16.msra.mxu0 %v6064_v20  ;;  %v6142_v20 = vld [vmem:[#allocation5 + $0x1c0] ss:$20 sps:$4 sm:$0xff]  }
  0xcd   :  { %2364 = vmatpush2.bf16.msra.mxu1 %v6067_v21  ;;  %2376 = vmatprep.subr.bf16.mxu0 %v6072_v26  ;;  %v6145_v21 = vld [vmem:[#allocation5 + $0x440] ss:$20 sps:$4 sm:$0xff]  }
  0xce   :  { %2419 = vmatprep.subr.bf16.mxu1 %v6075_v27  ;;  %v6156_v26 = vld [vmem:[#allocation5 + $0x174] ss:$20 sps:$4 sm:$0xff]  }
  0xcf   :  { %2323 = vmatmul.mubr.bf16.vlgmr.msra.gmra.mxu0 %v6742_v28  ;;  %v6159_v27 = vld [vmem:[#allocation5 + $0x3f4] ss:$20 sps:$4 sm:$0xff]  }
  0xd0   :  { %2366 = vmatmul.mubr.bf16.vlgmr.msra.gmra.mxu1 %v6744_v29  ;;  %2377 = vmatpush1.bf16.msra.mxu0 %v6070_v30  ;;  %v6154_v30 = vld [vmem:[#allocation5 + $0x170] ss:$20 sps:$4 sm:$0xff]  }
  0xd1   :  { %2420 = vmatpush1.bf16.msra.mxu1 %v6073_v31  ;;  %2378 = vmatprep.subr.bf16.mxu0 %v6078_v32  ;;  %v6157_v31 = vld [vmem:[#allocation5 + $0x3f0] ss:$20 sps:$4 sm:$0xff]   ;;  %v6162_v32 = vld [vmem:[#allocation5 + $0x14c] ss:$20 sps:$4 sm:$0xff]  }
  0xd2   :  { %2421 = vmatprep.subr.bf16.mxu1 %v6081_v33  ;;  %2408 = vmatprep.mubr.bf16.mxu0 %v6724_v53  ;;  %v6165_v33 = vld [vmem:[#allocation5 + $0x3cc] ss:$20 sps:$4 sm:$0xff]  }
  0xd3   :  { %2451 = vmatprep.mubr.bf16.mxu1 %v6726_v54 }
  0xd4   :  { %2379 = vmatpush1.bf16.msra.mxu0 %v6076_v34  ;;  %v6160_v34 = vld [vmem:[#allocation5 + $0x148] ss:$20 sps:$4 sm:$0xff]  }
  0xd5   :  { %2422 = vmatpush1.bf16.msra.mxu1 %v6079_v35  ;;  %2380 = vmatprep.subr.bf16.mxu0 %v6084_v36  ;;  %v6163_v35 = vld [vmem:[#allocation5 + $0x3c8] ss:$20 sps:$4 sm:$0xff]   ;;  %v6168_v36 = vld [vmem:[#allocation5 + $0x624] ss:$20 sps:$4 sm:$0xff]  }
  0xd6   :  { %2423 = vmatprep.subr.bf16.mxu1 %v6087_v37  ;;  %v6171_v37 = vld [vmem:[#allocation5 + $0x8a4] ss:$20 sps:$4 sm:$0xff]  }
  0xd8   :  { %2381 = vmatpush1.bf16.msra.mxu0 %v6082_v38  ;;  %v6166_v38 = vld [vmem:[#allocation5 + $0x620] ss:$20 sps:$4 sm:$0xff]  }
  0xd9   :  { %2424 = vmatpush1.bf16.msra.mxu1 %v6085_v39  ;;  %2382 = vmatprep.subr.bf16.mxu0 %v6090_v40  ;;  %v6169_v39 = vld [vmem:[#allocation5 + $0x8a0] ss:$20 sps:$4 sm:$0xff]   ;;  %v6174_v40 = vld [vmem:[#allocation5 + $0x5fc] ss:$20 sps:$4 sm:$0xff]  }
  0xda   :  { %2425 = vmatprep.subr.bf16.mxu1 %v6093_v41  ;;  %v6177_v41 = vld [vmem:[#allocation5 + $0x87c] ss:$20 sps:$4 sm:$0xff]  }
  0xdc   :  { %2383 = vmatpush1.bf16.msra.mxu0 %v6088_v42  ;;  %v6172_v42 = vld [vmem:[#allocation5 + $0x5f8] ss:$20 sps:$4 sm:$0xff]  }
  0xdd   :  { %2426 = vmatpush1.bf16.msra.mxu1 %v6091_v43  ;;  %2384 = vmatprep.subr.bf16.mxu0 %v6096_v44  ;;  %v6175_v43 = vld [vmem:[#allocation5 + $0x878] ss:$20 sps:$4 sm:$0xff]   ;;  %v6180_v44 = vld [vmem:[#allocation5 + $0x5d4] ss:$20 sps:$4 sm:$0xff]  }
  0xde   :  { %2427 = vmatprep.subr.bf16.mxu1 %v6099_v46  ;;  %v6183_v46 = vld [vmem:[#allocation5 + $0x854] ss:$20 sps:$4 sm:$0xff]  }
  0xe0   :  { %2385 = vmatpush1.bf16.msra.mxu0 %v6094_v48  ;;  %v6178_v48 = vld [vmem:[#allocation5 + $0x5d0] ss:$20 sps:$4 sm:$0xff]  }
  0xe1   :  { %2428 = vmatpush1.bf16.msra.mxu1 %v6097_v49  ;;  %2386 = vmatprep.subr.bf16.mxu0 %v6102_v50  ;;  %v6181_v49 = vld [vmem:[#allocation5 + $0x850] ss:$20 sps:$4 sm:$0xff]   ;;  %v6186_v50 = vld [vmem:[#allocation5 + $0x5ac] ss:$20 sps:$4 sm:$0xff]  }
  0xe2   :  { %2429 = vmatprep.subr.bf16.mxu1 %v6105_v51  ;;  %v6189_v51 = vld [vmem:[#allocation5 + $0x82c] ss:$20 sps:$4 sm:$0xff]  }
  0xe4   :  { %2387 = vmatpush1.bf16.msra.mxu0 %v6100_v52  ;;  %v6184_v52 = vld [vmem:[#allocation5 + $0x5a8] ss:$20 sps:$4 sm:$0xff]  }
  0xe5   :  { %2430 = vmatpush1.bf16.msra.mxu1 %v6103_v55  ;;  %2388 = vmatprep.subr.bf16.mxu0 %v6108_v56  ;;  %v6187_v55 = vld [vmem:[#allocation5 + $0x828] ss:$20 sps:$4 sm:$0xff]   ;;  %v6192_v56 = vld [vmem:[#allocation5 + $0x584] ss:$20 sps:$4 sm:$0xff]  }
  0xe6   :  { %2431 = vmatprep.subr.bf16.mxu1 %v6111_v57  ;;  %v6195_v57 = vld [vmem:[#allocation5 + $0x804] ss:$20 sps:$4 sm:$0xff]  }
  0xe8   :  { %2389 = vmatpush1.bf16.msra.mxu0 %v6106_v58  ;;  %v6190_v58 = vld [vmem:[#allocation5 + $0x580] ss:$20 sps:$4 sm:$0xff]  }
  0xe9   :  { %2432 = vmatpush1.bf16.msra.mxu1 %v6109_v59  ;;  %2390 = vmatprep.subr.bf16.mxu0 %v6114_v60  ;;  %v6193_v59 = vld [vmem:[#allocation5 + $0x800] ss:$20 sps:$4 sm:$0xff]   ;;  %v6198_v60 = vld [vmem:[#allocation5 + $0x55c] ss:$20 sps:$4 sm:$0xff]  }
  0xea   :  { %2433 = vmatprep.subr.bf16.mxu1 %v6117_v61  ;;  %v6201_v61 = vld [vmem:[#allocation5 + $0x7dc] ss:$20 sps:$4 sm:$0xff]  }
  0xec   :  { %2391 = vmatpush1.bf16.msra.mxu0 %v6112_v62  ;;  %v6196_v62 = vld [vmem:[#allocation5 + $0x558] ss:$20 sps:$4 sm:$0xff]  }
  0xed   :  { %2434 = vmatpush1.bf16.msra.mxu1 %v6115_v63  ;;  %2392 = vmatprep.subr.bf16.mxu0 %v6120_v0  ;;  %v6199_v63 = vld [vmem:[#allocation5 + $0x7d8] ss:$20 sps:$4 sm:$0xff]   ;;  %v6204_v0 = vld [vmem:[#allocation5 + $0x534] ss:$20 sps:$4 sm:$0xff]  }
  0xee   :  { %2435 = vmatprep.subr.bf16.mxu1 %v6123_v1  ;;  %v6207_v1 = vld [vmem:[#allocation5 + $0x7b4] ss:$20 sps:$4 sm:$0xff]  }
  0xf0   :  { %2393 = vmatpush2.bf16.msra.mxu0 %v6118_v2  ;;  %v6202_v2 = vld [vmem:[#allocation5 + $0x530] ss:$20 sps:$4 sm:$0xff]  }
  0xf1   :  { %2436 = vmatpush2.bf16.msra.mxu1 %v6121_v3  ;;  %2394 = vmatprep.subr.bf16.mxu0 %v6126_v4  ;;  %v6205_v3 = vld [vmem:[#allocation5 + $0x7b0] ss:$20 sps:$4 sm:$0xff]   ;;  %v6210_v4 = vld [vmem:[#allocation5 + $0x50c] ss:$20 sps:$4 sm:$0xff]  }
  0xf2   :  { %2437 = vmatprep.subr.bf16.mxu1 %v6129_v5  ;;  %v6213_v5 = vld [vmem:[#allocation5 + $0x78c] ss:$20 sps:$4 sm:$0xff]  }
  0xf4   :  { %2395 = vmatpush2.bf16.msra.mxu0 %v6124_v6  ;;  %v6208_v6 = vld [vmem:[#allocation5 + $0x508] ss:$20 sps:$4 sm:$0xff]  }
  0xf5   :  { %2438 = vmatpush2.bf16.msra.mxu1 %v6127_v7  ;;  %2396 = vmatprep.subr.bf16.mxu0 %v6132_v8  ;;  %v6211_v7 = vld [vmem:[#allocation5 + $0x788] ss:$20 sps:$4 sm:$0xff]   ;;  %v6216_v8 = vld [vmem:[#allocation5 + $0x764] ss:$20 sps:$4 sm:$0xff]  }
  0xf6   :  { %2439 = vmatprep.subr.bf16.mxu1 %v6135_v9  ;;  %v6219_v9 = vld [vmem:[#allocation5 + $0x9e4] ss:$20 sps:$4 sm:$0xff]  }
  0xf8   :  { %2397 = vmatpush2.bf16.msra.mxu0 %v6130_v10  ;;  %v6214_v10 = vld [vmem:[#allocation5 + $0x760] ss:$20 sps:$4 sm:$0xff]  }
  0xf9   :  { %2440 = vmatpush2.bf16.msra.mxu1 %v6133_v11  ;;  %2398 = vmatprep.subr.bf16.mxu0 %v6138_v14  ;;  %v6217_v11 = vld [vmem:[#allocation5 + $0x9e0] ss:$20 sps:$4 sm:$0xff]   ;;  %v6222_v14 = vld [vmem:[#allocation5 + $0x73c] ss:$20 sps:$4 sm:$0xff]  }
  0xfa   :  { %2441 = vmatprep.subr.bf16.mxu1 %v6141_v15  ;;  %v6225_v15 = vld [vmem:[#allocation5 + $0x9bc] ss:$20 sps:$4 sm:$0xff]  }
  0xfc   :  { %2399 = vmatpush2.bf16.msra.mxu0 %v6136_v16  ;;  %v6220_v16 = vld [vmem:[#allocation5 + $0x738] ss:$20 sps:$4 sm:$0xff]  }
  0xfd   :  { %2442 = vmatpush2.bf16.msra.mxu1 %v6139_v17  ;;  %2400 = vmatprep.subr.bf16.mxu0 %v6144_v18  ;;  %v6223_v17 = vld [vmem:[#allocation5 + $0x9b8] ss:$20 sps:$4 sm:$0xff]   ;;  %v6228_v18 = vld [vmem:[#allocation5 + $0x714] ss:$20 sps:$4 sm:$0xff]  }
  0xfe   :  { %2443 = vmatprep.subr.bf16.mxu1 %v6147_v19  ;;  %v6231_v19 = vld [vmem:[#allocation5 + $0x994] ss:$20 sps:$4 sm:$0xff]  }
 0x100   :  { %2401 = vmatpush2.bf16.msra.mxu0 %v6142_v20  ;;  %v6226_v20 = vld [vmem:[#allocation5 + $0x710] ss:$20 sps:$4 sm:$0xff]  }
 0x101   :  { %2444 = vmatpush2.bf16.msra.mxu1 %v6145_v21  ;;  %2402 = vmatprep.subr.bf16.mxu0 %v6150_v22  ;;  %v6229_v21 = vld [vmem:[#allocation5 + $0x990] ss:$20 sps:$4 sm:$0xff]   ;;  %v6234_v22 = vld [vmem:[#allocation5 + $0x6ec] ss:$20 sps:$4 sm:$0xff]  }
 0x102   :  { %2445 = vmatprep.subr.bf16.mxu1 %v6153_v23  ;;  %v6237_v23 = vld [vmem:[#allocation5 + $0x96c] ss:$20 sps:$4 sm:$0xff]  }
 0x104   :  { %2403 = vmatpush2.bf16.msra.mxu0 %v6148_v24  ;;  %v6232_v24 = vld [vmem:[#allocation5 + $0x6e8] ss:$20 sps:$4 sm:$0xff]  }
 0x105   :  { %2446 = vmatpush2.bf16.msra.mxu1 %v6151_v25  ;;  %2404 = vmatprep.subr.bf16.mxu0 %v6156_v26  ;;  %v6235_v25 = vld [vmem:[#allocation5 + $0x968] ss:$20 sps:$4 sm:$0xff]   ;;  %v6240_v26 = vld [vmem:[#allocation5 + $0x6c4] ss:$20 sps:$4 sm:$0xff]  }
 0x106   :  { %2447 = vmatprep.subr.bf16.mxu1 %v6159_v27  ;;  %v6243_v27 = vld [vmem:[#allocation5 + $0x944] ss:$20 sps:$4 sm:$0xff]  }
 0x108   :  { %2405 = vmatpush2.bf16.msra.mxu0 %v6154_v30  ;;  %v6238_v30 = vld [vmem:[#allocation5 + $0x6c0] ss:$20 sps:$4 sm:$0xff]  }
 0x109   :  { %2448 = vmatpush2.bf16.msra.mxu1 %v6157_v31  ;;  %2406 = vmatprep.subr.bf16.mxu0 %v6162_v32  ;;  %v6241_v31 = vld [vmem:[#allocation5 + $0x940] ss:$20 sps:$4 sm:$0xff]   ;;  %v6246_v32 = vld [vmem:[#allocation5 + $0x69c] ss:$20 sps:$4 sm:$0xff]  }
 0x10a   :  { %2449 = vmatprep.subr.bf16.mxu1 %v6165_v33  ;;  %v6249_v33 = vld [vmem:[#allocation5 + $0x91c] ss:$20 sps:$4 sm:$0xff]  }
 0x10c   :  { %2407 = vmatpush2.bf16.msra.mxu0 %v6160_v34  ;;  %v6244_v34 = vld [vmem:[#allocation5 + $0x698] ss:$20 sps:$4 sm:$0xff]  }
 0x10d   :  { %2450 = vmatpush2.bf16.msra.mxu1 %v6163_v35  ;;  %2462 = vmatprep.subr.bf16.mxu0 %v6168_v36  ;;  %v6247_v35 = vld [vmem:[#allocation5 + $0x918] ss:$20 sps:$4 sm:$0xff]   ;;  %v6252_v36 = vld [vmem:[#allocation5 + $0x674] ss:$20 sps:$4 sm:$0xff]  }
 0x10e   :  { %2505 = vmatprep.subr.bf16.mxu1 %v6171_v37  ;;  %v6255_v37 = vld [vmem:[#allocation5 + $0x8f4] ss:$20 sps:$4 sm:$0xff]  }
 0x10f   :  { %2409 = vmatmul.mubr.bf16.vlgmr.msra.gmra.mxu0 %v6730_v12 }
 0x110   :  { %2452 = vmatmul.mubr.bf16.vlgmr.msra.gmra.mxu1 %v6732_v13  ;;  %2463 = vmatpush1.bf16.msra.mxu0 %v6166_v38  ;;  %v6250_v38 = vld [vmem:[#allocation5 + $0x670] ss:$20 sps:$4 sm:$0xff]  }
 0x111   :  { %2506 = vmatpush1.bf16.msra.mxu1 %v6169_v39  ;;  %2464 = vmatprep.subr.bf16.mxu0 %v6174_v40  ;;  %v6253_v39 = vld [vmem:[#allocation5 + $0x8f0] ss:$20 sps:$4 sm:$0xff]   ;;  %v6258_v40 = vld [vmem:[#allocation5 + $0x64c] ss:$20 sps:$4 sm:$0xff]  }
 0x112   :  { %2507 = vmatprep.subr.bf16.mxu1 %v6177_v41  ;;  %2494 = vmatprep.mubr.bf16.mxu0 %v6736_v45  ;;  %v6261_v41 = vld [vmem:[#allocation5 + $0x8cc] ss:$20 sps:$4 sm:$0xff]  }
 0x113   :  { %2537 = vmatprep.mubr.bf16.mxu1 %v6738_v47 }
 0x114   :  { %2465 = vmatpush1.bf16.msra.mxu0 %v6172_v42  ;;  %v6256_v42 = vld [vmem:[#allocation5 + $0x648] ss:$20 sps:$4 sm:$0xff]  }
 0x115   :  { %2508 = vmatpush1.bf16.msra.mxu1 %v6175_v43  ;;  %2466 = vmatprep.subr.bf16.mxu0 %v6180_v44  ;;  %v6259_v43 = vld [vmem:[#allocation5 + $0x8c8] ss:$20 sps:$4 sm:$0xff]  }
 0x116   :  { %2509 = vmatprep.subr.bf16.mxu1 %v6183_v46  ;;  %v6262_v44 = vld [vmem:[#allocation5 + $0x268] ss:$20 sps:$4 sm:$0xff]  }
 0x117   :  { %v6263_v46 = vld [vmem:[#allocation5 + $0x4e8] ss:$20 sps:$4 sm:$0xff]  }
 0x118   :  { %2467 = vmatpush1.bf16.msra.mxu0 %v6178_v48  ;;  %v6264_v48 = vld [vmem:[#allocation5 + $0x128] ss:$20 sps:$4 sm:$0xff]  }
 0x119   :  { %2510 = vmatpush1.bf16.msra.mxu1 %v6181_v49  ;;  %2468 = vmatprep.subr.bf16.mxu0 %v6186_v50  ;;  %v6265_v49 = vld [vmem:[#allocation5 + $0x3a8] ss:$20 sps:$4 sm:$0xff]   ;;  %v6266_v50 = vld [vmem:[#allocation5 + $0x240] ss:$20 sps:$4 sm:$0xff]  }
 0x11a   :  { %2511 = vmatprep.subr.bf16.mxu1 %v6189_v51  ;;  %v6267_v51 = vld [vmem:[#allocation5 + $0x4c0] ss:$20 sps:$4 sm:$0xff]  }
 0x11c   :  { %2469 = vmatpush1.bf16.msra.mxu0 %v6184_v52  ;;  %v6268_v52 = vld [vmem:[#allocation5 + $0x100] ss:$20 sps:$4 sm:$0xff]  }
 0x11d   :  { %2512 = vmatpush1.bf16.msra.mxu1 %v6187_v55  ;;  %2470 = vmatprep.subr.bf16.mxu0 %v6192_v56  ;;  %v6269_v55 = vld [vmem:[#allocation5 + $0x380] ss:$20 sps:$4 sm:$0xff]   ;;  %v6270_v56 = vld [vmem:[#allocation5 + $0x218] ss:$20 sps:$4 sm:$0xff]  }
 0x11e   :  { %2513 = vmatprep.subr.bf16.mxu1 %v6195_v57  ;;  %v6271_v57 = vld [vmem:[#allocation5 + $0x498] ss:$20 sps:$4 sm:$0xff]  }
 0x120   :  { %2471 = vmatpush1.bf16.msra.mxu0 %v6190_v58  ;;  %v6272_v58 = vld [vmem:[#allocation5 + $0xd8] ss:$20 sps:$4 sm:$0xff]  }
 0x121   :  { %2514 = vmatpush1.bf16.msra.mxu1 %v6193_v59  ;;  %2472 = vmatprep.subr.bf16.mxu0 %v6198_v60  ;;  %v6273_v59 = vld [vmem:[#allocation5 + $0x358] ss:$20 sps:$4 sm:$0xff]   ;;  %v6274_v60 = vld [vmem:[#allocation5 + $0x1f0] ss:$20 sps:$4 sm:$0xff]  }
 0x122   :  { %2515 = vmatprep.subr.bf16.mxu1 %v6201_v61  ;;  %v6275_v61 = vld [vmem:[#allocation5 + $0x470] ss:$20 sps:$4 sm:$0xff]  }
 0x124   :  { %2473 = vmatpush1.bf16.msra.mxu0 %v6196_v62  ;;  %v6276_v62 = vld [vmem:[#allocation5 + $0xb0] ss:$20 sps:$4 sm:$0xff]  }
 0x125   :  { %2516 = vmatpush1.bf16.msra.mxu1 %v6199_v63  ;;  %2474 = vmatprep.subr.bf16.mxu0 %v6204_v0  ;;  %v6277_v63 = vld [vmem:[#allocation5 + $0x330] ss:$20 sps:$4 sm:$0xff]   ;;  %v6278_v0 = vld [vmem:[#allocation5 + $0x1c8] ss:$20 sps:$4 sm:$0xff]  }
 0x126   :  { %2517 = vmatprep.subr.bf16.mxu1 %v6207_v1  ;;  %v6279_v1 = vld [vmem:[#allocation5 + $0x448] ss:$20 sps:$4 sm:$0xff]  }
 0x128   :  { %2475 = vmatpush1.bf16.msra.mxu0 %v6202_v2  ;;  %v6280_v2 = vld [vmem:[#allocation5 + $0x88] ss:$20 sps:$4 sm:$0xff]  }
 0x129   :  { %2518 = vmatpush1.bf16.msra.mxu1 %v6205_v3  ;;  %2476 = vmatprep.subr.bf16.mxu0 %v6210_v4  ;;  %v6283_v3 = vld [vmem:[#allocation5 + $0x420] ss:$20 sps:$4 sm:$0xff]  }
 0x12a   :  { %2519 = vmatprep.subr.bf16.mxu1 %v6213_v5  ;;  %v6284_v4 = vld [vmem:[#allocation5 + $0x60] ss:$20 sps:$4 sm:$0xff]  }
 0x12b   :  { %v6285_v5 = vld [vmem:[#allocation5 + $0x2e0] ss:$20 sps:$4 sm:$0xff]  }
 0x12c   :  { %2477 = vmatpush1.bf16.msra.mxu0 %v6208_v6  ;;  %v6286_v6 = vld [vmem:[#allocation5 + $0x178] ss:$20 sps:$4 sm:$0xff]  }
 0x12d   :  { %2520 = vmatpush1.bf16.msra.mxu1 %v6211_v7  ;;  %2478 = vmatprep.subr.bf16.mxu0 %v6216_v8  ;;  %v6287_v7 = vld [vmem:[#allocation5 + $0x3f8] ss:$20 sps:$4 sm:$0xff]  }
 0x12e   :  { %2521 = vmatprep.subr.bf16.mxu1 %v6219_v9  ;;  %v6288_v8 = vld [vmem:[#allocation5 + $0x38] ss:$20 sps:$4 sm:$0xff]  }
 0x12f   :  { %v6289_v9 = vld [vmem:[#allocation5 + $0x2b8] ss:$20 sps:$4 sm:$0xff]  }
 0x130   :  { %2479 = vmatpush2.bf16.msra.mxu0 %v6214_v10  ;;  %v6290_v10 = vld [vmem:[#allocation5 + $0x150] ss:$20 sps:$4 sm:$0xff]  }
 0x131   :  { %2522 = vmatpush2.bf16.msra.mxu1 %v6217_v11  ;;  %2480 = vmatprep.subr.bf16.mxu0 %v6222_v14  ;;  %v6291_v11 = vld [vmem:[#allocation5 + $0x3d0] ss:$20 sps:$4 sm:$0xff]  }
 0x132   :  { %2523 = vmatprep.subr.bf16.mxu1 %v6225_v15  ;;  %v6292_v14 = vld [vmem:[#allocation5 + $0x10] ss:$20 sps:$4 sm:$0xff]  }
 0x133   :  { %v6293_v15 = vld [vmem:[#allocation5 + $0x290] ss:$20 sps:$4 sm:$0xff]  }
 0x134   :  { %2481 = vmatpush2.bf16.msra.mxu0 %v6220_v16  ;;  %v6294_v16 = vld [vmem:[#allocation5 + $0x768] ss:$20 sps:$4 sm:$0xff]  }
 0x135   :  { %2524 = vmatpush2.bf16.msra.mxu1 %v6223_v17  ;;  %2482 = vmatprep.subr.bf16.mxu0 %v6228_v18  ;;  %v6295_v17 = vld [vmem:[#allocation5 + $0x9e8] ss:$20 sps:$4 sm:$0xff]  }
 0x136   :  { %2525 = vmatprep.subr.bf16.mxu1 %v6231_v19  ;;  %v6296_v18 = vld [vmem:[#allocation5 + $0x628] ss:$20 sps:$4 sm:$0xff]  }
 0x137   :  { %v6297_v19 = vld [vmem:[#allocation5 + $0x8a8] ss:$20 sps:$4 sm:$0xff]  }
 0x138   :  { %2483 = vmatpush2.bf16.msra.mxu0 %v6226_v20  ;;  %v6298_v20 = vld [vmem:[#allocation5 + $0x740] ss:$20 sps:$4 sm:$0xff]  }
 0x139   :  { %2526 = vmatpush2.bf16.msra.mxu1 %v6229_v21  ;;  %2484 = vmatprep.subr.bf16.mxu0 %v6234_v22  ;;  %v6299_v21 = vld [vmem:[#allocation5 + $0x9c0] ss:$20 sps:$4 sm:$0xff]  }
 0x13a   :  { %2527 = vmatprep.subr.bf16.mxu1 %v6237_v23  ;;  %v6300_v22 = vld [vmem:[#allocation5 + $0x600] ss:$20 sps:$4 sm:$0xff]  }
 0x13b   :  { %v6301_v23 = vld [vmem:[#allocation5 + $0x880] ss:$20 sps:$4 sm:$0xff]  }
 0x13c   :  { %2485 = vmatpush2.bf16.msra.mxu0 %v6232_v24  ;;  %v6302_v24 = vld [vmem:[#allocation5 + $0x718] ss:$20 sps:$4 sm:$0xff]  }
 0x13d   :  { %2528 = vmatpush2.bf16.msra.mxu1 %v6235_v25  ;;  %2486 = vmatprep.subr.bf16.mxu0 %v6240_v26  ;;  %v6303_v25 = vld [vmem:[#allocation5 + $0x998] ss:$20 sps:$4 sm:$0xff]  }
 0x13e   :  { %2529 = vmatprep.subr.bf16.mxu1 %v6243_v27  ;;  %v6304_v26 = vld [vmem:[#allocation5 + $0x5d8] ss:$20 sps:$4 sm:$0xff]  }
 0x13f   :  { %v6305_v27 = vld [vmem:[#allocation5 + $0x858] ss:$20 sps:$4 sm:$0xff]  }
 0x140   :  { %2487 = vmatpush2.bf16.msra.mxu0 %v6238_v30  ;;  %v6308_v30 = vld [vmem:[#allocation5 + $0x5b0] ss:$20 sps:$4 sm:$0xff]  }
 0x141   :  { %2530 = vmatpush2.bf16.msra.mxu1 %v6241_v31  ;;  %2488 = vmatprep.subr.bf16.mxu0 %v6246_v32  ;;  %v6309_v31 = vld [vmem:[#allocation5 + $0x830] ss:$20 sps:$4 sm:$0xff]   ;;  %v6310_v32 = vld [vmem:[#allocation5 + $0x6c8] ss:$20 sps:$4 sm:$0xff]  }
 0x142   :  { %2531 = vmatprep.subr.bf16.mxu1 %v6249_v33  ;;  %v6311_v33 = vld [vmem:[#allocation5 + $0x948] ss:$20 sps:$4 sm:$0xff]  }
 0x144   :  { %2489 = vmatpush2.bf16.msra.mxu0 %v6244_v34  ;;  %v515_v34 = vlaneseq }
 0x145   :  { %2532 = vmatpush2.bf16.msra.mxu1 %v6247_v35  ;;  %2490 = vmatprep.subr.bf16.mxu0 %v6252_v36  ;;  %v6314_v35 = vld [vmem:[#allocation5 + $0x6a0] ss:$20 sps:$4 sm:$0xff]  }
 0x146   :  { %2533 = vmatprep.subr.bf16.mxu1 %v6255_v37  ;;  %v6315_v36 = vld [vmem:[#allocation5 + $0x920] ss:$20 sps:$4 sm:$0xff]   ;;  %v6762_v37 = vshrl.u32 %v515_v34, 7  ;;  %v6338_v34 = vld [vmem:[%s7298_s3 + $0x30] ss:$8 sps:$4 sm:$0xff]  }
 0x148   :  { %2491 = vmatpush2.bf16.msra.mxu0 %v6250_v38  ;;  %v6316_v38 = vld [vmem:[#allocation5 + $0x560] ss:$20 sps:$4 sm:$0xff]  }
 0x149   :  { %2534 = vmatpush2.bf16.msra.mxu1 %v6253_v39  ;;  %2492 = vmatprep.subr.bf16.mxu0 %v6258_v40  ;;  %v6317_v39 = vld [vmem:[#allocation5 + $0x7e0] ss:$20 sps:$4 sm:$0xff]  }
 0x14a   :  { %2535 = vmatprep.subr.bf16.mxu1 %v6261_v41 }
 0x14c   :  { %2493 = vmatpush2.bf16.msra.mxu0 %v6256_v42  ;;  %v6318_v42 = vld [vmem:[#allocation5 + $0x678] ss:$20 sps:$4 sm:$0xff]  }
 0x14d   :  { %2536 = vmatpush2.bf16.msra.mxu1 %v6259_v43  ;;  %5614 = vmatprep.subr.bf16.mxu0 %v6262_v44  ;;  %v6319_v43 = vld [vmem:[#allocation5 + $0x8f8] ss:$20 sps:$4 sm:$0xff]   ;;  %v521_v44 = vsub.s32 1, %v6762_v37 }
 0x14e   :  { %5636 = vmatprep.subr.bf16.mxu1 %v6263_v46  ;;  %v6320_v46 = vld [vmem:[#allocation5 + $0x538] ss:$20 sps:$4 sm:$0xff]  }
 0x14f   :  { %2495 = vmatmul.mubr.bf16.vlgmr.msra.gmra.mxu0 %v6742_v28  ;;  %v6764_v40 = vpop.f32.mrf.mxu0 }
 0x150   :  { %2538 = vmatmul.mubr.bf16.vlgmr.msra.gmra.mxu1 %v6744_v29  ;;  %5615 = vmatpush3.bf16.msra.mxu0 %v6264_v48  ;;  %v6766_v41 = vpop.f32.mrf.mxu1  ;;  %v6321_v48 = vld [vmem:[#allocation5 + $0x7b8] ss:$20 sps:$4 sm:$0xff]  }
 0x151   :  { %5637 = vmatpush3.bf16.msra.mxu1 %v6265_v49  ;;  %5616 = vmatprep.subr.bf16.mxu0 %v6266_v50  ;;  %v6769_v49 = vld [vmem:[#allocation7] sm:$0x1f]  ;;  %v2240_v50 = vpop.f32.mrf.mxu0 }
 0x152   :  { %5638 = vmatprep.subr.bf16.mxu1 %v6267_v51  ;;  %2580 = vmatprep.mubr.bf16.mxu0 %v6724_v53  ;;  %v6281_v53 = vld [vmem:[#allocation5 + $0x308] ss:$20 sps:$4 sm:$0xff]   ;;  %v2283_v51 = vpop.f32.mrf.mxu1 }
 0x153   :  { %2621 = vmatprep.mubr.bf16.mxu1 %v6726_v54  ;;  %v6282_v54 = vld [vmem:[#allocation5 + $0x1a0] ss:$20 sps:$4 sm:$0xff]  }
 0x154   :  { %5617 = vmatpush3.bf16.msra.mxu0 %v6268_v52  ;;  %v6322_v52 = vld [vmem:[#allocation5 + $0x650] ss:$20 sps:$4 sm:$0xff]  }
 0x155   :  { %5639 = vmatpush3.bf16.msra.mxu1 %v6269_v55  ;;  %5618 = vmatprep.subr.bf16.mxu0 %v6270_v56  ;;  %v6323_v55 = vld [vmem:[#allocation5 + $0x8d0] ss:$20 sps:$4 sm:$0xff]   ;;  %v522_v56 = vrot.slane %v6769_v49, %v521_v44 }
 0x156   :  { %5640 = vmatprep.subr.bf16.mxu1 %v6271_v57  ;;  %v6324_v57 = vld [vmem:[#allocation5 + $0x510] ss:$20 sps:$4 sm:$0xff]  }
 0x158   :  { %5619 = vmatpush3.bf16.msra.mxu0 %v6272_v58  ;;  %v6325_v58 = vld [vmem:[#allocation5 + $0x790] ss:$20 sps:$4 sm:$0xff]  }
 0x159   :  { %5641 = vmatpush3.bf16.msra.mxu1 %v6273_v59  ;;  %5620 = vmatprep.subr.bf16.mxu0 %v6274_v60  ;;  %v6774_v59 = vpop.f32.mrf.mxu0  ;;  %v6776_v60 = vpop.f32.mrf.mxu1 }
 0x15a   :  { %5642 = vmatprep.subr.bf16.mxu1 %v6275_v61  ;;  %v6328_v61 = vld [vmem:[%s7298_s3 + $0x74] ss:$8 sps:$4 sm:$0xff]  }
 0x15c   :  { %5621 = vmatpush3.bf16.msra.mxu0 %v6276_v62  ;;  %v6376_v62 = vld [vmem:[%s7298_s3 + $0x174] ss:$8 sps:$4 sm:$0xff]  }
 0x15d   :  { %5643 = vmatpush3.bf16.msra.mxu1 %v6277_v63  ;;  %5622 = vmatprep.subr.bf16.mxu0 %v6278_v0  ;;  %v2241_v63 = vadd.f32 %v2240_v50, %v522_v56  ;;  %v6326_v0 = vld [vmem:[%s7298_s3 + $0x70] ss:$8 sps:$4 sm:$0xff]   ;;  %v6397_v50 = vld [vmem:[%s7298_s3 + $0x104] ss:$8 sps:$4 sm:$0xff]  }
 0x15e   :  { %5644 = vmatprep.subr.bf16.mxu1 %v6279_v1  ;;  %v6374_v1 = vld [vmem:[%s7298_s3 + $0x170] ss:$8 sps:$4 sm:$0xff]  }
 0x160   :  { %5623 = vmatpush3.bf16.msra.mxu0 %v6280_v2  ;;  %v2244_v2 = vpop.f32.mrf.mxu0 }
 0x161   :  { %5645 = vmatpush3.bf16.msra.mxu1 %v6281_v53  ;;  %5624 = vmatprep.subr.bf16.mxu0 %v6282_v54  ;;  %v2287_v53 = vpop.f32.mrf.mxu1  ;;  %v6331_v54 = vld [vmem:[%s7298_s3 + $0x64] ss:$8 sps:$4 sm:$0xff]  }
 0x162   :  { %5646 = vmatprep.subr.bf16.mxu1 %v6283_v3  ;;  %v6379_v3 = vld [vmem:[%s7298_s3 + $0x164] ss:$8 sps:$4 sm:$0xff]  }
 0x164   :  { %5625 = vmatpush3.bf16.msra.mxu0 %v6284_v4 }
 0x165   :  { %5647 = vmatpush3.bf16.msra.mxu1 %v6285_v5  ;;  %5626 = vmatprep.subr.bf16.mxu0 %v6286_v6  ;;  %v2284_v6 = vadd.f32 %v2283_v51, %v2241_v63  ;;  %v6347_v51 = vld [vmem:[%s7298_s3] ss:$8 sps:$4 sm:$0xff]  }
 0x166   :  { %5648 = vmatprep.subr.bf16.mxu1 %v6287_v7  ;;  %v2245_v7 = vadd.f32 %v2244_v2, %v522_v56  ;;  %v6400_v56 = vld [vmem:[%s7298_s3 + $0x1f4] ss:$8 sps:$4 sm:$0xff]   ;;  %v6353_v63 = vld [vmem:[%s7298_s3 + $0xe0] ss:$8 sps:$4 sm:$0xff]  }
 0x167   :  { %v6406_v2 = vld [vmem:[%s7298_s3 + $0x1d4] ss:$8 sps:$4 sm:$0xff]  }
 0x168   :  { %5627 = vmatpush3.bf16.msra.mxu0 %v6288_v8  ;;  %v6329_v8 = vld [vmem:[%s7298_s3 + $0x60] ss:$8 sps:$4 sm:$0xff]  }
 0x169   :  { %5649 = vmatpush3.bf16.msra.mxu1 %v6289_v9  ;;  %5628 = vmatprep.subr.bf16.mxu0 %v6290_v10  ;;  %v6377_v9 = vld [vmem:[%s7298_s3 + $0x160] ss:$8 sps:$4 sm:$0xff]  }
 0x16a   :  { %5650 = vmatprep.subr.bf16.mxu1 %v6291_v11 }
 0x16c   :  { %5629 = vmatpush3.bf16.msra.mxu0 %v6292_v14 }
 0x16d   :  { %5651 = vmatpush3.bf16.msra.mxu1 %v6293_v15  ;;  %5658 = vmatprep.subr.bf16.mxu0 %v6294_v16 }
 0x16e   :  { %5680 = vmatprep.subr.bf16.mxu1 %v6295_v17  ;;  %v2288_v17 = vadd.f32 %v2287_v53, %v2245_v7  ;;  %v6356_v53 = vld [vmem:[%s7298_s3 + $0xd0] ss:$8 sps:$4 sm:$0xff]   ;;  %v6409_v7 = vld [vmem:[%s7298_s3 + $0x1c4] ss:$8 sps:$4 sm:$0xff]  }
 0x16f   :  { %2581 = vmatmul.mubr.bf16.vlgmr.msra.gmra.mxu0 %v6730_v12  ;;  %v6306_v12 = vld [vmem:[#allocation5 + $0x6f0] ss:$20 sps:$4 sm:$0xff]  }
 0x170   :  { %2622 = vmatmul.mubr.bf16.vlgmr.msra.gmra.mxu1 %v6732_v13  ;;  %5659 = vmatpush3.bf16.msra.mxu0 %v6296_v18  ;;  %v6307_v13 = vld [vmem:[#allocation5 + $0x970] ss:$20 sps:$4 sm:$0xff]  }
 0x171   :  { %5681 = vmatpush3.bf16.msra.mxu1 %v6297_v19  ;;  %5660 = vmatprep.subr.bf16.mxu0 %v6298_v20  ;;  %v6332_v18 = vld [vmem:[%s7298_s3 + $0x50] ss:$8 sps:$4 sm:$0xff]  }
 0x172   :  { %5682 = vmatprep.subr.bf16.mxu1 %v6299_v21  ;;  %2662 = vmatprep.mubr.bf16.mxu0 %v6736_v45  ;;  %v6312_v45 = vld [vmem:[#allocation5 + $0x588] ss:$20 sps:$4 sm:$0xff]   ;;  %v6380_v19 = vld [vmem:[%s7298_s3 + $0x150] ss:$8 sps:$4 sm:$0xff]   ;;  %v6337_v21 = vld [vmem:[%s7298_s3 + $0x44] ss:$8 sps:$4 sm:$0xff]  }
 0x173   :  { %2703 = vmatprep.mubr.bf16.mxu1 %v6738_v47  ;;  %v6313_v47 = vld [vmem:[#allocation5 + $0x808] ss:$20 sps:$4 sm:$0xff]  }
 0x174   :  { %5661 = vmatpush3.bf16.msra.mxu0 %v6300_v22  ;;  %v6385_v22 = vld [vmem:[%s7298_s3 + $0x144] ss:$8 sps:$4 sm:$0xff]  }
 0x175   :  { %5683 = vmatpush3.bf16.msra.mxu1 %v6301_v23  ;;  %5662 = vmatprep.subr.bf16.mxu0 %v6302_v24 }
 0x176   :  { %5684 = vmatprep.subr.bf16.mxu1 %v6303_v25 }
 0x178   :  { %5663 = vmatpush3.bf16.msra.mxu0 %v6304_v26 }
 0x179   :  { %5685 = vmatpush3.bf16.msra.mxu1 %v6305_v27  ;;  %5664 = vmatprep.subr.bf16.mxu0 %v6306_v12  ;;  %v6335_v27 = vld [vmem:[%s7298_s3 + $0x40] ss:$8 sps:$4 sm:$0xff]  }
 0x17a   :  { %5686 = vmatprep.subr.bf16.mxu1 %v6307_v13  ;;  %v6383_v12 = vld [vmem:[%s7298_s3 + $0x140] ss:$8 sps:$4 sm:$0xff]   ;;  %v6340_v13 = vld [vmem:[%s7298_s3 + $0x34] ss:$8 sps:$4 sm:$0xff]  }
 0x17c   :  { %5665 = vmatpush3.bf16.msra.mxu0 %v6308_v30  ;;  %v6388_v30 = vld [vmem:[%s7298_s3 + $0x134] ss:$8 sps:$4 sm:$0xff]  }
 0x17d   :  { %5687 = vmatpush3.bf16.msra.mxu1 %v6309_v31  ;;  %5666 = vmatprep.subr.bf16.mxu0 %v6310_v32 }
 0x17e   :  { %5688 = vmatprep.subr.bf16.mxu1 %v6311_v33 }
 0x180   :  { %5667 = vmatpush3.bf16.msra.mxu0 %v6312_v45  ;;  %v6386_v45 = vld [vmem:[%s7298_s3 + $0x130] ss:$8 sps:$4 sm:$0xff]  }
 0x181   :  { %5689 = vmatpush3.bf16.msra.mxu1 %v6313_v47  ;;  %5668 = vmatprep.subr.bf16.mxu0 %v6314_v35  ;;  %v6343_v47 = vld [vmem:[%s7298_s3 + $0x24] ss:$8 sps:$4 sm:$0xff]  }
 0x182   :  { %5690 = vmatprep.subr.bf16.mxu1 %v6315_v36  ;;  %v6391_v35 = vld [vmem:[%s7298_s3 + $0x124] ss:$8 sps:$4 sm:$0xff]   ;;  %v6341_v36 = vld [vmem:[%s7298_s3 + $0x20] ss:$8 sps:$4 sm:$0xff]  }
 0x184   :  { %5669 = vmatpush3.bf16.msra.mxu0 %v6316_v38  ;;  %v6389_v38 = vld [vmem:[%s7298_s3 + $0x120] ss:$8 sps:$4 sm:$0xff]  }
 0x185   :  { %5691 = vmatpush3.bf16.msra.mxu1 %v6317_v39  ;;  %5670 = vmatprep.subr.bf16.mxu0 %v6318_v42  ;;  %v6346_v39 = vld [vmem:[%s7298_s3 + $0x14] ss:$8 sps:$4 sm:$0xff]  }
 0x186   :  { %5692 = vmatprep.subr.bf16.mxu1 %v6319_v43  ;;  %v6394_v42 = vld [vmem:[%s7298_s3 + $0x114] ss:$8 sps:$4 sm:$0xff]   ;;  %v6344_v43 = vld [vmem:[%s7298_s3 + $0x10] ss:$8 sps:$4 sm:$0xff]  }
 0x188   :  { %5671 = vmatpush3.bf16.msra.mxu0 %v6320_v46  ;;  %v6392_v46 = vld [vmem:[%s7298_s3 + $0x110] ss:$8 sps:$4 sm:$0xff]  }
 0x189   :  { %5693 = vmatpush3.bf16.msra.mxu1 %v6321_v48  ;;  %5672 = vmatprep.subr.bf16.mxu0 %v6322_v52  ;;  %v6349_v48 = vld [vmem:[%s7298_s3 + $0x4] ss:$8 sps:$4 sm:$0xff]   ;;  %v6395_v52 = vld [vmem:[%s7298_s3 + $0x100] ss:$8 sps:$4 sm:$0xff]  }
 0x18a   :  { %5694 = vmatprep.subr.bf16.mxu1 %v6323_v55  ;;  %v6352_v55 = vld [vmem:[%s7298_s3 + $0xf4] ss:$8 sps:$4 sm:$0xff]  }
 0x18c   :  { %5673 = vmatpush3.bf16.msra.mxu0 %v6324_v57  ;;  %v6350_v57 = vld [vmem:[%s7298_s3 + $0xf0] ss:$8 sps:$4 sm:$0xff]  }
 0x18d   :  { %5695 = vmatpush3.bf16.msra.mxu1 %v6325_v58  ;;  %3219 = vmatprep.subr.bf16.mxu0 %v6328_v61  ;;  %v6398_v58 = vld [vmem:[%s7298_s3 + $0x1f0] ss:$8 sps:$4 sm:$0xff]   ;;  %v6355_v61 = vld [vmem:[%s7298_s3 + $0xe4] ss:$8 sps:$4 sm:$0xff]  }
 0x18e   :  { %3262 = vmatprep.subr.bf16.mxu1 %v6376_v62  ;;  %v6403_v62 = vld [vmem:[%s7298_s3 + $0x1e4] ss:$8 sps:$4 sm:$0xff]  }
 0x18f   :  { %v6796_v4 = vpop.f32.mrf.mxu0  ;;  %2663 = vmatmul.mubr.bf16.vlgmr.msra.gmra.mxu0 %v6742_v28  ;;  %v6334_v28 = vld [vmem:[%s7298_s3 + $0x54] ss:$8 sps:$4 sm:$0xff]  }
 0x190   :  { %v6798_v5 = vpop.f32.mrf.mxu1  ;;  %2704 = vmatmul.mubr.bf16.vlgmr.msra.gmra.mxu1 %v6744_v29  ;;  %3220 = vmatpush1.bf16.msra.mxu0 %v6326_v0  ;;  %v6382_v29 = vld [vmem:[%s7298_s3 + $0x154] ss:$8 sps:$4 sm:$0xff]   ;;  %v6401_v0 = vld [vmem:[%s7298_s3 + $0x1e0] ss:$8 sps:$4 sm:$0xff]  }
 0x191   :  { %3263 = vmatpush1.bf16.msra.mxu1 %v6374_v1  ;;  %v2326_v10 = vpop.f32.mrf.mxu0  ;;  %3221 = vmatprep.subr.bf16.mxu0 %v6331_v54  ;;  %v6358_v1 = vld [vmem:[%s7298_s3 + $0xd4] ss:$8 sps:$4 sm:$0xff]   ;;  %v6404_v54 = vld [vmem:[%s7298_s3 + $0x1d0] ss:$8 sps:$4 sm:$0xff]  }
 0x192   :  { %v2369_v11 = vpop.f32.mrf.mxu1  ;;  %3264 = vmatprep.subr.bf16.mxu1 %v6379_v3  ;;  %v2327_v14 = vadd.f32 %v2326_v10, %v2284_v6  ;;  %v517_v3 = vsub.s32 0, %v6762_v37  ;;  %v6361_v6 = vld [vmem:[%s7298_s3 + $0xc4] ss:$8 sps:$4 sm:$0xff]  }
 0x193   :  { %v6814_v15 = vpop.f32.mrf.mxu0 }
 0x194   :  { %v6816_v16 = vpop.f32.mrf.mxu1  ;;  %3222 = vmatpush1.bf16.msra.mxu0 %v6329_v8  ;;  %v2370_v23 = vadd.f32 %v2369_v11, %v2327_v14  ;;  %v6359_v8 = vld [vmem:[%s7298_s3 + $0xc0] ss:$8 sps:$4 sm:$0xff]   ;;  %v518_v10 = vrot.slane %v6769_v49, %v517_v3  ;;  %v6364_v11 = vld [vmem:[%s7298_s3 + $0xb4] ss:$8 sps:$4 sm:$0xff]   ;;  %v6362_v14 = vld [vmem:[%s7298_s3 + $0xb0] ss:$8 sps:$4 sm:$0xff]  }
 0x195   :  { %3265 = vmatpush1.bf16.msra.mxu1 %v6377_v9  ;;  %v2330_v20 = vpop.f32.mrf.mxu0  ;;  %3223 = vmatprep.subr.bf16.mxu0 %v6334_v28  ;;  %v6407_v9 = vld [vmem:[%s7298_s3 + $0x1c0] ss:$8 sps:$4 sm:$0xff]   ;;  %v6412_v28 = vld [vmem:[%s7298_s3 + $0x1b4] ss:$8 sps:$4 sm:$0xff]  }
 0x196   :  { %3266 = vmatprep.subr.bf16.mxu1 %v6382_v29  ;;  %v2331_v24 = vadd.f32 %v2330_v20, %v2288_v17  ;;  %v2373_v25 = vpop.f32.mrf.mxu1  ;;  %v2713_v31 = vmax.f32 %v2370_v23, 0.0  ;;  %v2243_v29 = vadd.f32 %v6774_v59, %v518_v10  ;;  %v6410_v17 = vld [vmem:[%s7298_s3 + $0x1b0] ss:$8 sps:$4 sm:$0xff]   ;;  %v6415_v59 = vld [vmem:[%s7298_s3 + $0x1a4] ss:$8 sps:$4 sm:$0xff]  }
 0x198   :  { %v2374_v26 = vadd.f32 %v2373_v25, %v2331_v24  ;;  %3224 = vmatpush1.bf16.msra.mxu0 %v6332_v18  ;;  %v2239_v18 = vadd.f32 %v6764_v40, %v518_v10  ;;  %v2286_v20 = vadd.f32 %v6776_v60, %v2243_v29  ;;  %v6413_v40 = vld [vmem:[%s7298_s3 + $0x1a0] ss:$8 sps:$4 sm:$0xff]   ;;  %v6370_v24 = vld [vmem:[%s7298_s3 + $0x94] ss:$8 sps:$4 sm:$0xff]  }
 0x199   :  { %3267 = vmatpush1.bf16.msra.mxu1 %v6380_v19  ;;  %3225 = vmatprep.subr.bf16.mxu0 %v6337_v21  ;;  %v6367_v19 = vld [vmem:[%s7298_s3 + $0xa4] ss:$8 sps:$4 sm:$0xff]   ;;  %v6365_v21 = vld [vmem:[%s7298_s3 + $0xa0] ss:$8 sps:$4 sm:$0xff]   ;;  %v6418_v60 = vld [vmem:[%s7298_s3 + $0x194] ss:$8 sps:$4 sm:$0xff]  }
 0x19a   :  { %3268 = vmatprep.subr.bf16.mxu1 %v6385_v22  ;;  %v2718_v32 = vmax.f32 %v2374_v26, 0.0  ;;  %v2282_v22 = vadd.f32 %v6766_v41, %v2239_v18  ;;  %v2329_v23 = vadd.f32 %v6814_v15, %v2286_v20  ;;  %v6368_v26 = vld [vmem:[%s7298_s3 + $0x90] ss:$8 sps:$4 sm:$0xff]  }
 0x19b   :  { %v6416_v41 = vld [vmem:[%s7298_s3 + $0x190] ss:$8 sps:$4 sm:$0xff]  }
 0x19c   :  { %v2723_v33 = vpack.c.bf16 %v2718_v32, %v2713_v31  ;;  %3226 = vmatpush1.bf16.msra.mxu0 %v6335_v27  ;;  %v2325_v25 = vadd.f32 %v6796_v4, %v2282_v22  ;;  %v2372_v15 = vadd.f32 %v6816_v16, %v2329_v23  ;;  %v6373_v27 = vld [vmem:[%s7298_s3 + $0x84] ss:$8 sps:$4 sm:$0xff]   ;;  %v6419_v16 = vld [vmem:[%s7298_s3 + $0x180] ss:$8 sps:$4 sm:$0xff]   ;;  %v6424_v31 = vld [vmem:[%s7298_s3 + $0x274] ss:$8 sps:$4 sm:$0xff]  }
 0x19d   :  { %3269 = vmatpush1.bf16.msra.mxu1 %v6383_v12  ;;  %3227 = vmatprep.subr.bf16.mxu0 %v6340_v13  ;;  %v6421_v4 = vld [vmem:[%s7298_s3 + $0x184] ss:$8 sps:$4 sm:$0xff]   ;;  %v6371_v13 = vld [vmem:[%s7298_s3 + $0x80] ss:$8 sps:$4 sm:$0xff]  }
 0x19e   :  { %3270 = vmatprep.subr.bf16.mxu1 %v6388_v30  ;;  %3251 = vmatprep.mubr.bf16.mxu0 %v2723_v33  ;;  %v2368_v12 = vadd.f32 %v6798_v5, %v2325_v25  ;;  %v2717_v30 = vmax.f32 %v2372_v15, 0.0  ;;  %v6422_v5 = vld [vmem:[%s7298_s3 + $0x270] ss:$8 sps:$4 sm:$0xff]  }
 0x1a0   :  { %3228 = vmatpush1.bf16.msra.mxu0 %v6338_v34  ;;  %v2712_v32 = vmax.f32 %v2368_v12, 0.0  ;;  %v6427_v34 = vld [vmem:[%s7298_s3 + $0x264] ss:$8 sps:$4 sm:$0xff]  }
 0x1a1   :  { %3271 = vmatpush1.bf16.msra.mxu1 %v6386_v45  ;;  %3229 = vmatprep.subr.bf16.mxu0 %v6343_v47  ;;  %v6425_v45 = vld [vmem:[%s7298_s3 + $0x260] ss:$8 sps:$4 sm:$0xff]   ;;  %v6430_v47 = vld [vmem:[%s7298_s3 + $0x254] ss:$8 sps:$4 sm:$0xff]  }
 0x1a2   :  { %3272 = vmatprep.subr.bf16.mxu1 %v6391_v35  ;;  %v2722_v33 = vpack.c.bf16 %v2717_v30, %v2712_v32  ;;  %v6428_v35 = vld [vmem:[%s7298_s3 + $0x250] ss:$8 sps:$4 sm:$0xff]  }
 0x1a4   :  { %3230 = vmatpush1.bf16.msra.mxu0 %v6341_v36  ;;  %v6433_v36 = vld [vmem:[%s7298_s3 + $0x244] ss:$8 sps:$4 sm:$0xff]  }
 0x1a5   :  { %3273 = vmatpush1.bf16.msra.mxu1 %v6389_v38  ;;  %3231 = vmatprep.subr.bf16.mxu0 %v6346_v39  ;;  %v6431_v38 = vld [vmem:[%s7298_s3 + $0x240] ss:$8 sps:$4 sm:$0xff]   ;;  %v6436_v39 = vld [vmem:[%s7298_s3 + $0x234] ss:$8 sps:$4 sm:$0xff]  }
 0x1a6   :  { %3274 = vmatprep.subr.bf16.mxu1 %v6394_v42  ;;  %v6434_v42 = vld [vmem:[%s7298_s3 + $0x230] ss:$8 sps:$4 sm:$0xff]  }
 0x1a8   :  { %3232 = vmatpush1.bf16.msra.mxu0 %v6344_v43  ;;  %v6439_v43 = vld [vmem:[%s7298_s3 + $0x224] ss:$8 sps:$4 sm:$0xff]  }
 0x1a9   :  { %3275 = vmatpush1.bf16.msra.mxu1 %v6392_v46  ;;  %3233 = vmatprep.subr.bf16.mxu0 %v6349_v48  ;;  %v6650_v46 = vmov 0   ;;  %v6437_v48 = vld [vmem:[%s7298_s3 + $0x220] ss:$8 sps:$4 sm:$0xff]  }
 0x1aa   :  { %3276 = vmatprep.subr.bf16.mxu1 %v6397_v50  ;;  %v6442_v50 = vld [vmem:[%s7298_s3 + $0x214] ss:$8 sps:$4 sm:$0xff]  }
 0x1ac   :  { %3234 = vmatpush1.bf16.msra.mxu0 %v6347_v51  ;;  %v6440_v51 = vld [vmem:[%s7298_s3 + $0x210] ss:$8 sps:$4 sm:$0xff]  }
 0x1ad   :  { %3277 = vmatpush1.bf16.msra.mxu1 %v6395_v52  ;;  %3235 = vmatprep.subr.bf16.mxu0 %v6352_v55  ;;  %v6445_v52 = vld [vmem:[%s7298_s3 + $0x204] ss:$8 sps:$4 sm:$0xff]   ;;  %v6443_v55 = vld [vmem:[%s7298_s3 + $0x200] ss:$8 sps:$4 sm:$0xff]   ;;  %s6653_s3 = smov 48  }
 0x1ae   :  { %3278 = vmatprep.subr.bf16.mxu1 %v6400_v56 }
 0x1b0   :  { %3236 = vmatpush2.bf16.msra.mxu0 %v6350_v57 }
 0x1b1   :  { %3279 = vmatpush2.bf16.msra.mxu1 %v6398_v58  ;;  %3237 = vmatprep.subr.bf16.mxu0 %v6355_v61  ;;  %v529_v58 = vsub.s32 3, %v6762_v37  ;;  %v525_v61 = vsub.s32 2, %v6762_v37 }
 0x1b2   :  { %3280 = vmatprep.subr.bf16.mxu1 %v6403_v62 }
 0x1b4   :  { %3238 = vmatpush2.bf16.msra.mxu0 %v6353_v63 }
 0x1b5   :  { %3281 = vmatpush2.bf16.msra.mxu1 %v6401_v0  ;;  %3239 = vmatprep.subr.bf16.mxu0 %v6358_v1  ;;  %v530_v0 = vrot.slane %v6769_v49, %v529_v58  ;;  %v526_v1 = vrot.slane %v6769_v49, %v525_v61 }
 0x1b6   :  { %3282 = vmatprep.subr.bf16.mxu1 %v6406_v2 }
 0x1b8   :  { %3240 = vmatpush2.bf16.msra.mxu0 %v6356_v53 }
 0x1b9   :  { %3283 = vmatpush2.bf16.msra.mxu1 %v6404_v54  ;;  %3241 = vmatprep.subr.bf16.mxu0 %v6361_v6 }
 0x1ba   :  { %3284 = vmatprep.subr.bf16.mxu1 %v6409_v7 }
 0x1bc   :  { %3242 = vmatpush2.bf16.msra.mxu0 %v6359_v8 }
 0x1bd   :  { %3285 = vmatpush2.bf16.msra.mxu1 %v6407_v9  ;;  %3243 = vmatprep.subr.bf16.mxu0 %v6364_v11 }
 0x1be   :  { %3286 = vmatprep.subr.bf16.mxu1 %v6412_v28 }
 0x1c0   :  { %3244 = vmatpush2.bf16.msra.mxu0 %v6362_v14 }
 0x1c1   :  { %3287 = vmatpush2.bf16.msra.mxu1 %v6410_v17  ;;  %3245 = vmatprep.subr.bf16.mxu0 %v6367_v19 }
 0x1c2   :  { %3288 = vmatprep.subr.bf16.mxu1 %v6415_v59 }
 0x1c4   :  { %3246 = vmatpush2.bf16.msra.mxu0 %v6365_v21 }
 0x1c5   :  { %3289 = vmatpush2.bf16.msra.mxu1 %v6413_v40  ;;  %3247 = vmatprep.subr.bf16.mxu0 %v6370_v24 }
 0x1c6   :  { %3290 = vmatprep.subr.bf16.mxu1 %v6418_v60 }
 0x1c8   :  { %3248 = vmatpush2.bf16.msra.mxu0 %v6368_v26 }
 0x1c9   :  { %3291 = vmatpush2.bf16.msra.mxu1 %v6416_v41  ;;  %3249 = vmatprep.subr.bf16.mxu0 %v6373_v27 }
 0x1ca   :  { %3292 = vmatprep.subr.bf16.mxu1 %v6421_v4 }
 0x1cc   :  { %3250 = vmatpush2.bf16.msra.mxu0 %v6371_v13 }
 0x1cd   :  { %3293 = vmatpush2.bf16.msra.mxu1 %v6419_v16  ;;  %3305 = vmatprep.subr.bf16.mxu0 %v6424_v31 }
 0x1cf   :  { %3252 = vmatmul.mubr.bf16.vlgmr.msra.gmra.mxu0 %v2722_v33  ;;  %v2410_v56 = vpop.f32.mrf.mxu0 }
 0x1d0   :  { %3306 = vmatpush1.bf16.msra.mxu0 %v6422_v5  ;;  %3337 = vmatprep.mubr.bf16.mxu0 %v6650_v46  ;;  %v2453_v57 = vpop.f32.mrf.mxu1  ;;  %v2411_v6 = vadd.f32 %v2410_v56, %v526_v1 }
 0x1d1   :  { %3307 = vmatprep.subr.bf16.mxu0 %v6427_v34  ;;  %v2412_v62 = vpop.f32.mrf.mxu0 }
 0x1d2   :  { %v2455_v63 = vpop.f32.mrf.mxu1  ;;  %v2413_v54 = vadd.f32 %v2412_v62, %v530_v0  ;;  %v2454_v14 = vadd.f32 %v2453_v57, %v2411_v6 }
 0x1d3   :  { %v2414_v2 = vpop.f32.mrf.mxu0 }
 0x1d4   :  { %3308 = vmatpush1.bf16.msra.mxu0 %v6425_v45  ;;  %v2457_v53 = vpop.f32.mrf.mxu1  ;;  %v2415_v9 = vadd.f32 %v2414_v2, %v526_v1  ;;  %v2456_v28 = vadd.f32 %v2455_v63, %v2413_v54  ;;  %v533_v45 = vsub.s32 4, %v6762_v37 }
 0x1d5   :  { %3309 = vmatprep.subr.bf16.mxu0 %v6430_v47  ;;  %v2416_v7 = vpop.f32.mrf.mxu0 }
 0x1d6   :  { %v2459_v8 = vpop.f32.mrf.mxu1  ;;  %v2417_v29 = vadd.f32 %v2416_v7, %v530_v0  ;;  %v2458_v19 = vadd.f32 %v2457_v53, %v2415_v9 }
 0x1d8   :  { %3310 = vmatpush1.bf16.msra.mxu0 %v6428_v35  ;;  %v2460_v22 = vadd.f32 %v2459_v8, %v2417_v29  ;;  %v2807_v29 = vld [vmem:[#allocation8] sm:$0x3] }
 0x1d9   :  { %3311 = vmatprep.subr.bf16.mxu0 %v6433_v36  ;;  %v534_v36 = vrot.slane %v6769_v49, %v533_v45 }
 0x1dc   :  { %3312 = vmatpush1.bf16.msra.mxu0 %v6431_v38 }
 0x1dd   :  { %3313 = vmatprep.subr.bf16.mxu0 %v6436_v39 }
 0x1e0   :  { %3314 = vmatpush1.bf16.msra.mxu0 %v6434_v42 }
 0x1e1   :  { %3315 = vmatprep.subr.bf16.mxu0 %v6439_v43 }
 0x1e4   :  { %3316 = vmatpush1.bf16.msra.mxu0 %v6437_v48 }
 0x1e5   :  { %3317 = vmatprep.subr.bf16.mxu0 %v6442_v50 }
 0x1e8   :  { %3318 = vmatpush1.bf16.msra.mxu0 %v6440_v51 }
 0x1e9   :  { %3319 = vmatprep.subr.bf16.mxu0 %v6445_v52 }
 0x1ec   :  { %3320 = vmatpush1.bf16.msra.mxu0 %v6443_v55 }
 0x20f   :  { %v2496_v10 = vpop.f32.mrf.mxu0 }
 0x210   :  { %v2539_v11 = vpop.f32.mrf.mxu1  ;;  %v2497_v20 = vadd.f32 %v2496_v10, %v2454_v14  ;;  %v7048_v14 = vrot.slane %v2807_v29, %v521_v44 }
 0x211   :  { %v2498_v17 = vpop.f32.mrf.mxu0 }
 0x212   :  { %v2541_v18 = vpop.f32.mrf.mxu1  ;;  %v2499_v59 = vadd.f32 %v2498_v17, %v2456_v28  ;;  %v2540_v41 = vadd.f32 %v2539_v11, %v2497_v20 }
 0x213   :  { %v2500_v21 = vpop.f32.mrf.mxu0 }
 0x214   :  { %v2543_v40 = vpop.f32.mrf.mxu1  ;;  %v2501_v23 = vadd.f32 %v2500_v21, %v2458_v19  ;;  %v2542_v60 = vadd.f32 %v2541_v18, %v2499_v59  ;;  %v2714_v16 = vmax.f32 %v2540_v41, 0.0  ;;  %v6651_v59 = vmov 0.0  }
 0x215   :  { %v2502_v24 = vpop.f32.mrf.mxu0  ;;  %5750 = vmatprep.subr.mxu1 %v6651_v59 }
 0x216   :  { %v2544_v25 = vadd.f32 %v2543_v40, %v2501_v23  ;;  %v2503_v26 = vadd.f32 %v2502_v24, %v2460_v22  ;;  %v2545_v15 = vpop.f32.mrf.mxu1  ;;  %v2715_v12 = vmax.f32 %v2542_v60, 0.0  ;;  %v2812_v22 = vrot.slane %v2807_v29, %v517_v3 }
 0x218   :  { %v2546_v27 = vadd.f32 %v2545_v15, %v2503_v26  ;;  %v2719_v4 = vmax.f32 %v2544_v25, 0.0 }
 0x21a   :  { %v2720_v13 = vmax.f32 %v2546_v27, 0.0  ;;  %v2724_v31 = vpack.c.bf16 %v2719_v4, %v2714_v16 }
 0x21c   :  { %v2725_v30 = vpack.c.bf16 %v2720_v13, %v2715_v12 }
 0x21e   :  { %3294 = vmatprep.mubr.bf16.mxu1 %v2725_v30 }
 0x21f   :  { %3295 = vmatmul.mubr.bf16.vlgmr.msra.gmra.mxu1 %v2724_v31 }
 0x220   :  { %5752 = vmatprep.mubr.msk.f32.mxu1 %vm6652_vm0, %v6651_v59 }
 0x22f   :  { %v5630_v32 = vpop.f32.mrf.mxu0 }
 0x230   :  { %v5652_v5 = vpop.f32.mrf.mxu1 }
 0x231   :  { %v5631_v33 = vpop.f32.mrf.mxu0 }
 0x232   :  { %v5653_v34 = vpop.f32.mrf.mxu1  ;;  %v5632_v38 = vadd.f32 %v5631_v33, %v5630_v32 }
 0x233   :  { %v5633_v47 = vpop.f32.mrf.mxu0  ;;  %v5654_v46 = vadd.f32 %v5653_v34, %v5652_v5 }
 0x234   :  { %v5655_v35 = vpop.f32.mrf.mxu1  ;;  %v2583_v43 = vadd.f32 %v5632_v38, %v534_v36 }
 0x235   :  { %v5634_v39 = vpop.f32.mrf.mxu0 }
 0x236   :  { %v5656_v42 = vpop.f32.mrf.mxu1  ;;  %v5635_v48 = vadd.f32 %v5634_v39, %v5633_v47  ;;  %v2624_v56 = vadd.f32 %v5654_v46, %v2583_v43 }
 0x237   :  { %v5657_v63 = vadd.f32 %v5656_v42, %v5655_v35 }
 0x238   :  { %v2586_v57 = vadd.f32 %v5635_v48, %v534_v36 }
 0x23a   :  { %v2627_v49 = vadd.f32 %v5657_v63, %v2586_v57 }
 0x24f   :  { %v5674_v50 = vpop.f32.mrf.mxu0 }
 0x250   :  { %v5696_v51 = vpop.f32.mrf.mxu1 }
 0x251   :  { %v5675_v52 = vpop.f32.mrf.mxu0 }
 0x252   :  { %v5697_v55 = vpop.f32.mrf.mxu1  ;;  %v5676_v58 = vadd.f32 %v5675_v52, %v5674_v50 }
 0x253   :  { %v5677_v61 = vpop.f32.mrf.mxu0  ;;  %v5698_v53 = vadd.f32 %v5697_v55, %v5696_v51 }
 0x254   :  { %v5699_v62 = vpop.f32.mrf.mxu1  ;;  %v2665_v0 = vadd.f32 %v5676_v58, %v2624_v56 }
 0x255   :  { %v5678_v1 = vpop.f32.mrf.mxu0 }
 0x256   :  { %v5700_v2 = vpop.f32.mrf.mxu1  ;;  %v5679_v54 = vadd.f32 %v5678_v1, %v5677_v61  ;;  %v2706_v6 = vadd.f32 %v5698_v53, %v2665_v0 }
 0x257   :  { %v5701_v8 = vadd.f32 %v5700_v2, %v5699_v62 }
 0x258   :  { %v2668_v7 = vadd.f32 %v5679_v54, %v2627_v49  ;;  %v2716_v10 = vmax.f32 %v2706_v6, 0.0 }
 0x25a   :  { %v2709_v9 = vadd.f32 %v5701_v8, %v2668_v7 }
 0x25c   :  { %v2721_v11 = vmax.f32 %v2709_v9, 0.0 }
 0x25e   :  { %v2726_v28 = vpack.c.bf16 %v2721_v11, %v2716_v10 }
 0x260   :  { %3338 = vmatmul.mubr.bf16.vlgmr.msra.gmra.mxu0 %v2726_v28 }
 0x28f   :  { %v3253_v17 = vpop.f32.mrf.mxu0 }
 0x290   :  { %v3254_v44 = vadd.f32 %v3253_v17, %v2812_v22 }
 0x291   :  { %v3255_v18 = vpop.f32.mrf.mxu0 }
 0x292   :  { %v3256_v19 = vadd.f32 %v3255_v18, %v7048_v14 }
 0x293   :  { %v3257_v23 = vpop.f32.mrf.mxu0 }
 0x294   :  { %v3258_v41 = vadd.f32 %v3257_v23, %v2812_v22 }
 0x295   :  { %v7056_v24 = vpop.f32.mrf.mxu0 }
 0x296   :  { %v3260_v62 = vadd.f32 %v7056_v24, %v7048_v14 }
 0x2df   :  { %v3296_v20 = vpop.f32.mrf.mxu1 }
 0x2e0   :  { %v3297_v60 = vadd.f32 %v3296_v20, %v3254_v44 }
 0x2e1   :  { %v3298_v21 = vpop.f32.mrf.mxu1 }
 0x2e2   :  { %v3299_v40 = vadd.f32 %v3298_v21, %v3256_v19 }
 0x2e3   :  { %v3300_v25 = vpop.f32.mrf.mxu1 }
 0x2e4   :  { %v3301_v4 = vadd.f32 %v3300_v25, %v3258_v41 }
 0x2e5   :  { %v3302_v30 = vpop.f32.mrf.mxu1 }
 0x2e6   :  { %v3303_v1 = vadd.f32 %v3302_v30, %v3260_v62 }
 0x320   :  { %v3339_v26 = vpop.f32.mrf.mxu0 }
 0x321   :  { %v7058_v15 = vadd.f32 %v3339_v26, %v3297_v60 }
 0x322   :  { %v3341_v27 = vpop.f32.mrf.mxu0 }
 0x323   :  { %v7060_v12 = vadd.f32 %v3341_v27, %v3299_v40  ;;  %3359 = vrot.lane.b32.xlu0 %v7058_v15, %s6646_s20 }
 0x324   :  { %v3343_v13 = vpop.f32.mrf.mxu0 }
 0x325   :  { %v7064_v37 = vadd.f32 %v3343_v13, %v3301_v4 }
 0x326   :  { %v3345_v63 = vpop.f32.mrf.mxu0 }
 0x327   :  { %3437 = vrot.lane.b32.xlu0 %v7064_v37, %s6646_s20  ;;  %s6654_s20 = smov 112   ;;  %v7096_v49 = vadd.f32 %v3345_v63, %v3303_v1 }
 0x395   :  { %v3360_v3 = vpop.permute.xlu0 %3359 }
 0x396   :  { %5751 = vmatpush3.xpose.msk.msra.mxu1 %vm3361_vm1, %v3360_v3 }
 0x397   :  { %5755 = vmatprep.subr.mxu1 %v6651_v59 }
 0x399   :  { %5753 = vmatmul.mubr.msk.f32.vlgmr.msra.gmra.mxu1 %vm3361_vm1, %v7058_v15  ;;  %v3438_v16 = vpop.permute.xlu0 %3437 }
 0x39a   :  { %5756 = vmatpush3.xpose.msk.msra.mxu1 %vm3361_vm1, %v3438_v16  ;;  %5757 = vmatprep.mubr.msk.f32.mxu1 %vm6652_vm0, %v6651_v59 }
 0x39b   :  { %5760 = vmatprep.subr.mxu1 %v6651_v59 }
 0x39d   :  { %5758 = vmatmul.mubr.msk.f32.vlgmr.msra.gmra.mxu1 %vm3361_vm1, %v7064_v37 }
 0x39e   :  { %5761 = vmatpush3.msra.mxu1 %v7060_v12  ;;  %5762 = vmatprep.mubr.msk.f32.mxu1 %vm6652_vm0, %v6651_v59 }
 0x39f   :  { %5765 = vmatprep.subr.mxu1 %v6651_v59 }
 0x459   :  { %v3432_v31 = vpop.f32.mrf.mxu1 }
 0x45a   :  { %v3513_v32 = vmul.f32 0.25, %v3432_v31 }
 0x45b   :  { %v5754_v5 = vpop.f32.mrf.mxu1 }
 0x45c   :  { %v3516_v33 = vsel %vm3515_vm2, %v3513_v32, -inf }
 0x45d   :  { %3517 = vmax.xlane.f32.xlu1 %v3516_v33  ;;  %v3509_v34 = vpop.f32.mrf.mxu1 }
 0x45e   :  { %v3514_v45 = vmul.f32 0.25, %v3509_v34  ;;  %v3348_v34 = vld [vmem:[%s7300_s5] sm:$0xff] }
 0x45f   :  { %v5759_v47 = vpop.f32.mrf.mxu1 }
 0x460   :  { %v3519_v35 = vsel %vm3515_vm2, %v3514_v45, -inf }
 0x461   :  { %3520 = vmax.xlane.f32.xlu1 %v3519_v35 }
 0x472   :  { %3686 = vrot.lane.b32.xlu1 %v7058_v15, %s6653_s3 }
 0x476   :  { %3684 = vrot.lane.b32.xlu1 %v7058_v15, %s6654_s20 }
 0x47a   :  { %3764 = vrot.lane.b32.xlu1 %v7064_v37, %s6653_s3 }
 0x4e6   :  { %v3518_v36 = vpop.xlane.xlu1 %3517 }
 0x4e7   :  { %v3522_v38 = vsub.f32 %v3513_v32, %v3518_v36  ;;  %v3349_v32 = vld [vmem:[%s7300_s5 + $0x8] sm:$0xff]  ;;  %v3351_v36 = vld [vmem:[%s7300_s5 + $0x18] sm:$0xff] }
 0x4e8   :  { %5790 = vmatprep.subr.mxu0 %v3351_v36 }
 0x4e9   :  { %v3524_v39 = vmul.f32 1.442695, %v3522_v38  ;;  %5791 = vmatpush3.msra.mxu0 %v3351_v36  ;;  %v3350_v38 = vld [vmem:[%s7300_s5 + $0x10] sm:$0xff] }
 0x4ea   :  { %v3521_v42 = vpop.xlane.xlu1 %3520  ;;  %5792 = vmatprep.subr.mxu0 %v3350_v38 }
 0x4eb   :  { %6446 = vpow2.f32 %v3524_v39  ;;  %v3523_v43 = vsub.f32 %v3514_v45, %v3521_v42  ;;  %5793 = vmatpush3.msra.mxu0 %v3350_v38 }
 0x4ec   :  { %5804 = vmatprep.subr.mxu0 %v6651_v59 }
 0x4ed   :  { %v3526_v46 = vmul.f32 1.442695, %v3523_v43 }
 0x4ee   :  { %v3687_v55 = vpop.permute.xlu1 %3686 }
 0x4ef   :  { %6448 = vpow2.f32 %v3526_v46 }
 0x4f2   :  { %v3685_v56 = vpop.permute.xlu1 %3684 }
 0x4f6   :  { %v3765_v57 = vpop.permute.xlu1 %3764 }
 0x4f8   :  { %v6447_v48 = vpop.eup %6446 }
 0x4f9   :  { %v3528_v50 = vsel %vm3515_vm2, %v6447_v48, 0.0 }
 0x4fa   :  { %3529 = vadd.xlane.f32.xlu0 %v3528_v50 }
 0x4fc   :  { %v6449_v51 = vpop.eup %6448 }
 0x4fd   :  { %v3531_v52 = vsel %vm3515_vm2, %v6449_v51, 0.0 }
 0x4fe   :  { %3532 = vadd.xlane.f32.xlu1 %v3531_v52 }
 0x50f   :  { %3762 = vrot.lane.b32.xlu1 %v7064_v37, %s6654_s20 }
 0x583   :  { %v3530_v58 = vpop.xlane.xlu0 %3529 }
 0x584   :  { %6450 = vrcp.f32 %v3530_v58 }
 0x587   :  { %v3533_v61 = vpop.xlane.xlu1 %3532 }
 0x588   :  { %6452 = vrcp.f32 %v3533_v61 }
 0x58b   :  { %v3763_v6 = vpop.permute.xlu1 %3762 }
 0x591   :  { %v6451_v0 = vpop.eup %6450 }
 0x592   :  { %v3536_v2 = vmul.f32 %v6451_v0, %v6447_v48 }
 0x594   :  { %5763 = vmatmul.mubr.msk.f32.vlgmr.msra.gmra.mxu1 %vm3515_vm2, %v3536_v2 }
 0x595   :  { %v6453_v53 = vpop.eup %6452  ;;  %5766 = vmatpush3.msra.mxu1 %v7096_v49  ;;  %5767 = vmatprep.mubr.msk.f32.mxu1 %vm6652_vm0, %v6651_v59 }
 0x596   :  { %5770 = vmatprep.subr.mxu1 %v6651_v59  ;;  %v3537_v54 = vmul.f32 %v6453_v53, %v6449_v51 }
 0x598   :  { %5768 = vmatmul.mubr.msk.f32.vlgmr.msra.gmra.mxu1 %vm3515_vm2, %v3537_v54 }
 0x599   :  { %5771 = vmatpush3.xpose.msk.msra.mxu1 %vm3361_vm1, %v3687_v55  ;;  %5772 = vmatprep.mubr.msk.f32.mxu1 %vm6652_vm0, %v6651_v59 }
 0x59a   :  { %5775 = vmatprep.subr.mxu1 %v6651_v59 }
 0x59c   :  { %5773 = vmatmul.mubr.msk.f32.vlgmr.msra.gmra.mxu1 %vm3361_vm1, %v3685_v56 }
 0x59d   :  { %5776 = vmatpush3.xpose.msk.msra.mxu1 %vm3361_vm1, %v3765_v57  ;;  %5777 = vmatprep.mubr.msk.f32.mxu1 %vm6652_vm0, %v6651_v59 }
 0x59e   :  { %5780 = vmatprep.subr.mxu1 %v6651_v59 }
 0x5a0   :  { %5778 = vmatmul.mubr.msk.f32.vlgmr.msra.gmra.mxu1 %vm3361_vm1, %v3763_v6 }
 0x5a1   :  { %5782 = vmatprep.mubr.msk.f32.mxu1 %vm6652_vm0, %v6651_v59 }
 0x654   :  { %v7116_v7 = vpop.f32.mrf.mxu1 }
 0x656   :  { %v5764_v8 = vpop.f32.mrf.mxu1 }
 0x658   :  { %v7118_v9 = vpop.f32.mrf.mxu1 }
 0x65a   :  { %v5769_v10 = vpop.f32.mrf.mxu1 }
 0x65c   :  { %v3758_v11 = vpop.f32.mrf.mxu1 }
 0x65d   :  { %v3840_v28 = vmul.f32 0.25, %v3758_v11 }
 0x65e   :  { %v5774_v29 = vpop.f32.mrf.mxu1 }
 0x65f   :  { %v3842_v14 = vsel %vm3515_vm2, %v3840_v28, -inf }
 0x660   :  { %3843 = vmax.xlane.f32.xlu0 %v3842_v14  ;;  %v3836_v17 = vpop.f32.mrf.mxu1 }
 0x661   :  { %v3841_v18 = vmul.f32 0.25, %v3836_v17 }
 0x662   :  { %v5779_v19 = vpop.f32.mrf.mxu1 }
 0x663   :  { %v3845_v20 = vsel %vm3515_vm2, %v3841_v18, -inf }
 0x664   :  { %3846 = vmax.xlane.f32.xlu1 %v3845_v20 }
 0x675   :  { %4260 = vrot.lane.b32.xlu1 %v7064_v37, %s6655_s2 }
 0x676   :  { %3865 = vrot.lane.b32.xlu0 %v7060_v12, %s6654_s20 }
 0x6e9   :  { %v3844_v21 = vpop.xlane.xlu0 %3843 }
 0x6ea   :  { %v3848_v40 = vsub.f32 %v3840_v28, %v3844_v21 }
 0x6ec   :  { %v3850_v22 = vmul.f32 1.442695, %v3848_v40 }
 0x6ed   :  { %v3866_v23 = vpop.permute.xlu0 %3865  ;;  %v3847_v44 = vpop.xlane.xlu1 %3846 }
 0x6ee   :  { %6454 = vpow2.f32 %v3850_v22  ;;  %v3849_v24 = vsub.f32 %v3841_v18, %v3847_v44  ;;  %5781 = vmatpush3.msra.mxu1 %v3866_v23 }
 0x6ef   :  { %5785 = vmatprep.subr.mxu1 %v6651_v59 }
 0x6f0   :  { %v3852_v60 = vmul.f32 1.442695, %v3849_v24 }
 0x6f1   :  { %v4261_v47 = vpop.permute.xlu1 %4260 }
 0x6f2   :  { %6456 = vpow2.f32 %v3852_v60 }
 0x6fb   :  { %v6455_v25 = vpop.eup %6454 }
 0x6fc   :  { %v3854_v26 = vsel %vm3515_vm2, %v6455_v25, 0.0 }
 0x6fd   :  { %3855 = vadd.xlane.f32.xlu0 %v3854_v26 }
 0x6ff   :  { %v6457_v41 = vpop.eup %6456 }
 0x700   :  { %v3857_v27 = vsel %vm3515_vm2, %v6457_v41, 0.0 }
 0x701   :  { %3858 = vadd.xlane.f32.xlu0 %v3857_v27  ;;  %v3352_v27 = vld [vmem:[%s7300_s5 + $0x20] sm:$0xff] }
 0x717   :  { %3942 = vrot.lane.b32.xlu0 %v7096_v49, %s6654_s20 }
 0x71b   :  { %4182 = vrot.lane.b32.xlu0 %v7058_v15, %s6655_s2 }
 0x71f   :  { %4180 = vrot.lane.b32.xlu0 %v7058_v15, %s6656_s15 }
 0x723   :  { %4258 = vrot.lane.b32.xlu0 %v7064_v37, %s6656_s15 }
 0x786   :  { %v3856_v4 = vpop.xlane.xlu0 %3855 }
 0x787   :  { %6458 = vrcp.f32 %v3856_v4 }
 0x78a   :  { %v3859_v13 = vpop.xlane.xlu0 %3858 }
 0x78b   :  { %6460 = vrcp.f32 %v3859_v13 }
 0x78e   :  { %v3943_v3 = vpop.permute.xlu0 %3942 }
 0x792   :  { %v4183_v31 = vpop.permute.xlu0 %4182 }
 0x794   :  { %v6459_v16 = vpop.eup %6458 }
 0x795   :  { %v3862_v30 = vmul.f32 %v6459_v16, %v6455_v25 }
 0x796   :  { %v4181_v45 = vpop.permute.xlu0 %4180 }
 0x797   :  { %5783 = vmatmul.mubr.msk.f32.vlgmr.msra.gmra.mxu1 %vm3515_vm2, %v3862_v30 }
 0x798   :  { %v6461_v5 = vpop.eup %6460  ;;  %5786 = vmatpush3.msra.mxu1 %v3943_v3  ;;  %5787 = vmatprep.mubr.msk.f32.mxu1 %vm6652_vm0, %v6651_v59 }
 0x799   :  { %5797 = vmatprep.subr.mxu1 %v3349_v32  ;;  %v3863_v33 = vmul.f32 %v6461_v5, %v6457_v41 }
 0x79a   :  { %v4259_v35 = vpop.permute.xlu0 %4258 }
 0x79b   :  { %5788 = vmatmul.mubr.msk.f32.vlgmr.msra.gmra.mxu1 %vm3515_vm2, %v3863_v33 }
 0x79c   :  { %5798 = vmatpush3.msra.mxu1 %v3349_v32  ;;  %5801 = vmatprep.mubr.msk.f32.mxu1 %vm3361_vm1, %v7116_v7 }
 0x79d   :  { %5799 = vmatprep.subr.mxu1 %v3348_v34 }
 0x79e   :  { %5800 = vmatpush3.msra.mxu1 %v3348_v34 }
 0x79f   :  { %5809 = vmatprep.subr.mxu1 %v6651_v59  ;;  %5802 = vmatmul.mubr.msk.f32.vlgmr.msra.gmra.mxu1 %vm3361_vm1, %v7118_v9 }
 0x7a0   :  { %5810 = vmatpush3.xpose.msk.msra.mxu1 %vm3361_vm1, %v4261_v47  ;;  %5811 = vmatprep.mubr.msk.f32.mxu1 %vm6652_vm0, %v6651_v59 }
 0x7a1   :  { %5819 = vmatprep.subr.mxu1 %v6651_v59 }
 0x7a3   :  { %5812 = vmatmul.mubr.msk.f32.vlgmr.msra.gmra.mxu1 %vm3361_vm1, %v4259_v35 }
 0x7a4   :  { %5821 = vmatprep.mubr.msk.f32.mxu1 %vm6652_vm0, %v6651_v59 }
 0x857   :  { %v7166_v39 = vpop.f32.mrf.mxu1 }
 0x858   :  { %5794 = vmatprep.mubr.msk.f32.mxu0 %vm3361_vm1, %v7166_v39 }
 0x859   :  { %v5784_v42 = vpop.f32.mrf.mxu1 }
 0x85b   :  { %v7170_v43 = vpop.f32.mrf.mxu1 }
 0x85c   :  { %5795 = vmatmul.mubr.msk.f32.vlgmr.msra.gmra.mxu0 %vm3361_vm1, %v7170_v43 }
 0x85d   :  { %5805 = vmatpush3.xpose.msk.msra.mxu0 %vm3361_vm1, %v4183_v31  ;;  %v5789_v46 = vpop.f32.mrf.mxu1  ;;  %5806 = vmatprep.mubr.msk.f32.mxu0 %vm6652_vm0, %v6651_v59 }
 0x85e   :  { %5814 = vmatprep.subr.mxu0 %v6651_v59 }
 0x85f   :  { %v7178_v48 = vpop.f32.mrf.mxu1 }
 0x860   :  { %5807 = vmatmul.mubr.msk.f32.vlgmr.msra.gmra.mxu0 %vm3361_vm1, %v4181_v45 }
 0x861   :  { %v7181_v50 = vpop.f32.mrf.mxu1  ;;  %5816 = vmatprep.mubr.msk.f32.mxu0 %vm6652_vm0, %v6651_v59 }
 0x863   :  { %v4332_v51 = vpop.f32.mrf.mxu1 }
 0x864   :  { %v4337_v52 = vmul.f32 0.25, %v4332_v51 }
 0x865   :  { %v5813_v55 = vpop.f32.mrf.mxu1 }
 0x866   :  { %v4341_v56 = vsel %vm3515_vm2, %v4337_v52, -inf }
 0x867   :  { %4342 = vmax.xlane.f32.xlu1 %v4341_v56 }
 0x878   :  { %4436 = vrot.lane.b32.xlu1 %v7096_v49, %s6656_s15 }
 0x87c   :  { %4597 = vrot.lane.b32.xlu1 %v7058_v15, %s6657_s22 }
 0x880   :  { %4595 = vrot.lane.b32.xlu1 %v7058_v15, %s6658_s23 }
 0x8f0   :  { %v4343_v57 = vpop.xlane.xlu1 %4342 }
 0x8f1   :  { %v4345_v61 = vsub.f32 %v4337_v52, %v4343_v57 }
 0x8f3   :  { %v4348_v62 = vmul.f32 1.442695, %v4345_v61 }
 0x8f4   :  { %v4437_v58 = vpop.permute.xlu1 %4436 }
 0x8f5   :  { %5820 = vmatpush3.msra.mxu1 %v4437_v58  ;;  %6462 = vpow2.f32 %v4348_v62 }
 0x8f6   :  { %5831 = vmatprep.subr.mxu1 %v6651_v59 }
 0x8f8   :  { %v4598_v17 = vpop.permute.xlu1 %4597 }
 0x8fc   :  { %v4596_v20 = vpop.permute.xlu1 %4595 }
 0x902   :  { %v6463_v6 = vpop.eup %6462 }
 0x903   :  { %v4353_v15 = vsel %vm3515_vm2, %v6463_v6, 0.0 }
 0x91c   :  { %v7193_v63 = vpop.f32.mrf.mxu0 }
 0x91d   :  { %v4177_v5 = vadd.f32 %v7178_v48, %v7193_v63  ;;  %v3354_v63 = vld [vmem:[%s7300_s5 + $0x30] sm:$0xff] }
 0x91e   :  { %v7195_v0 = vpop.f32.mrf.mxu0 }
 0x91f   :  { %v4172_v34 = vadd.f32 %v7181_v50, %v7195_v0 }
 0x920   :  { %v4254_v1 = vpop.f32.mrf.mxu0 }
 0x921   :  { %v4336_v2 = vmul.f32 0.25, %v4254_v1 }
 0x922   :  { %v5808_v53 = vpop.f32.mrf.mxu0 }
 0x923   :  { %v4338_v54 = vsel %vm3515_vm2, %v4336_v2, -inf }
 0x924   :  { %4339 = vmax.xlane.f32.xlu0 %v4338_v54 }
 0x928   :  { %4354 = vadd.xlane.f32.xlu0 %v4353_v15 }
 0x9ad   :  { %v4340_v8 = vpop.xlane.xlu0 %4339 }
 0x9ae   :  { %v4344_v10 = vsub.f32 %v4336_v2, %v4340_v8  ;;  %v5612_v8 = vld [vmem:[#allocation10] ss:$0 sm:$0xff] }
 0x9b0   :  { %v4346_v11 = vmul.f32 1.442695, %v4344_v10 }
 0x9b1   :  { %v4355_v28 = vpop.xlane.xlu0 %4354 }
 0x9b2   :  { %6464 = vpow2.f32 %v4346_v11 }
 0x9b3   :  { %6466 = vrcp.f32 %v4355_v28 }
 0x9bf   :  { %v6465_v29 = vpop.eup %6464 }
 0x9c0   :  { %v6467_v14 = vpop.eup %6466  ;;  %v4350_v18 = vsel %vm3515_vm2, %v6465_v29, 0.0 }
 0x9c1   :  { %4351 = vadd.xlane.f32.xlu0 %v4350_v18  ;;  %v4359_v19 = vmul.f32 %v6467_v14, %v6463_v6  ;;  %v5613_v18 = vld [vmem:[#allocation11] ss:$0 sm:$0xff] }
 0x9c3   :  { %5822 = vmatmul.mubr.msk.f32.vlgmr.msra.gmra.mxu1 %vm3515_vm2, %v4359_v19 }
 0x9c4   :  { %5832 = vmatpush3.xpose.msk.msra.mxu1 %vm3361_vm1, %v4598_v17  ;;  %5833 = vmatprep.mubr.msk.f32.mxu1 %vm6652_vm0, %v6651_v59 }
 0x9c5   :  { %5841 = vmatprep.subr.mxu1 %v6651_v59 }
 0x9c7   :  { %5834 = vmatmul.mubr.msk.f32.vlgmr.msra.gmra.mxu1 %vm3361_vm1, %v4596_v20 }
 0x9c8   :  { %5843 = vmatprep.mubr.msk.f32.mxu1 %vm6652_vm0, %v6651_v59 }
 0x9d7   :  { %4360 = vrot.lane.b32.xlu0 %v7060_v12, %s6656_s15 }
 0x9db   :  { %4675 = vrot.lane.b32.xlu0 %v7064_v37, %s6657_s22 }
 0x9df   :  { %4673 = vrot.lane.b32.xlu0 %v7064_v37, %s6658_s23  ;;  %v3353_v37 = vld [vmem:[%s7300_s5 + $0x28] sm:$0xff] }
 0xa4a   :  { %v4352_v21 = vpop.xlane.xlu0 %4351 }
 0xa4b   :  { %6468 = vrcp.f32 %v4352_v21 }
 0xa4e   :  { %v4361_v40 = vpop.permute.xlu0 %4360 }
 0xa4f   :  { %5815 = vmatpush3.msra.mxu0 %v4361_v40 }
 0xa50   :  { %5824 = vmatprep.subr.mxu0 %v3353_v37 }
 0xa52   :  { %v4676_v4 = vpop.permute.xlu0 %4675 }
 0xa56   :  { %v4674_v16 = vpop.permute.xlu0 %4673 }
 0xa58   :  { %v6469_v22 = vpop.eup %6468 }
 0xa59   :  { %v4358_v23 = vmul.f32 %v6469_v22, %v6465_v29 }
 0xa5b   :  { %5817 = vmatmul.mubr.msk.f32.vlgmr.msra.gmra.mxu0 %vm3515_vm2, %v4358_v23 }
 0xa5c   :  { %5825 = vmatpush3.msra.mxu0 %v3353_v37 }
 0xa5d   :  { %5826 = vmatprep.subr.mxu0 %v3352_v27 }
 0xa5e   :  { %5827 = vmatpush3.msra.mxu0 %v3352_v27 }
 0xa5f   :  { %5836 = vmatprep.subr.mxu0 %v6651_v59 }
 0xa83   :  { %v7215_v44 = vpop.f32.mrf.mxu1 }
 0xa85   :  { %v5823_v24 = vpop.f32.mrf.mxu1 }
 0xa87   :  { %v4669_v60 = vpop.f32.mrf.mxu1 }
 0xa88   :  { %v4751_v25 = vmul.f32 0.25, %v4669_v60 }
 0xa89   :  { %v5835_v26 = vpop.f32.mrf.mxu1 }
 0xa8a   :  { %v4753_v41 = vsel %vm3515_vm2, %v4751_v25, -inf }
 0xa8b   :  { %4754 = vmax.xlane.f32.xlu1 %v4753_v41 }
 0xb14   :  { %v4755_v30 = vpop.xlane.xlu1 %4754 }
 0xb15   :  { %v4759_v31 = vsub.f32 %v4751_v25, %v4755_v30 }
 0xb17   :  { %v4761_v32 = vmul.f32 1.442695, %v4759_v31 }
 0xb19   :  { %6470 = vpow2.f32 %v4761_v32 }
 0xb1b   :  { %v7225_v13 = vpop.f32.mrf.mxu0 }
 0xb1c   :  { %5828 = vmatprep.mubr.msk.f32.mxu0 %vm3361_vm1, %v7225_v13 }
 0xb1d   :  { %v5818_v3 = vpop.f32.mrf.mxu0  ;;  %5829 = vmatmul.mubr.msk.f32.vlgmr.msra.gmra.mxu0 %vm3361_vm1, %v7215_v44 }
 0xb1e   :  { %5837 = vmatpush3.xpose.msk.msra.mxu0 %vm3361_vm1, %v4676_v4  ;;  %5838 = vmatprep.mubr.msk.f32.mxu0 %vm6652_vm0, %v6651_v59 }
 0xb1f   :  { %5846 = vmatprep.subr.mxu0 %v6651_v59 }
 0xb21   :  { %5839 = vmatmul.mubr.msk.f32.vlgmr.msra.gmra.mxu0 %vm3361_vm1, %v4674_v16 }
 0xb22   :  { %5848 = vmatprep.mubr.msk.f32.mxu0 %vm6652_vm0, %v6651_v59 }
 0xb26   :  { %v6471_v59 = vpop.eup %6470 }
 0xb27   :  { %v4765_v51 = vsel %vm3515_vm2, %v6471_v59, 0.0 }
 0xbdd   :  { %v5830_v33 = vpop.f32.mrf.mxu0 }
 0xbde   :  { %v4594_v45 = vadd.f32 %v5830_v33, %v4177_v5 }
 0xbdf   :  { %v4584_v47 = vpop.f32.mrf.mxu0 }
 0xbe0   :  { %v4593_v35 = vadd.f32 %v4584_v47, %v4172_v34 }
 0xbe1   :  { %v4747_v36 = vpop.f32.mrf.mxu0 }
 0xbe2   :  { %v4752_v38 = vmul.f32 0.25, %v4747_v36 }
 0xbe3   :  { %v5840_v42 = vpop.f32.mrf.mxu0 }
 0xbe4   :  { %v4756_v46 = vsel %vm3515_vm2, %v4752_v38, -inf }
 0xbe5   :  { %4757 = vmax.xlane.f32.xlu0 %v4756_v46 }
 0xbe9   :  { %4766 = vadd.xlane.f32.xlu0 %v4765_v51 }
 0xbff   :  { %4775 = vrot.lane.b32.xlu0 %v7060_v12, %s6658_s23  ;;  %v3355_v12 = vld [vmem:[%s7300_s5 + $0x38] sm:$0xff]  ;;  %s6659_s5 = smov [#allocation13]  }
 0xc00   :  { %s5168_s0 = sshll.u32 %s6659_s5, 4  ;;  %s5169_s0 = int_to_ptr.vmem [resolvable:$true] %s5168_s0 }
 0xc01   :  { %s6610_s9 = scalar_lea.vmem %s5169_s0, 32  ;;  %p6615_p3 = scmp.lt.s32.totalorder %s5169_s0, %s5169_s0 }
 0xc02   :  { %p6611_p2 = scmp.ne.s32.totalorder %s5169_s0, %s6610_s9  ;;  %p6616_p4 = scmp.lt.s32.totalorder %s6610_s9, %s6610_s9 }
 0xc04   :  { %p6617_p5 = por %p6616_p4, %p6615_p3 }
 0xc06   :  { %p6618_p6 = pnand %p6617_p5, %p6611_p2 }
 0xc6e   :  { %v4758_v48 = vpop.xlane.xlu0 %4757 }
 0xc6f   :  { %v4760_v52 = vsub.f32 %v4752_v38, %v4758_v48 }
 0xc71   :  { %v4763_v55 = vmul.f32 1.442695, %v4760_v52 }
 0xc72   :  { %v4767_v50 = vpop.xlane.xlu0 %4766 }
 0xc73   :  { %6472 = vpow2.f32 %v4763_v55 }
 0xc74   :  { %6474 = vrcp.f32 %v4767_v50 }
 0xc76   :  { %v4776_v56 = vpop.permute.xlu0 %4775 }
 0xc77   :  { %5842 = vmatpush3.msra.mxu1 %v4776_v56 }
 0xc78   :  { %5851 = vmatprep.subr.mxu1 %v3355_v12 }
 0xc80   :  { %v6473_v57 = vpop.eup %6472 }
 0xc81   :  { %v6475_v58 = vpop.eup %6474  ;;  %v4768_v61 = vsel %vm3515_vm2, %v6473_v57, 0.0 }
 0xc82   :  { %4769 = vadd.xlane.f32.xlu1 %v4768_v61  ;;  %v4773_v62 = vmul.f32 %v6475_v58, %v6471_v59 }
 0xc84   :  { %5844 = vmatmul.mubr.msk.f32.vlgmr.msra.gmra.mxu1 %vm3515_vm2, %v4773_v62 }
 0xc85   :  { %5852 = vmatpush3.msra.mxu1 %v3355_v12 }
 0xc86   :  { %5853 = vmatprep.subr.mxu1 %v3354_v63 }
 0xc87   :  { %5854 = vmatpush3.msra.mxu1 %v3354_v63 }
 0xc93   :  { %4851 = vrot.lane.b32.xlu1 %v7096_v49, %s6658_s23 }
 0xd0b   :  { %v4770_v0 = vpop.xlane.xlu1 %4769 }
 0xd0c   :  { %6476 = vrcp.f32 %v4770_v0 }
 0xd0f   :  { %v4852_v1 = vpop.permute.xlu1 %4851 }
 0xd10   :  { %5847 = vmatpush3.msra.mxu0 %v4852_v1 }
 0xd19   :  { %v6477_v2 = vpop.eup %6476 }
 0xd1a   :  { %v4774_v53 = vmul.f32 %v6477_v2, %v6473_v57 }
 0xd1c   :  { %5849 = vmatmul.mubr.msk.f32.vlgmr.msra.gmra.mxu0 %vm3515_vm2, %v4774_v53 }
 0xd44   :  { %v7257_v49 = vpop.f32.mrf.mxu1 }
 0xd45   :  { %5855 = vmatprep.mubr.msk.f32.mxu1 %vm3361_vm1, %v7257_v49 }
 0xd46   :  { %v5845_v54 = vpop.f32.mrf.mxu1 }
 0xddc   :  { %v7261_v6 = vpop.f32.mrf.mxu0 }
 0xddd   :  { %5856 = vmatmul.mubr.msk.f32.vlgmr.msra.gmra.mxu1 %vm3361_vm1, %v7261_v6 }
 0xdde   :  { %v5850_v15 = vpop.f32.mrf.mxu0 }
 0xe9d   :  { %v5857_v10 = vpop.f32.mrf.mxu1 }
 0xe9e   :  { %v5009_v11 = vadd.f32 %v5857_v10, %v4594_v45 }
 0xe9f   :  { %v4999_v28 = vpop.f32.mrf.mxu1 }
 0xea0   :  { %v5017_v29 = vadd.f32 %v5612_v8, %v5009_v11  ;;  %v5008_v14 = vadd.f32 %v4999_v28, %v4593_v35 }
 0xea2   :  { %6478 = vtanh.f32 %v5017_v29  ;;  %v5016_v17 = vadd.f32 %v5612_v8, %v5008_v14 }
 0xea4   :  { %6480 = vtanh.f32 %v5016_v17 }
 0xeaf   :  { %v6479_v19 = vpop.eup %6478 }
 0xeb0   :  { %v5027_v20 = vmul.f32 %v6479_v19, %v5613_v18 }
 0xeb1   :  { %v6481_v21 = vpop.eup %6480 }
 0xeb2   :  { %v5032_v40 = vsel %vm5028_vm3, %v5027_v20, 0.0  ;;  %v5026_v22 = vmul.f32 %v6481_v21, %v5613_v18 }
 0xeb3   :  { %5033 = vadd.xlane.f32.xlu0 %v5032_v40 }
 0xeb4   :  { %v5029_v23 = vsel %vm5028_vm3, %v5026_v22, 0.0 }
 0xeb5   :  { %5030 = vadd.xlane.f32.xlu1 %v5029_v23 }
 0xf3c   :  { %v5034_v24 = vpop.xlane.xlu0 %5033 }
 0xf3d   :  { %v5041_v60 = vrot.slane %v5034_v24, 4 }
 0xf3e   :  { %v5031_v25 = vpop.xlane.xlu1 %5030 }
 0xf3f   :  { %v5042_v26 = vmax.f32 %v5034_v24, %v5041_v60  ;;  %v5035_v41 = vrot.slane %v5031_v25, 4 }
 0xf41   :  { %v5043_v37 = vrot.slane %v5042_v26, 2  ;;  %v5036_v27 = vmax.f32 %v5031_v25, %v5035_v41 }
 0xf43   :  { %v5044_v4 = vmax.f32 %v5042_v26, %v5043_v37  ;;  %v5037_v3 = vrot.slane %v5036_v27, 2 }
 0xf45   :  { %v5045_v16 = vrot.slane %v5044_v4, 1  ;;  %v5038_v30 = vmax.f32 %v5036_v27, %v5037_v3 }
 0xf47   :  { %v5046_v31 = vmax.f32 %v5044_v4, %v5045_v16  ;;  %v5039_v32 = vrot.slane %v5038_v30, 1 }
 0xf49   :  { %v5048_v5 = vsub.f32 %v5034_v24, %v5046_v31  ;;  %v5040_v33 = vmax.f32 %v5038_v30, %v5039_v32 }
 0xf4b   :  { %v5051_v34 = vmul.f32 1.442695, %v5048_v5  ;;  %v5047_v45 = vsub.f32 %v5031_v25, %v5040_v33 }
 0xf4d   :  { %6482 = vpow2.f32 %v5051_v34  ;;  %v5049_v47 = vmul.f32 1.442695, %v5047_v45 }
 0xf4f   :  { %6484 = vpow2.f32 %v5049_v47 }
 0xf5a   :  { %v6483_v35 = vpop.eup %6482 }
 0xf5b   :  { %v5059_v36 = vrot.slane %v6483_v35, 4 }
 0xf5c   :  { %v6485_v38 = vpop.eup %6484 }
 0xf5d   :  { %v5060_v42 = vadd.f32 %v6483_v35, %v5059_v36  ;;  %v5053_v46 = vrot.slane %v6485_v38, 4 }
 0xf5f   :  { %v5061_v59 = vrot.slane %v5060_v42, 2  ;;  %v5054_v51 = vadd.f32 %v6485_v38, %v5053_v46 }
 0xf61   :  { %v5055_v48 = vrot.slane %v5054_v51, 2  ;;  %v5062_v52 = vadd.f32 %v5061_v59, %v5060_v42 }
 0xf63   :  { %v5056_v55 = vadd.f32 %v5055_v48, %v5054_v51  ;;  %v5063_v50 = vrot.slane %v5062_v52, 1 }
 0xf65   :  { %v5057_v56 = vrot.slane %v5056_v55, 1  ;;  %v5064_v57 = vadd.f32 %v5063_v50, %v5062_v52 }
 0xf67   :  { %v5058_v58 = vadd.f32 %v5057_v56, %v5056_v55  ;;  %6486 = vrcp.f32 %v5064_v57 }
 0xf69   :  { %6488 = vrcp.f32 %v5058_v58 }
 0xf74   :  { %v6487_v61 = vpop.eup %6486 }
 0xf75   :  { %v5068_v62 = vmul.f32 %v6487_v61, %v6483_v35 }
 0xf76   :  { %v6489_v12 = vpop.eup %6488 }
 0xf77   :  { %v5067_v63 = vmul.f32 %v6489_v12, %v6485_v38  ;;  %v5102_v0 = vmul.f32 %v5068_v62, %v7215_v44  ;;  %v5086_v1 = vmul.f32 %v5068_v62, %v7170_v43  ;;  %v5118_v2 = vmul.f32 %v5068_v62, %v7261_v6 }
 0xf78   :  { %v5070_v53 = vmul.f32 %v5068_v62, %v7118_v9 }
 0xf79   :  { %v5101_v54 = vmul.f32 %v5067_v63, %v7225_v13  ;;  %v5110_v15 = vsel %vm3361_vm1, %v5102_v0, 0.0  ;;  %v5085_v8 = vmul.f32 %v5067_v63, %v7166_v39  ;;  %v5094_v10 = vsel %vm3361_vm1, %v5086_v1, 0.0 }
 0xf7a   :  { %v5111_v11 = vrot.slane %v5110_v15, 4  ;;  %v5095_v28 = vrot.slane %v5094_v10, 4  ;;  %v5117_v29 = vmul.f32 %v5067_v63, %v7257_v49  ;;  %v5126_v44 = vsel %vm3361_vm1, %v5118_v2, 0.0 }
 0xf7b   :  { %v5103_v43 = vsel %vm3361_vm1, %v5101_v54, 0.0  ;;  %v5087_v6 = vsel %vm3361_vm1, %v5085_v8, 0.0  ;;  %v5127_v14 = vrot.slane %v5126_v44, 4  ;;  %v5078_v9 = vsel %vm3361_vm1, %v5070_v53, 0.0 }
 0xf7c   :  { %v5104_v13 = vrot.slane %v5103_v43, 4  ;;  %v5112_v17 = vadd.f32 %v5111_v11, %v5110_v15  ;;  %v5088_v18 = vrot.slane %v5087_v6, 4  ;;  %v5096_v19 = vadd.f32 %v5095_v28, %v5094_v10 }
 0xf7d   :  { %v5119_v39 = vsel %vm3361_vm1, %v5117_v29, 0.0  ;;  %v5128_v20 = vadd.f32 %v5127_v14, %v5126_v44  ;;  %v5079_v21 = vrot.slane %v5078_v9, 4  ;;  %v5069_v40 = vmul.f32 %v5067_v63, %v7116_v7 }
 0xf7e   :  { %v5105_v49 = vadd.f32 %v5104_v13, %v5103_v43  ;;  %v5113_v22 = vrot.slane %v5112_v17, 2  ;;  %v5089_v23 = vadd.f32 %v5088_v18, %v5087_v6  ;;  %v5097_v24 = vrot.slane %v5096_v19, 2 }
 0xf7f   :  { %v5120_v60 = vrot.slane %v5119_v39, 4  ;;  %v5129_v25 = vrot.slane %v5128_v20, 2  ;;  %v5080_v26 = vadd.f32 %v5079_v21, %v5078_v9  ;;  %v5071_v41 = vsel %vm3361_vm1, %v5069_v40, 0.0 }
 0xf80   :  { %v5106_v37 = vrot.slane %v5105_v49, 2  ;;  %v5114_v27 = vadd.f32 %v5113_v22, %v5112_v17  ;;  %v5090_v4 = vrot.slane %v5089_v23, 2  ;;  %v5098_v3 = vadd.f32 %v5097_v24, %v5096_v19 }
 0xf81   :  { %v5121_v16 = vadd.f32 %v5120_v60, %v5119_v39  ;;  %v5130_v30 = vadd.f32 %v5129_v25, %v5128_v20  ;;  %v5081_v31 = vrot.slane %v5080_v26, 2  ;;  %v5072_v32 = vrot.slane %v5071_v41, 4 }
 0xf82   :  { %v5107_v5 = vadd.f32 %v5106_v37, %v5105_v49  ;;  %v5115_v33 = vrot.slane %v5114_v27, 1  ;;  %v5091_v7 = vadd.f32 %v5090_v4, %v5089_v23  ;;  %v5099_v34 = vrot.slane %v5098_v3, 1 }
 0xf83   :  { %v5122_v45 = vrot.slane %v5121_v16, 2  ;;  %v5082_v47 = vadd.f32 %v5081_v31, %v5080_v26  ;;  %v5073_v35 = vadd.f32 %v5072_v32, %v5071_v41  ;;  %v5131_v46 = vrot.slane %v5130_v30, 1 }
 0xf84   :  { %v5108_v36 = vrot.slane %v5107_v5, 1  ;;  %v5092_v38 = vrot.slane %v5091_v7, 1  ;;  %v5116_v48 = vadd.f32 %v5115_v33, %v5114_v27  ;;  %v5100_v55 = vadd.f32 %v5099_v34, %v5098_v3 }
 0xf85   :  { %v5123_v42 = vadd.f32 %v5122_v45, %v5121_v16  ;;  %v5074_v59 = vrot.slane %v5073_v35, 2  ;;  %v5083_v56 = vrot.slane %v5082_v47, 1  ;;  %v5132_v63 = vadd.f32 %v5131_v46, %v5130_v30 }
 0xf86   :  { %v5109_v51 = vadd.f32 %v5108_v36, %v5107_v5  ;;  %v5093_v52 = vadd.f32 %v5092_v38, %v5091_v7 }
 0xf87   :  { %v5124_v50 = vrot.slane %v5123_v42, 1  ;;  %v5075_v57 = vadd.f32 %v5074_v59, %v5073_v35  ;;  %v5084_v0 = vadd.f32 %v5083_v56, %v5082_v47 }
 0xf88   :  { %v5146_v58 = vsel %vm5135_vm4, %v5116_v48, %v5109_v51  ;;  %v5140_v61 = vsel %vm5135_vm4, %v5100_v55, %v5093_v52 }
 0xf89   :  { %5147 = vrot.lane.b32.xlu1 %v5146_v58, %s6655_s2  ;;  %5141 = vrot.lane.b32.xlu0 %v5140_v61, %s6657_s22  ;;  %v5125_v62 = vadd.f32 %v5124_v50, %v5123_v42  ;;  %v5076_v12 = vrot.slane %v5075_v57, 1 }
 0xf8b   :  { %v5077_v1 = vadd.f32 %v5076_v12, %v5075_v57  ;;  %v5152_v2 = vsel %vm5135_vm4, %v5132_v63, %v5125_v62 }
 0xf8d   :  { %5153 = vrot.lane.b32.xlu1 %v5152_v2, %s6653_s3  ;;  %v5136_v53 = vsel %vm5135_vm4, %v5084_v0, %v5077_v1 }
 0xffb   :  { %v5148_v54 = vpop.permute.xlu1 %5147  ;;  %v5142_v15 = vpop.permute.xlu0 %5141 }
 0xffc   :  { %v5156_v8 = vsel %vm3361_vm1, %v5136_v53, %v5142_v15 }
 0xffd   :  { %v5157_v11 = vsel %vm5028_vm3, %v5156_v8, %v5148_v54 }
 0xfff   :  { %v5154_v10 = vpop.permute.xlu1 %5153 }
0x1000   :  { %v5159_v28 = vsel %vm5158_vm5, %v5157_v11, %v5154_v10 }
0x1001   :  { %5161 = vst.msk [vmem:[#allocation13] sm:$0x3] %vm5160_vm6, %v5159_v28 }
0x1002   :  { %6621 = shalt.err (!%p6618_p6)
}
0x1003   :  { %5171 = dma.vmem_to_hbm [thread:$0]  %s5169_s0, 32, %s7303_s8, [#allocation4]  }
0x1004   :  { %6638 = dma.done.wait [#allocation4], 32  }
0x1005   :  { %6639 = vsyncadd [#allocation4], 4294967264 }
0x1006   :  { %5175 = vsyncpa [#allocation3], 1 }
0x1007   :  { %5176 = vsyncpa [#allocation6], 1 }
0x1008   :  { %5177 = vsyncpa [#allocation9], 1 }
0x1009   :  { %5178 = vsyncpa [#allocation12], 1 }
0x100a   :  { %5179 = vsyncpa [#allocation4], 1 }

</bundles_post_ra>
